<compile_context>
chip_gen: v6e
topology: v6e:2x2x1
jax: 0.10.0
libtpu: 0.0.40
codegen_flags: <defaults>
</compile_context>

<pallas_src>
import math
from functools import partial

import numpy as np
import jax
import jax.numpy as jnp
from jax import lax
from jax.experimental import pallas as pl
from jax.experimental.pallas import tpu as pltpu

WDTYPE = jnp.bfloat16                     # matmul-weight storage dtype
_SQRT_2_OVER_PI = math.sqrt(2.0 / math.pi)


# ---------------------------------------------------------------------------
# small math helpers (usable inside the kernel)
# ---------------------------------------------------------------------------
def _gelu(x):
    # tanh-approx GELU (tanh runs on the EUP slot).  The torch module uses the
    # exact erf GELU; deviation is small and accepted for this bf16 kernel.
    return 0.5 * x * (1.0 + jnp.tanh(_SQRT_2_OVER_PI * (x + 0.044715 * x * x * x)))


def _layer_norm(x, w, b, eps):
    mu = jnp.mean(x, axis=-1, keepdims=True)
    var = jnp.mean(jnp.square(x - mu), axis=-1, keepdims=True)
    return (x - mu) * lax.rsqrt(var + eps) * w + b


def _binary_tanh(x):
    # hard_sigmoid -> torch.round (half-to-even) -> 2r - 1.
    # On [0,1] round-half-to-even(y) == (y > 0.5)  (0.5 rounds to 0).
    y = jnp.clip((x + 1.0) * 0.5, 0.0, 1.0)
    r = jnp.where(y > 0.5, 1.0, 0.0)
    return 2.0 * r - 1.0


def get_sinusoid_encoding_table(n_position, d_hid):
    def angle_vec(pos):
        return [pos / np.power(10000, 2 * (j // 2) / d_hid) for j in range(d_hid)]

    tab = np.array([angle_vec(p) for p in range(n_position)], dtype=np.float64)
    tab[:, 0::2] = np.sin(tab[:, 0::2])
    tab[:, 1::2] = np.cos(tab[:, 1::2])
    return jnp.asarray(tab[None], dtype=jnp.float32)  # (1, n_pos, d_hid)


# ---------------------------------------------------------------------------
# transformer block (runs on an (N, D) tile, weights are loaded arrays)
# ---------------------------------------------------------------------------
def _split_heads(m2d, num_heads, hd):
    # (N, H*hd) -> (H, N, hd) via static lane slices + leading-axis stack
    # (equivalent to reshape+transpose; robust Mosaic lowering).
    return jnp.stack([m2d[:, h * hd:(h + 1) * hd] for h in range(num_heads)], axis=0)


def _merge_heads(m3d, num_heads):
    # (H, N, hd) -> (N, H*hd), head-major concat (matches torch .transpose(1,2).reshape)
    return jnp.concatenate([m3d[h] for h in range(num_heads)], axis=-1)


def _block(x, lnp, wqkv, wproj, f1w, f1b, f2w, num_heads, eps):
    """One pre-norm transformer block.
    x:    (N, D) f32
    lnp:  (6, D) f32  rows = [ln1_w, ln1_b, proj_b, ln2_w, ln2_b, fc2_b]
    wqkv: (D, 3D) bf16 (qk scale folded into Q columns), wproj: (D, D) bf16
    f1w:  (D, hid) bf16, f1b: (1, hid) f32, f2w: (hid, D) bf16
    """
    n, d = x.shape
    hd = d // num_heads
    ln1w, ln1b, pb = lnp[0:1, :], lnp[1:2, :], lnp[2:3, :]
    ln2w, ln2b, f2b = lnp[3:4, :], lnp[4:5, :], lnp[5:6, :]

    # ---- attention: one fused lane-dense QKV matmul ----
    h = _layer_norm(x, ln1w, ln1b, eps)
    qkv = jnp.dot(h.astype(wqkv.dtype), wqkv,
                  preferred_element_type=jnp.float32).astype(jnp.bfloat16)   # (N, 3D)

    q = _split_heads(qkv[:, 0 * d:1 * d], num_heads, hd)    # (H, N, hd), scale pre-folded
    k = _split_heads(qkv[:, 1 * d:2 * d], num_heads, hd)
    v = _split_heads(qkv[:, 2 * d:3 * d], num_heads, hd)

    s = jnp.einsum('hqc,hkc->hqk', q, k, preferred_element_type=jnp.float32)  # (H, N, N)
    s = s - jnp.max(s, axis=-1, keepdims=True)
    p = jnp.exp(s)
    p = p * pl.reciprocal(jnp.sum(p, axis=-1, keepdims=True), approx=True)
    o = jnp.einsum('hqk,hkc->hqc', p.astype(jnp.bfloat16), v,
                   preferred_element_type=jnp.float32)                        # (H, N, hd)

    # ---- full-width output projection on re-merged heads ----
    o2d = _merge_heads(o, num_heads).astype(wproj.dtype)                      # (N, D)
    x = x + jnp.dot(o2d, wproj, preferred_element_type=jnp.float32) + pb

    # ---- MLP ----
    m = _layer_norm(x, ln2w, ln2b, eps)
    m = jnp.dot(m.astype(f1w.dtype), f1w, preferred_element_type=jnp.float32) + f1b
    m = _gelu(m)
    m = jnp.dot(m.astype(f2w.dtype), f2w, preferred_element_type=jnp.float32) + f2b
    return x + m


# ---------------------------------------------------------------------------
# fused forward kernel (one batch element per grid step)
# ---------------------------------------------------------------------------
def _forward_kernel(xv_ref, pe_vis_ref, pd_vis_ref, pd_msk_ref,
                    pew_ref, enc_vec_ref, e_hw_ref,
                    e_ln_ref, e_wqkv_ref, e_wproj_ref, e_f1w_ref, e_f1b_ref, e_f2w_ref,
                    bin_w_ref, hash_vec_ref, e2d_ref,
                    dec_vec_ref, d_hw_ref, d_hb_ref,
                    d_ln_ref, d_wqkv_ref, d_wproj_ref, d_f1w_ref, d_f1b_ref, d_f2w_ref,
                    out_ref, hash_ref,
                    *, enc_depth, dec_depth, enc_heads, dec_heads, eps):
    nmask = pd_msk_ref.shape[0]

    # ---------------- encoder: patch embed + pos ----------------
    x = (jnp.dot(xv_ref[...].astype(pew_ref.dtype), pew_ref[...],
                 preferred_element_type=jnp.float32)
         + enc_vec_ref[0:1, :] + pe_vis_ref[...])

    def enc_body(l, xc):
        return _block(xc, e_ln_ref[l], e_wqkv_ref[l], e_wproj_ref[l],
                      e_f1w_ref[l], e_f1b_ref[l], e_f2w_ref[l], enc_heads, eps)
    x = lax.fori_loop(0, enc_depth, enc_body, x)

    x = _layer_norm(x, enc_vec_ref[1:2, :], enc_vec_ref[2:3, :], eps)
    x = (jnp.dot(x.astype(e_hw_ref.dtype), e_hw_ref[...],
                 preferred_element_type=jnp.float32) + enc_vec_ref[3:4, :])

    # ---------------- hashing head ----------------
    hc = (jnp.dot(x.astype(bin_w_ref.dtype), bin_w_ref[...],
                  preferred_element_type=jnp.float32) + hash_vec_ref[0:1, :])
    hc = _layer_norm(hc, hash_vec_ref[1:2, :], hash_vec_ref[2:3, :], eps)
    hc = _binary_tanh(hc)
    hash_ref[...] = hc

    # ---------------- encoder -> decoder assembly ----------------
    xd = jnp.dot(hc.astype(e2d_ref.dtype), e2d_ref[...],
                 preferred_element_type=jnp.float32)          # enc2dec has no bias
    y = jnp.concatenate([xd + pd_vis_ref[...],
                         dec_vec_ref[0:1, :] + pd_msk_ref[...]], axis=0)

    # ---------------- decoder ----------------
    def dec_body(l, yc):
        return _block(yc, d_ln_ref[l], d_wqkv_ref[l], d_wproj_ref[l],
                      d_f1w_ref[l], d_f1b_ref[l], d_f2w_ref[l], dec_heads, eps)
    y = lax.fori_loop(0, dec_depth, dec_body, y)

    y = y[y.shape[0] - nmask:, :]                             # last n_mask tokens
    y = _layer_norm(y, dec_vec_ref[1:2, :], dec_vec_ref[2:3, :], eps)
    out_ref[...] = (jnp.dot(y.astype(d_hw_ref.dtype), d_hw_ref[...],
                            preferred_element_type=jnp.float32) + d_hb_ref[...])


# ---------------------------------------------------------------------------
# BlockSpec helpers
# ---------------------------------------------------------------------------
def _batch_spec(shape):
    nd = len(shape)
    return pl.BlockSpec((pl.Squeezed(),) + tuple(shape[1:]),
                        lambda b, _nd=nd: (b,) + (0,) * (_nd - 1))


def _full_spec(shape):
    # Grid-invariant weight slab (index_map constant over the batch grid).
    # TODO(synk): single-buffer these (pipeline_mode=pl.Buffered(1)) once
    # verified on the target jax build — halves resident weight VMEM on v7x.
    nd = len(shape)
    return pl.BlockSpec(tuple(shape), lambda b, _nd=nd: (0,) * _nd)


# ---------------------------------------------------------------------------
# parameter construction (torch layout) + one-time packing for the kernel
# ---------------------------------------------------------------------------
def _xavier(key, out_dim, in_dim):
    lim = math.sqrt(6.0 / (in_dim + out_dim))
    return jax.random.uniform(key, (out_dim, in_dim), jnp.float32, -lim, lim)


def init_block_params(key, dim, mlp_ratio):
    hid = int(dim * mlp_ratio)
    ks = jax.random.split(key, 4)
    return dict(
        ln1_w=jnp.ones((dim,), jnp.float32), ln1_b=jnp.zeros((dim,), jnp.float32),
        qkv_w=_xavier(ks[0], 3 * dim, dim),
        proj_w=_xavier(ks[1], dim, dim), proj_b=jnp.zeros((dim,), jnp.float32),
        ln2_w=jnp.ones((dim,), jnp.float32), ln2_b=jnp.zeros((dim,), jnp.float32),
        fc1_w=_xavier(ks[2], hid, dim), fc1_b=jnp.zeros((hid,), jnp.float32),
        fc2_w=_xavier(ks[3], dim, hid), fc2_b=jnp.zeros((dim,), jnp.float32),
    )


def init_transformer_params(key, cfg):
    ks = jax.random.split(key, 10)
    enc_blocks = [init_block_params(k, cfg['enc_dim'], cfg['mlp_ratio'])
                  for k in jax.random.split(ks[0], cfg['enc_depth'])]
    dec_blocks = [init_block_params(k, cfg['dec_dim'], cfg['mlp_ratio'])
                  for k in jax.random.split(ks[1], cfg['dec_depth'])]
    return dict(
        enc=dict(
            patch_embed_w=_xavier(ks[2], cfg['enc_dim'], cfg['feature_num']),
            patch_embed_b=jnp.zeros((cfg['enc_dim'],), jnp.float32),
            pos_embed=get_sinusoid_encoding_table(cfg['max_frame'], cfg['enc_dim']),
            blocks=enc_blocks,
            norm_w=jnp.ones((cfg['enc_dim'],), jnp.float32),
            norm_b=jnp.zeros((cfg['enc_dim'],), jnp.float32),
            head_w=_xavier(ks[3], cfg['enc_dim'], cfg['enc_dim']),
            head_b=jnp.zeros((cfg['enc_dim'],), jnp.float32),
        ),
        dec=dict(
            blocks=dec_blocks,
            norm_w=jnp.ones((cfg['dec_dim'],), jnp.float32),
            norm_b=jnp.zeros((cfg['dec_dim'],), jnp.float32),
            head_w=_xavier(ks[4], cfg['feature_num'], cfg['dec_dim']),
            head_b=jnp.zeros((cfg['feature_num'],), jnp.float32),
        ),
        binary_w=_xavier(ks[5], cfg['nbits'], cfg['enc_dim']),
        binary_b=jnp.zeros((cfg['nbits'],), jnp.float32),
        ln_w=jnp.ones((cfg['nbits'],), jnp.float32),
        ln_b=jnp.zeros((cfg['nbits'],), jnp.float32),
        enc2dec_w=_xavier(ks[6], cfg['dec_dim'], cfg['nbits']),
        mask_token=0.02 * jax.random.truncated_normal(
            ks[7], -2.0, 2.0, (1, 1, cfg['dec_dim']), jnp.float32),
        dec_pos_embed=get_sinusoid_encoding_table(cfg['max_frame'], cfg['dec_dim']),
    )


def _pack_block_stack(blocks, num_heads):
    """One-time packing: transpose to (in, out), fold qk scale into Q columns,
    cast matmul weights to bf16, consolidate LN/bias vectors into (L, 6, D)."""
    dim = blocks[0]['ln1_w'].shape[0]
    hd = dim // num_heads
    scale = hd ** (-0.5)

    def per_layer(p):
        wqkv = jnp.transpose(p['qkv_w'])                          # (D, 3D)
        wqkv = jnp.concatenate([wqkv[:, :dim] * scale, wqkv[:, dim:]], axis=1)
        return dict(
            ln=jnp.stack([p['ln1_w'], p['ln1_b'], p['proj_b'],
                          p['ln2_w'], p['ln2_b'], p['fc2_b']], axis=0),      # (6, D) f32
            wqkv=wqkv.astype(WDTYPE),
            wproj=jnp.transpose(p['proj_w']).astype(WDTYPE),
            f1w=jnp.transpose(p['fc1_w']).astype(WDTYPE),
            f1b=p['fc1_b'].reshape(1, -1),
            f2w=jnp.transpose(p['fc2_w']).astype(WDTYPE),
        )

    per = [per_layer(p) for p in blocks]
    keys = ('ln', 'wqkv', 'wproj', 'f1w', 'f1b', 'f2w')
    return tuple(jnp.stack([pp[k] for pp in per], axis=0) for k in keys)


def pack_params(params, cfg):
    enc, dec = params['enc'], params['dec']
    Dd = cfg['dec_dim']
    kernel_args = (
        (jnp.transpose(enc['patch_embed_w']).astype(WDTYPE),                 # (F, De)
         jnp.stack([enc['patch_embed_b'], enc['norm_w'],
                    enc['norm_b'], enc['head_b']], axis=0),                  # (4, De) f32
         jnp.transpose(enc['head_w']).astype(WDTYPE))                        # (De, De)
        + _pack_block_stack(enc['blocks'], cfg['enc_heads'])
        + (jnp.transpose(params['binary_w']).astype(WDTYPE),                 # (De, nbits)
           jnp.stack([params['binary_b'], params['ln_w'], params['ln_b']], axis=0),
           jnp.transpose(params['enc2dec_w']).astype(WDTYPE),                # (nbits, Dd)
           jnp.stack([params['mask_token'].reshape(Dd),
                      dec['norm_w'], dec['norm_b']], axis=0),                # (3, Dd) f32
           jnp.transpose(dec['head_w']).astype(WDTYPE),                      # (Dd, F)
           dec['head_b'].reshape(1, -1))                                     # (1, F) f32
        + _pack_block_stack(dec['blocks'], cfg['dec_heads'])
    )
    return dict(
        kernel_args=kernel_args,
        enc_pos=enc['pos_embed'][0],          # (T, De)
        dec_pos=params['dec_pos_embed'][0],   # (T, Dd)
    )


# ---------------------------------------------------------------------------
# forward pass: one fused pallas_call (grid over batch)
# ---------------------------------------------------------------------------
def transformer_forward(x, mask_np, packed, cfg):
    B, T, Fnum = x.shape
    nbits = cfg['nbits']
    mask_np = np.asarray(mask_np, dtype=bool)

    # static (trace-time) gather indices; torch semantics require equal counts
    # of masked tokens per batch element.
    nv = int((~mask_np[0]).sum())
    nm = T - nv
    vis_idx = np.stack([np.nonzero(~mask_np[b])[0] for b in range(B)])   # (B, nv)
    msk_idx = np.stack([np.nonzero(mask_np[b])[0] for b in range(B)])    # (B, nm)
    bidx = np.arange(B)[:, None]

    x_vis = x[bidx, vis_idx]                          # (B, nv, F)
    pos_enc_vis = packed['enc_pos'][vis_idx]          # (B, nv, De)
    pos_dec_vis = packed['dec_pos'][vis_idx]          # (B, nv, Dd)
    pos_dec_msk = packed['dec_pos'][msk_idx]          # (B, nm, Dd)

    acts = (x_vis, pos_enc_vis, pos_dec_vis, pos_dec_msk)
    args = acts + tuple(packed['kernel_args'])

    in_specs = ([_batch_spec(a.shape) for a in acts]
                + [_full_spec(a.shape) for a in packed['kernel_args']])
    out_shape = (jax.ShapeDtypeStruct((B, nm, Fnum), jnp.float32),
                 jax.ShapeDtypeStruct((B, nv, nbits), jnp.float32))
    out_specs = (_batch_spec((B, nm, Fnum)), _batch_spec((B, nv, nbits)))

    kernel = partial(_forward_kernel,
                     enc_depth=cfg['enc_depth'], dec_depth=cfg['dec_depth'],
                     enc_heads=cfg['enc_heads'], dec_heads=cfg['dec_heads'],
                     eps=1e-5)

    out, hash_code = pl.pallas_call(
        kernel,
        out_shape=out_shape,
        grid=(B,),
        in_specs=in_specs,
        out_specs=out_specs,
        compiler_params=pltpu.CompilerParams(
            dimension_semantics=("parallel",),          # batch across TCs (v7x)
            vmem_limit_bytes=48 * 1024 * 1024),
    )(*args)
    return out, hash_code


if __name__ == "__main__":
    # lane-dense toy config: all last dims multiples of 128, head_dim = 64
    cfg = dict(feature_num=128, enc_dim=128, dec_dim=128, max_frame=16, nbits=128,
               enc_depth=2, dec_depth=2, enc_heads=2, dec_heads=2, mlp_ratio=4.0)
    key = jax.random.PRNGKey(0)
    k_par, k_x = jax.random.split(key)
    params = init_transformer_params(k_par, cfg)
    packed = pack_params(params, cfg)     # one-time transpose / scale-fold / bf16 / stack

    B = 2
    x = jax.random.normal(k_x, (B, cfg['max_frame'], cfg['feature_num']), jnp.float32)
    # mask: same number of masked frames per sample (required by the torch
    # reshape semantics); mask the second half of the frames.
    mask_np = np.zeros((B, cfg['max_frame']), dtype=bool)
    mask_np[:, cfg['max_frame'] // 2:] = True

    out, hash_code = transformer_forward(x, mask_np, packed, cfg)
    jax.block_until_ready((out, hash_code))

    assert out.shape == (B, cfg['max_frame'] // 2, cfg['feature_num'])
    assert hash_code.shape == (B, cfg['max_frame'] // 2, cfg['nbits'])
    assert bool(jnp.all(jnp.abs(hash_code) == 1.0))
    print("KERNEL_OK")
</pallas_src>

<mosaic_0001>
module attributes {stable_mosaic.version = 11 : i64} {
  func.func @_forward_kernel(%arg0: i32, %arg1: memref<1x8x128xf32, #tpu.memory_space<vmem>>, %arg2: memref<1x8x128xf32, #tpu.memory_space<vmem>>, %arg3: memref<1x8x128xf32, #tpu.memory_space<vmem>>, %arg4: memref<1x8x128xf32, #tpu.memory_space<vmem>>, %arg5: memref<128x128xbf16, #tpu.memory_space<vmem>>, %arg6: memref<4x128xf32, #tpu.memory_space<vmem>>, %arg7: memref<128x128xbf16, #tpu.memory_space<vmem>>, %arg8: memref<2x6x128xf32, #tpu.memory_space<vmem>>, %arg9: memref<2x128x384xbf16, #tpu.memory_space<vmem>>, %arg10: memref<2x128x128xbf16, #tpu.memory_space<vmem>>, %arg11: memref<2x128x512xbf16, #tpu.memory_space<vmem>>, %arg12: memref<2x1x512xf32, #tpu.memory_space<vmem>>, %arg13: memref<2x512x128xbf16, #tpu.memory_space<vmem>>, %arg14: memref<128x128xbf16, #tpu.memory_space<vmem>>, %arg15: memref<3x128xf32, #tpu.memory_space<vmem>>, %arg16: memref<128x128xbf16, #tpu.memory_space<vmem>>, %arg17: memref<3x128xf32, #tpu.memory_space<vmem>>, %arg18: memref<128x128xbf16, #tpu.memory_space<vmem>>, %arg19: memref<1x128xf32, #tpu.memory_space<vmem>>, %arg20: memref<2x6x128xf32, #tpu.memory_space<vmem>>, %arg21: memref<2x128x384xbf16, #tpu.memory_space<vmem>>, %arg22: memref<2x128x128xbf16, #tpu.memory_space<vmem>>, %arg23: memref<2x128x512xbf16, #tpu.memory_space<vmem>>, %arg24: memref<2x1x512xf32, #tpu.memory_space<vmem>>, %arg25: memref<2x512x128xbf16, #tpu.memory_space<vmem>>, %arg26: memref<1x8x128xf32, #tpu.memory_space<vmem>>, %arg27: memref<1x8x128xf32, #tpu.memory_space<vmem>>) attributes {dimension_semantics = [#tpu.dimension_semantics<parallel>], iteration_bounds = array<i64: 2>, scalar_prefetch = 0 : i64, scratch_operands = 0 : i64, tpu.core_type = #tpu.core_type<tc>, window_params = [{transform_indices = @transform_0, window_bounds = array<i64: 1, 8, 128>}, {transform_indices = @transform_1, window_bounds = array<i64: 1, 8, 128>}, {transform_indices = @transform_2, window_bounds = array<i64: 1, 8, 128>}, {transform_indices = @transform_3, window_bounds = array<i64: 1, 8, 128>}, {pipeline_mode = #tpu.pipeline_mode<synchronous>, transform_indices = @transform_4, window_bounds = array<i64: 128, 128>}, {pipeline_mode = #tpu.pipeline_mode<synchronous>, transform_indices = @transform_5, window_bounds = array<i64: 4, 128>}, {pipeline_mode = #tpu.pipeline_mode<synchronous>, transform_indices = @transform_6, window_bounds = array<i64: 128, 128>}, {pipeline_mode = #tpu.pipeline_mode<synchronous>, transform_indices = @transform_7, window_bounds = array<i64: 2, 6, 128>}, {pipeline_mode = #tpu.pipeline_mode<synchronous>, transform_indices = @transform_8, window_bounds = array<i64: 2, 128, 384>}, {pipeline_mode = #tpu.pipeline_mode<synchronous>, transform_indices = @transform_9, window_bounds = array<i64: 2, 128, 128>}, {pipeline_mode = #tpu.pipeline_mode<synchronous>, transform_indices = @transform_10, window_bounds = array<i64: 2, 128, 512>}, {pipeline_mode = #tpu.pipeline_mode<synchronous>, transform_indices = @transform_11, window_bounds = array<i64: 2, 1, 512>}, {pipeline_mode = #tpu.pipeline_mode<synchronous>, transform_indices = @transform_12, window_bounds = array<i64: 2, 512, 128>}, {pipeline_mode = #tpu.pipeline_mode<synchronous>, transform_indices = @transform_13, window_bounds = array<i64: 128, 128>}, {pipeline_mode = #tpu.pipeline_mode<synchronous>, transform_indices = @transform_14, window_bounds = array<i64: 3, 128>}, {pipeline_mode = #tpu.pipeline_mode<synchronous>, transform_indices = @transform_15, window_bounds = array<i64: 128, 128>}, {pipeline_mode = #tpu.pipeline_mode<synchronous>, transform_indices = @transform_16, window_bounds = array<i64: 3, 128>}, {pipeline_mode = #tpu.pipeline_mode<synchronous>, transform_indices = @transform_17, window_bounds = array<i64: 128, 128>}, {pipeline_mode = #tpu.pipeline_mode<synchronous>, transform_indices = @transform_18, window_bounds = array<i64: 1, 128>}, {pipeline_mode = #tpu.pipeline_mode<synchronous>, transform_indices = @transform_19, window_bounds = array<i64: 2, 6, 128>}, {pipeline_mode = #tpu.pipeline_mode<synchronous>, transform_indices = @transform_20, window_bounds = array<i64: 2, 128, 384>}, {pipeline_mode = #tpu.pipeline_mode<synchronous>, transform_indices = @transform_21, window_bounds = array<i64: 2, 128, 128>}, {pipeline_mode = #tpu.pipeline_mode<synchronous>, transform_indices = @transform_22, window_bounds = array<i64: 2, 128, 512>}, {pipeline_mode = #tpu.pipeline_mode<synchronous>, transform_indices = @transform_23, window_bounds = array<i64: 2, 1, 512>}, {pipeline_mode = #tpu.pipeline_mode<synchronous>, transform_indices = @transform_24, window_bounds = array<i64: 2, 512, 128>}, {transform_indices = @transform_25, window_bounds = array<i64: 1, 8, 128>}, {transform_indices = @transform_26, window_bounds = array<i64: 1, 8, 128>}]} {
    %c0 = arith.constant 0 : index
    %c0_0 = arith.constant 0 : index
    %c0_1 = arith.constant 0 : index
    %0 = vector.load %arg1[%c0, %c0_0, %c0_1] : memref<1x8x128xf32, #tpu.memory_space<vmem>>, vector<1x8x128xf32>
    %1 = vector.shape_cast %0 : vector<1x8x128xf32> to vector<8x128xf32>
    %2 = arith.truncf %1 : vector<8x128xf32> to vector<8x128xbf16>
    %c0_2 = arith.constant 0 : index
    %c0_3 = arith.constant 0 : index
    %3 = vector.load %arg5[%c0_2, %c0_3] : memref<128x128xbf16, #tpu.memory_space<vmem>>, vector<128x128xbf16>
    %cst = arith.constant dense<0.000000e+00> : vector<8x128xf32>
    %4 = tpu.matmul %2, %3, %cst {dimension_numbers = #tpu.dot_dimension_numbers<[1], [0], [0], [1], [0, 0, 1, 1], [], []>} : vector<8x128xbf16>, vector<128x128xbf16>, vector<8x128xf32> -> vector<8x128xf32>
    %c0_4 = arith.constant 0 : index
    %c0_5 = arith.constant 0 : index
    %5 = vector.load %arg6[%c0_4, %c0_5] : memref<4x128xf32, #tpu.memory_space<vmem>>, vector<1x128xf32>
    %6 = vector.broadcast %5 : vector<1x128xf32> to vector<8x128xf32>
    %7 = arith.addf %4, %6 : vector<8x128xf32>
    %c0_6 = arith.constant 0 : index
    %c0_7 = arith.constant 0 : index
    %c0_8 = arith.constant 0 : index
    %8 = vector.load %arg2[%c0_6, %c0_7, %c0_8] : memref<1x8x128xf32, #tpu.memory_space<vmem>>, vector<1x8x128xf32>
    %9 = vector.shape_cast %8 : vector<1x8x128xf32> to vector<8x128xf32>
    %10 = arith.addf %7, %9 : vector<8x128xf32>
    %c0_i32 = arith.constant 0 : i32
    %c2_i32 = arith.constant 2 : i32
    %11 = arith.addi %c0_i32, %c2_i32 : i32
    %c1_i32 = arith.constant 1 : i32
    %12 = scf.for %arg28 = %c0_i32 to %11 step %c1_i32 iter_args(%arg29 = %10) -> (vector<8x128xf32>)  : i32 {
      %141 = arith.index_cast %arg28 : i32 to index
      %c0_79 = arith.constant 0 : index
      %c0_80 = arith.constant 0 : index
      %142 = vector.load %arg8[%141, %c0_79, %c0_80] : memref<2x6x128xf32, #tpu.memory_space<vmem>>, vector<1x6x128xf32>
      %143 = vector.shape_cast %142 : vector<1x6x128xf32> to vector<6x128xf32>
      %144 = arith.index_cast %arg28 : i32 to index
      %c0_81 = arith.constant 0 : index
      %c0_82 = arith.constant 0 : index
      %145 = vector.load %arg9[%144, %c0_81, %c0_82] : memref<2x128x384xbf16, #tpu.memory_space<vmem>>, vector<1x128x384xbf16>
      %146 = vector.shape_cast %145 : vector<1x128x384xbf16> to vector<128x384xbf16>
      %147 = arith.index_cast %arg28 : i32 to index
      %c0_83 = arith.constant 0 : index
      %c0_84 = arith.constant 0 : index
      %148 = vector.load %arg10[%147, %c0_83, %c0_84] : memref<2x128x128xbf16, #tpu.memory_space<vmem>>, vector<1x128x128xbf16>
      %149 = vector.shape_cast %148 : vector<1x128x128xbf16> to vector<128x128xbf16>
      %150 = arith.index_cast %arg28 : i32 to index
      %c0_85 = arith.constant 0 : index
      %c0_86 = arith.constant 0 : index
      %151 = vector.load %arg11[%150, %c0_85, %c0_86] : memref<2x128x512xbf16, #tpu.memory_space<vmem>>, vector<1x128x512xbf16>
      %152 = vector.shape_cast %151 : vector<1x128x512xbf16> to vector<128x512xbf16>
      %153 = arith.index_cast %arg28 : i32 to index
      %c0_87 = arith.constant 0 : index
      %c0_88 = arith.constant 0 : index
      %154 = vector.load %arg12[%153, %c0_87, %c0_88] : memref<2x1x512xf32, #tpu.memory_space<vmem>>, vector<1x1x512xf32>
      %155 = vector.shape_cast %154 : vector<1x1x512xf32> to vector<1x512xf32>
      %156 = arith.index_cast %arg28 : i32 to index
      %c0_89 = arith.constant 0 : index
      %c0_90 = arith.constant 0 : index
      %157 = vector.load %arg13[%156, %c0_89, %c0_90] : memref<2x512x128xbf16, #tpu.memory_space<vmem>>, vector<1x512x128xbf16>
      %158 = vector.shape_cast %157 : vector<1x512x128xbf16> to vector<512x128xbf16>
      %159 = vector.extract_strided_slice %143 {offsets = [0, 0], sizes = [1, 128], strides = [1, 1]} : vector<6x128xf32> to vector<1x128xf32>
      %160 = vector.extract_strided_slice %143 {offsets = [1, 0], sizes = [1, 128], strides = [1, 1]} : vector<6x128xf32> to vector<1x128xf32>
      %161 = vector.extract_strided_slice %143 {offsets = [2, 0], sizes = [1, 128], strides = [1, 1]} : vector<6x128xf32> to vector<1x128xf32>
      %162 = vector.extract_strided_slice %143 {offsets = [3, 0], sizes = [1, 128], strides = [1, 1]} : vector<6x128xf32> to vector<1x128xf32>
      %163 = vector.extract_strided_slice %143 {offsets = [4, 0], sizes = [1, 128], strides = [1, 1]} : vector<6x128xf32> to vector<1x128xf32>
      %164 = vector.extract_strided_slice %143 {offsets = [5, 0], sizes = [1, 128], strides = [1, 1]} : vector<6x128xf32> to vector<1x128xf32>
      %cst_91 = arith.constant dense<0.000000e+00> : vector<8xf32>
      %165 = vector.multi_reduction <add>, %arg29, %cst_91 [1] : vector<8x128xf32> to vector<8xf32>
      %166 = vector.shape_cast %165 : vector<8xf32> to vector<8x1xf32>
      %cst_92 = arith.constant 1.280000e+02 : f32
      %167 = vector.broadcast %cst_92 : f32 to vector<8x1xf32>
      %168 = arith.divf %166, %167 : vector<8x1xf32>
      %169 = vector.broadcast %168 : vector<8x1xf32> to vector<8x128xf32>
      %170 = arith.subf %arg29, %169 : vector<8x128xf32>
      %171 = arith.mulf %170, %170 : vector<8x128xf32>
      %cst_93 = arith.constant dense<0.000000e+00> : vector<8xf32>
      %172 = vector.multi_reduction <add>, %171, %cst_93 [1] : vector<8x128xf32> to vector<8xf32>
      %173 = vector.shape_cast %172 : vector<8xf32> to vector<8x1xf32>
      %cst_94 = arith.constant 1.280000e+02 : f32
      %174 = vector.broadcast %cst_94 : f32 to vector<8x1xf32>
      %175 = arith.divf %173, %174 : vector<8x1xf32>
      %176 = vector.broadcast %168 : vector<8x1xf32> to vector<8x128xf32>
      %177 = arith.subf %arg29, %176 : vector<8x128xf32>
      %cst_95 = arith.constant 9.99999974E-6 : f32
      %178 = vector.broadcast %cst_95 : f32 to vector<8x1xf32>
      %179 = arith.addf %175, %178 : vector<8x1xf32>
      %180 = math.rsqrt %179 : vector<8x1xf32>
      %181 = vector.broadcast %180 : vector<8x1xf32> to vector<8x128xf32>
      %182 = arith.mulf %177, %181 : vector<8x128xf32>
      %183 = vector.broadcast %159 : vector<1x128xf32> to vector<8x128xf32>
      %184 = arith.mulf %182, %183 : vector<8x128xf32>
      %185 = vector.broadcast %160 : vector<1x128xf32> to vector<8x128xf32>
      %186 = arith.addf %184, %185 : vector<8x128xf32>
      %187 = arith.truncf %186 : vector<8x128xf32> to vector<8x128xbf16>
      %cst_96 = arith.constant dense<0.000000e+00> : vector<8x384xf32>
      %188 = tpu.matmul %187, %146, %cst_96 {dimension_numbers = #tpu.dot_dimension_numbers<[1], [0], [0], [1], [0, 0, 1, 1], [], []>} : vector<8x128xbf16>, vector<128x384xbf16>, vector<8x384xf32> -> vector<8x384xf32>
      %189 = arith.truncf %188 : vector<8x384xf32> to vector<8x384xbf16>
      %190 = vector.extract_strided_slice %189 {offsets = [0, 0], sizes = [8, 128], strides = [1, 1]} : vector<8x384xbf16> to vector<8x128xbf16>
      %191 = vector.extract_strided_slice %190 {offsets = [0, 0], sizes = [8, 64], strides = [1, 1]} : vector<8x128xbf16> to vector<8x64xbf16>
      %192 = vector.extract_strided_slice %190 {offsets = [0, 64], sizes = [8, 64], strides = [1, 1]} : vector<8x128xbf16> to vector<8x64xbf16>
      %193 = vector.shape_cast %191 : vector<8x64xbf16> to vector<1x8x64xbf16>
      %194 = vector.shape_cast %192 : vector<8x64xbf16> to vector<1x8x64xbf16>
      %195 = tpu.concatenate %193, %194 in 0 : vector<1x8x64xbf16>, vector<1x8x64xbf16> -> vector<2x8x64xbf16>
      %196 = vector.extract_strided_slice %189 {offsets = [0, 128], sizes = [8, 128], strides = [1, 1]} : vector<8x384xbf16> to vector<8x128xbf16>
      %197 = vector.extract_strided_slice %196 {offsets = [0, 0], sizes = [8, 64], strides = [1, 1]} : vector<8x128xbf16> to vector<8x64xbf16>
      %198 = vector.extract_strided_slice %196 {offsets = [0, 64], sizes = [8, 64], strides = [1, 1]} : vector<8x128xbf16> to vector<8x64xbf16>
      %199 = vector.shape_cast %197 : vector<8x64xbf16> to vector<1x8x64xbf16>
      %200 = vector.shape_cast %198 : vector<8x64xbf16> to vector<1x8x64xbf16>
      %201 = tpu.concatenate %199, %200 in 0 : vector<1x8x64xbf16>, vector<1x8x64xbf16> -> vector<2x8x64xbf16>
      %202 = vector.extract_strided_slice %189 {offsets = [0, 256], sizes = [8, 128], strides = [1, 1]} : vector<8x384xbf16> to vector<8x128xbf16>
      %203 = vector.extract_strided_slice %202 {offsets = [0, 0], sizes = [8, 64], strides = [1, 1]} : vector<8x128xbf16> to vector<8x64xbf16>
      %204 = vector.extract_strided_slice %202 {offsets = [0, 64], sizes = [8, 64], strides = [1, 1]} : vector<8x128xbf16> to vector<8x64xbf16>
      %205 = vector.shape_cast %203 : vector<8x64xbf16> to vector<1x8x64xbf16>
      %206 = vector.shape_cast %204 : vector<8x64xbf16> to vector<1x8x64xbf16>
      %207 = tpu.concatenate %205, %206 in 0 : vector<1x8x64xbf16>, vector<1x8x64xbf16> -> vector<2x8x64xbf16>
      "tpu.trace_start"() <{level = 10 : i32, message = "hqc,hkc->hqk"}> : () -> ()
      %cst_97 = arith.constant dense<0.000000e+00> : vector<2x8x8xf32>
      %208 = tpu.matmul %195, %201, %cst_97 {dimension_numbers = #tpu.dot_dimension_numbers<[2], [2], [1], [1], [0, 0, 0, 1, 1, 1], [0], [0]>} : vector<2x8x64xbf16>, vector<2x8x64xbf16>, vector<2x8x8xf32> -> vector<2x8x8xf32>
      "tpu.trace_stop"() : () -> ()
      %cst_98 = arith.constant dense<0xFF800000> : vector<2x8xf32>
      %209 = vector.multi_reduction <maximumf>, %208, %cst_98 [2] : vector<2x8x8xf32> to vector<2x8xf32>
      %210 = vector.shape_cast %209 : vector<2x8xf32> to vector<2x8x1xf32>
      %211 = vector.broadcast %210 : vector<2x8x1xf32> to vector<2x8x8xf32>
      %212 = arith.subf %208, %211 : vector<2x8x8xf32>
      %213 = math.exp %212 : vector<2x8x8xf32>
      %cst_99 = arith.constant dense<0.000000e+00> : vector<2x8xf32>
      %214 = vector.multi_reduction <add>, %213, %cst_99 [2] : vector<2x8x8xf32> to vector<2x8xf32>
      %215 = vector.shape_cast %214 : vector<2x8xf32> to vector<2x8x1xf32>
      %216 = tpu.reciprocal %215 {approx = true} : vector<2x8x1xf32> -> vector<2x8x1xf32>
      %217 = vector.broadcast %216 : vector<2x8x1xf32> to vector<2x8x8xf32>
      %218 = arith.mulf %213, %217 : vector<2x8x8xf32>
      %219 = arith.truncf %218 : vector<2x8x8xf32> to vector<2x8x8xbf16>
      "tpu.trace_start"() <{level = 10 : i32, message = "hqk,hkc->hqc"}> : () -> ()
      %cst_100 = arith.constant dense<0.000000e+00> : vector<2x8x64xf32>
      %220 = tpu.matmul %219, %207, %cst_100 {dimension_numbers = #tpu.dot_dimension_numbers<[2], [1], [1], [2], [0, 0, 0, 1, 1, 2], [0], [0]>} : vector<2x8x8xbf16>, vector<2x8x64xbf16>, vector<2x8x64xf32> -> vector<2x8x64xf32>
      "tpu.trace_stop"() : () -> ()
      %221 = vector.extract_strided_slice %220 {offsets = [0, 0, 0], sizes = [1, 8, 64], strides = [1, 1, 1]} : vector<2x8x64xf32> to vector<1x8x64xf32>
      %222 = vector.shape_cast %221 : vector<1x8x64xf32> to vector<8x64xf32>
      %223 = vector.extract_strided_slice %220 {offsets = [1, 0, 0], sizes = [1, 8, 64], strides = [1, 1, 1]} : vector<2x8x64xf32> to vector<1x8x64xf32>
      %224 = vector.shape_cast %223 : vector<1x8x64xf32> to vector<8x64xf32>
      %225 = tpu.concatenate %222, %224 in 1 : vector<8x64xf32>, vector<8x64xf32> -> vector<8x128xf32>
      %226 = arith.truncf %225 : vector<8x128xf32> to vector<8x128xbf16>
      %cst_101 = arith.constant dense<0.000000e+00> : vector<8x128xf32>
      %227 = tpu.matmul %226, %149, %cst_101 {dimension_numbers = #tpu.dot_dimension_numbers<[1], [0], [0], [1], [0, 0, 1, 1], [], []>} : vector<8x128xbf16>, vector<128x128xbf16>, vector<8x128xf32> -> vector<8x128xf32>
      %228 = arith.addf %arg29, %227 : vector<8x128xf32>
      %229 = vector.broadcast %161 : vector<1x128xf32> to vector<8x128xf32>
      %230 = arith.addf %228, %229 : vector<8x128xf32>
      %cst_102 = arith.constant dense<0.000000e+00> : vector<8xf32>
      %231 = vector.multi_reduction <add>, %230, %cst_102 [1] : vector<8x128xf32> to vector<8xf32>
      %232 = vector.shape_cast %231 : vector<8xf32> to vector<8x1xf32>
      %cst_103 = arith.constant 1.280000e+02 : f32
      %233 = vector.broadcast %cst_103 : f32 to vector<8x1xf32>
      %234 = arith.divf %232, %233 : vector<8x1xf32>
      %235 = vector.broadcast %234 : vector<8x1xf32> to vector<8x128xf32>
      %236 = arith.subf %230, %235 : vector<8x128xf32>
      %237 = arith.mulf %236, %236 : vector<8x128xf32>
      %cst_104 = arith.constant dense<0.000000e+00> : vector<8xf32>
      %238 = vector.multi_reduction <add>, %237, %cst_104 [1] : vector<8x128xf32> to vector<8xf32>
      %239 = vector.shape_cast %238 : vector<8xf32> to vector<8x1xf32>
      %cst_105 = arith.constant 1.280000e+02 : f32
      %240 = vector.broadcast %cst_105 : f32 to vector<8x1xf32>
      %241 = arith.divf %239, %240 : vector<8x1xf32>
      %242 = vector.broadcast %234 : vector<8x1xf32> to vector<8x128xf32>
      %243 = arith.subf %230, %242 : vector<8x128xf32>
      %cst_106 = arith.constant 9.99999974E-6 : f32
      %244 = vector.broadcast %cst_106 : f32 to vector<8x1xf32>
      %245 = arith.addf %241, %244 : vector<8x1xf32>
      %246 = math.rsqrt %245 : vector<8x1xf32>
      %247 = vector.broadcast %246 : vector<8x1xf32> to vector<8x128xf32>
      %248 = arith.mulf %243, %247 : vector<8x128xf32>
      %249 = vector.broadcast %162 : vector<1x128xf32> to vector<8x128xf32>
      %250 = arith.mulf %248, %249 : vector<8x128xf32>
      %251 = vector.broadcast %163 : vector<1x128xf32> to vector<8x128xf32>
      %252 = arith.addf %250, %251 : vector<8x128xf32>
      %253 = arith.truncf %252 : vector<8x128xf32> to vector<8x128xbf16>
      %cst_107 = arith.constant dense<0.000000e+00> : vector<8x512xf32>
      %254 = tpu.matmul %253, %152, %cst_107 {dimension_numbers = #tpu.dot_dimension_numbers<[1], [0], [0], [1], [0, 0, 1, 1], [], []>} : vector<8x128xbf16>, vector<128x512xbf16>, vector<8x512xf32> -> vector<8x512xf32>
      %255 = vector.broadcast %155 : vector<1x512xf32> to vector<8x512xf32>
      %256 = arith.addf %254, %255 : vector<8x512xf32>
      %cst_108 = arith.constant 5.000000e-01 : f32
      %257 = vector.broadcast %cst_108 : f32 to vector<8x512xf32>
      %258 = arith.mulf %257, %256 : vector<8x512xf32>
      %cst_109 = arith.constant 4.471500e-02 : f32
      %259 = vector.broadcast %cst_109 : f32 to vector<8x512xf32>
      %260 = arith.mulf %259, %256 : vector<8x512xf32>
      %261 = arith.mulf %260, %256 : vector<8x512xf32>
      %262 = arith.mulf %261, %256 : vector<8x512xf32>
      %263 = arith.addf %256, %262 : vector<8x512xf32>
      %cst_110 = arith.constant 0.797884583 : f32
      %264 = vector.broadcast %cst_110 : f32 to vector<8x512xf32>
      %265 = arith.mulf %264, %263 : vector<8x512xf32>
      %266 = math.tanh %265 : vector<8x512xf32>
      %cst_111 = arith.constant 1.000000e+00 : f32
      %267 = vector.broadcast %cst_111 : f32 to vector<8x512xf32>
      %268 = arith.addf %267, %266 : vector<8x512xf32>
      %269 = arith.mulf %258, %268 : vector<8x512xf32>
      %270 = arith.truncf %269 : vector<8x512xf32> to vector<8x512xbf16>
      %cst_112 = arith.constant dense<0.000000e+00> : vector<8x128xf32>
      %271 = tpu.matmul %270, %158, %cst_112 {dimension_numbers = #tpu.dot_dimension_numbers<[1], [0], [0], [1], [0, 0, 1, 1], [], []>} : vector<8x512xbf16>, vector<512x128xbf16>, vector<8x128xf32> -> vector<8x128xf32>
      %272 = vector.broadcast %164 : vector<1x128xf32> to vector<8x128xf32>
      %273 = arith.addf %271, %272 : vector<8x128xf32>
      %274 = arith.addf %230, %273 : vector<8x128xf32>
      scf.yield %274 : vector<8x128xf32>
    }
    %c2_i32_9 = arith.constant 2 : i32
    %c1 = arith.constant 1 : index
    %c0_10 = arith.constant 0 : index
    %13 = vector.load %arg6[%c1, %c0_10] : memref<4x128xf32, #tpu.memory_space<vmem>>, vector<1x128xf32>
    %c2 = arith.constant 2 : index
    %c0_11 = arith.constant 0 : index
    %14 = vector.load %arg6[%c2, %c0_11] : memref<4x128xf32, #tpu.memory_space<vmem>>, vector<1x128xf32>
    %cst_12 = arith.constant dense<0.000000e+00> : vector<8xf32>
    %15 = vector.multi_reduction <add>, %12, %cst_12 [1] : vector<8x128xf32> to vector<8xf32>
    %16 = vector.shape_cast %15 : vector<8xf32> to vector<8x1xf32>
    %cst_13 = arith.constant 1.280000e+02 : f32
    %17 = vector.broadcast %cst_13 : f32 to vector<8x1xf32>
    %18 = arith.divf %16, %17 : vector<8x1xf32>
    %19 = vector.broadcast %18 : vector<8x1xf32> to vector<8x128xf32>
    %20 = arith.subf %12, %19 : vector<8x128xf32>
    %21 = arith.mulf %20, %20 : vector<8x128xf32>
    %cst_14 = arith.constant dense<0.000000e+00> : vector<8xf32>
    %22 = vector.multi_reduction <add>, %21, %cst_14 [1] : vector<8x128xf32> to vector<8xf32>
    %23 = vector.shape_cast %22 : vector<8xf32> to vector<8x1xf32>
    %cst_15 = arith.constant 1.280000e+02 : f32
    %24 = vector.broadcast %cst_15 : f32 to vector<8x1xf32>
    %25 = arith.divf %23, %24 : vector<8x1xf32>
    %26 = vector.broadcast %18 : vector<8x1xf32> to vector<8x128xf32>
    %27 = arith.subf %12, %26 : vector<8x128xf32>
    %cst_16 = arith.constant 9.99999974E-6 : f32
    %28 = vector.broadcast %cst_16 : f32 to vector<8x1xf32>
    %29 = arith.addf %25, %28 : vector<8x1xf32>
    %30 = math.rsqrt %29 : vector<8x1xf32>
    %31 = vector.broadcast %30 : vector<8x1xf32> to vector<8x128xf32>
    %32 = arith.mulf %27, %31 : vector<8x128xf32>
    %33 = vector.broadcast %13 : vector<1x128xf32> to vector<8x128xf32>
    %34 = arith.mulf %32, %33 : vector<8x128xf32>
    %35 = vector.broadcast %14 : vector<1x128xf32> to vector<8x128xf32>
    %36 = arith.addf %34, %35 : vector<8x128xf32>
    %37 = arith.truncf %36 : vector<8x128xf32> to vector<8x128xbf16>
    %c0_17 = arith.constant 0 : index
    %c0_18 = arith.constant 0 : index
    %38 = vector.load %arg7[%c0_17, %c0_18] : memref<128x128xbf16, #tpu.memory_space<vmem>>, vector<128x128xbf16>
    %cst_19 = arith.constant dense<0.000000e+00> : vector<8x128xf32>
    %39 = tpu.matmul %37, %38, %cst_19 {dimension_numbers = #tpu.dot_dimension_numbers<[1], [0], [0], [1], [0, 0, 1, 1], [], []>} : vector<8x128xbf16>, vector<128x128xbf16>, vector<8x128xf32> -> vector<8x128xf32>
    %c3 = arith.constant 3 : index
    %c0_20 = arith.constant 0 : index
    %40 = vector.load %arg6[%c3, %c0_20] : memref<4x128xf32, #tpu.memory_space<vmem>>, vector<1x128xf32>
    %41 = vector.broadcast %40 : vector<1x128xf32> to vector<8x128xf32>
    %42 = arith.addf %39, %41 : vector<8x128xf32>
    %43 = arith.truncf %42 : vector<8x128xf32> to vector<8x128xbf16>
    %c0_21 = arith.constant 0 : index
    %c0_22 = arith.constant 0 : index
    %44 = vector.load %arg14[%c0_21, %c0_22] : memref<128x128xbf16, #tpu.memory_space<vmem>>, vector<128x128xbf16>
    %cst_23 = arith.constant dense<0.000000e+00> : vector<8x128xf32>
    %45 = tpu.matmul %43, %44, %cst_23 {dimension_numbers = #tpu.dot_dimension_numbers<[1], [0], [0], [1], [0, 0, 1, 1], [], []>} : vector<8x128xbf16>, vector<128x128xbf16>, vector<8x128xf32> -> vector<8x128xf32>
    %c0_24 = arith.constant 0 : index
    %c0_25 = arith.constant 0 : index
    %46 = vector.load %arg15[%c0_24, %c0_25] : memref<3x128xf32, #tpu.memory_space<vmem>>, vector<1x128xf32>
    %47 = vector.broadcast %46 : vector<1x128xf32> to vector<8x128xf32>
    %48 = arith.addf %45, %47 : vector<8x128xf32>
    %c1_26 = arith.constant 1 : index
    %c0_27 = arith.constant 0 : index
    %49 = vector.load %arg15[%c1_26, %c0_27] : memref<3x128xf32, #tpu.memory_space<vmem>>, vector<1x128xf32>
    %c2_28 = arith.constant 2 : index
    %c0_29 = arith.constant 0 : index
    %50 = vector.load %arg15[%c2_28, %c0_29] : memref<3x128xf32, #tpu.memory_space<vmem>>, vector<1x128xf32>
    %cst_30 = arith.constant dense<0.000000e+00> : vector<8xf32>
    %51 = vector.multi_reduction <add>, %48, %cst_30 [1] : vector<8x128xf32> to vector<8xf32>
    %52 = vector.shape_cast %51 : vector<8xf32> to vector<8x1xf32>
    %cst_31 = arith.constant 1.280000e+02 : f32
    %53 = vector.broadcast %cst_31 : f32 to vector<8x1xf32>
    %54 = arith.divf %52, %53 : vector<8x1xf32>
    %55 = vector.broadcast %54 : vector<8x1xf32> to vector<8x128xf32>
    %56 = arith.subf %48, %55 : vector<8x128xf32>
    %57 = arith.mulf %56, %56 : vector<8x128xf32>
    %cst_32 = arith.constant dense<0.000000e+00> : vector<8xf32>
    %58 = vector.multi_reduction <add>, %57, %cst_32 [1] : vector<8x128xf32> to vector<8xf32>
    %59 = vector.shape_cast %58 : vector<8xf32> to vector<8x1xf32>
    %cst_33 = arith.constant 1.280000e+02 : f32
    %60 = vector.broadcast %cst_33 : f32 to vector<8x1xf32>
    %61 = arith.divf %59, %60 : vector<8x1xf32>
    %62 = vector.broadcast %54 : vector<8x1xf32> to vector<8x128xf32>
    %63 = arith.subf %48, %62 : vector<8x128xf32>
    %cst_34 = arith.constant 9.99999974E-6 : f32
    %64 = vector.broadcast %cst_34 : f32 to vector<8x1xf32>
    %65 = arith.addf %61, %64 : vector<8x1xf32>
    %66 = math.rsqrt %65 : vector<8x1xf32>
    %67 = vector.broadcast %66 : vector<8x1xf32> to vector<8x128xf32>
    %68 = arith.mulf %63, %67 : vector<8x128xf32>
    %69 = vector.broadcast %49 : vector<1x128xf32> to vector<8x128xf32>
    %70 = arith.mulf %68, %69 : vector<8x128xf32>
    %71 = vector.broadcast %50 : vector<1x128xf32> to vector<8x128xf32>
    %72 = arith.addf %70, %71 : vector<8x128xf32>
    %cst_35 = arith.constant 1.000000e+00 : f32
    %73 = vector.broadcast %cst_35 : f32 to vector<8x128xf32>
    %74 = arith.addf %72, %73 : vector<8x128xf32>
    %cst_36 = arith.constant 5.000000e-01 : f32
    %75 = vector.broadcast %cst_36 : f32 to vector<8x128xf32>
    %76 = arith.mulf %74, %75 : vector<8x128xf32>
    %cst_37 = arith.constant 0.000000e+00 : f32
    %cst_38 = arith.constant 1.000000e+00 : f32
    %77 = vector.broadcast %cst_37 : f32 to vector<8x128xf32>
    %78 = arith.maximumf %77, %76 : vector<8x128xf32>
    %79 = vector.broadcast %cst_38 : f32 to vector<8x128xf32>
    %80 = arith.minimumf %79, %78 : vector<8x128xf32>
    %cst_39 = arith.constant 5.000000e-01 : f32
    %81 = vector.broadcast %cst_39 : f32 to vector<8x128xf32>
    %82 = arith.cmpf ogt, %80, %81 : vector<8x128xf32>
    %cst_40 = arith.constant 1.000000e+00 : f32
    %cst_41 = arith.constant 0.000000e+00 : f32
    %83 = vector.broadcast %cst_40 : f32 to vector<8x128xf32>
    %84 = vector.broadcast %cst_41 : f32 to vector<8x128xf32>
    %85 = arith.select %82, %83, %84 : vector<8x128xi1>, vector<8x128xf32>
    %cst_42 = arith.constant 2.000000e+00 : f32
    %86 = vector.broadcast %cst_42 : f32 to vector<8x128xf32>
    %87 = arith.mulf %86, %85 : vector<8x128xf32>
    %cst_43 = arith.constant 1.000000e+00 : f32
    %88 = vector.broadcast %cst_43 : f32 to vector<8x128xf32>
    %89 = arith.subf %87, %88 : vector<8x128xf32>
    %c0_44 = arith.constant 0 : index
    %c0_45 = arith.constant 0 : index
    %c0_46 = arith.constant 0 : index
    %90 = vector.load %arg27[%c0_44, %c0_45, %c0_46] : memref<1x8x128xf32, #tpu.memory_space<vmem>>, vector<1x8x128xf32>
    %91 = vector.shape_cast %90 : vector<1x8x128xf32> to vector<8x128xf32>
    %92 = vector.shape_cast %89 : vector<8x128xf32> to vector<1x8x128xf32>
    tpu.vector_store %arg27[%c0_44, %c0_45, %c0_46], %92 {strides = array<i32>} : memref<1x8x128xf32, #tpu.memory_space<vmem>>, vector<1x8x128xf32>,
    %93 = arith.truncf %89 : vector<8x128xf32> to vector<8x128xbf16>
    %c0_47 = arith.constant 0 : index
    %c0_48 = arith.constant 0 : index
    %94 = vector.load %arg16[%c0_47, %c0_48] : memref<128x128xbf16, #tpu.memory_space<vmem>>, vector<128x128xbf16>
    %cst_49 = arith.constant dense<0.000000e+00> : vector<8x128xf32>
    %95 = tpu.matmul %93, %94, %cst_49 {dimension_numbers = #tpu.dot_dimension_numbers<[1], [0], [0], [1], [0, 0, 1, 1], [], []>} : vector<8x128xbf16>, vector<128x128xbf16>, vector<8x128xf32> -> vector<8x128xf32>
    %c0_50 = arith.constant 0 : index
    %c0_51 = arith.constant 0 : index
    %c0_52 = arith.constant 0 : index
    %96 = vector.load %arg3[%c0_50, %c0_51, %c0_52] : memref<1x8x128xf32, #tpu.memory_space<vmem>>, vector<1x8x128xf32>
    %97 = vector.shape_cast %96 : vector<1x8x128xf32> to vector<8x128xf32>
    %98 = arith.addf %95, %97 : vector<8x128xf32>
    %c0_53 = arith.constant 0 : index
    %c0_54 = arith.constant 0 : index
    %99 = vector.load %arg17[%c0_53, %c0_54] : memref<3x128xf32, #tpu.memory_space<vmem>>, vector<1x128xf32>
    %c0_55 = arith.constant 0 : index
    %c0_56 = arith.constant 0 : index
    %c0_57 = arith.constant 0 : index
    %100 = vector.load %arg4[%c0_55, %c0_56, %c0_57] : memref<1x8x128xf32, #tpu.memory_space<vmem>>, vector<1x8x128xf32>
    %101 = vector.shape_cast %100 : vector<1x8x128xf32> to vector<8x128xf32>
    %102 = vector.broadcast %99 : vector<1x128xf32> to vector<8x128xf32>
    %103 = arith.addf %102, %101 : vector<8x128xf32>
    %104 = tpu.concatenate %98, %103 in 0 : vector<8x128xf32>, vector<8x128xf32> -> vector<16x128xf32>
    %c0_i32_58 = arith.constant 0 : i32
    %c2_i32_59 = arith.constant 2 : i32
    %105 = arith.addi %c0_i32_58, %c2_i32_59 : i32
    %c1_i32_60 = arith.constant 1 : i32
    %106 = scf.for %arg28 = %c0_i32_58 to %105 step %c1_i32_60 iter_args(%arg29 = %104) -> (vector<16x128xf32>)  : i32 {
      %141 = arith.index_cast %arg28 : i32 to index
      %c0_79 = arith.constant 0 : index
      %c0_80 = arith.constant 0 : index
      %142 = vector.load %arg20[%141, %c0_79, %c0_80] : memref<2x6x128xf32, #tpu.memory_space<vmem>>, vector<1x6x128xf32>
      %143 = vector.shape_cast %142 : vector<1x6x128xf32> to vector<6x128xf32>
      %144 = arith.index_cast %arg28 : i32 to index
      %c0_81 = arith.constant 0 : index
      %c0_82 = arith.constant 0 : index
      %145 = vector.load %arg21[%144, %c0_81, %c0_82] : memref<2x128x384xbf16, #tpu.memory_space<vmem>>, vector<1x128x384xbf16>
      %146 = vector.shape_cast %145 : vector<1x128x384xbf16> to vector<128x384xbf16>
      %147 = arith.index_cast %arg28 : i32 to index
      %c0_83 = arith.constant 0 : index
      %c0_84 = arith.constant 0 : index
      %148 = vector.load %arg22[%147, %c0_83, %c0_84] : memref<2x128x128xbf16, #tpu.memory_space<vmem>>, vector<1x128x128xbf16>
      %149 = vector.shape_cast %148 : vector<1x128x128xbf16> to vector<128x128xbf16>
      %150 = arith.index_cast %arg28 : i32 to index
      %c0_85 = arith.constant 0 : index
      %c0_86 = arith.constant 0 : index
      %151 = vector.load %arg23[%150, %c0_85, %c0_86] : memref<2x128x512xbf16, #tpu.memory_space<vmem>>, vector<1x128x512xbf16>
      %152 = vector.shape_cast %151 : vector<1x128x512xbf16> to vector<128x512xbf16>
      %153 = arith.index_cast %arg28 : i32 to index
      %c0_87 = arith.constant 0 : index
      %c0_88 = arith.constant 0 : index
      %154 = vector.load %arg24[%153, %c0_87, %c0_88] : memref<2x1x512xf32, #tpu.memory_space<vmem>>, vector<1x1x512xf32>
      %155 = vector.shape_cast %154 : vector<1x1x512xf32> to vector<1x512xf32>
      %156 = arith.index_cast %arg28 : i32 to index
      %c0_89 = arith.constant 0 : index
      %c0_90 = arith.constant 0 : index
      %157 = vector.load %arg25[%156, %c0_89, %c0_90] : memref<2x512x128xbf16, #tpu.memory_space<vmem>>, vector<1x512x128xbf16>
      %158 = vector.shape_cast %157 : vector<1x512x128xbf16> to vector<512x128xbf16>
      %159 = vector.extract_strided_slice %143 {offsets = [0, 0], sizes = [1, 128], strides = [1, 1]} : vector<6x128xf32> to vector<1x128xf32>
      %160 = vector.extract_strided_slice %143 {offsets = [1, 0], sizes = [1, 128], strides = [1, 1]} : vector<6x128xf32> to vector<1x128xf32>
      %161 = vector.extract_strided_slice %143 {offsets = [2, 0], sizes = [1, 128], strides = [1, 1]} : vector<6x128xf32> to vector<1x128xf32>
      %162 = vector.extract_strided_slice %143 {offsets = [3, 0], sizes = [1, 128], strides = [1, 1]} : vector<6x128xf32> to vector<1x128xf32>
      %163 = vector.extract_strided_slice %143 {offsets = [4, 0], sizes = [1, 128], strides = [1, 1]} : vector<6x128xf32> to vector<1x128xf32>
      %164 = vector.extract_strided_slice %143 {offsets = [5, 0], sizes = [1, 128], strides = [1, 1]} : vector<6x128xf32> to vector<1x128xf32>
      %cst_91 = arith.constant dense<0.000000e+00> : vector<16xf32>
      %165 = vector.multi_reduction <add>, %arg29, %cst_91 [1] : vector<16x128xf32> to vector<16xf32>
      %166 = vector.shape_cast %165 : vector<16xf32> to vector<16x1xf32>
      %cst_92 = arith.constant 1.280000e+02 : f32
      %167 = vector.broadcast %cst_92 : f32 to vector<16x1xf32>
      %168 = arith.divf %166, %167 : vector<16x1xf32>
      %169 = vector.broadcast %168 : vector<16x1xf32> to vector<16x128xf32>
      %170 = arith.subf %arg29, %169 : vector<16x128xf32>
      %171 = arith.mulf %170, %170 : vector<16x128xf32>
      %cst_93 = arith.constant dense<0.000000e+00> : vector<16xf32>
      %172 = vector.multi_reduction <add>, %171, %cst_93 [1] : vector<16x128xf32> to vector<16xf32>
      %173 = vector.shape_cast %172 : vector<16xf32> to vector<16x1xf32>
      %cst_94 = arith.constant 1.280000e+02 : f32
      %174 = vector.broadcast %cst_94 : f32 to vector<16x1xf32>
      %175 = arith.divf %173, %174 : vector<16x1xf32>
      %176 = vector.broadcast %168 : vector<16x1xf32> to vector<16x128xf32>
      %177 = arith.subf %arg29, %176 : vector<16x128xf32>
      %cst_95 = arith.constant 9.99999974E-6 : f32
      %178 = vector.broadcast %cst_95 : f32 to vector<16x1xf32>
      %179 = arith.addf %175, %178 : vector<16x1xf32>
      %180 = math.rsqrt %179 : vector<16x1xf32>
      %181 = vector.broadcast %180 : vector<16x1xf32> to vector<16x128xf32>
      %182 = arith.mulf %177, %181 : vector<16x128xf32>
      %183 = vector.broadcast %159 : vector<1x128xf32> to vector<16x128xf32>
      %184 = arith.mulf %182, %183 : vector<16x128xf32>
      %185 = vector.broadcast %160 : vector<1x128xf32> to vector<16x128xf32>
      %186 = arith.addf %184, %185 : vector<16x128xf32>
      %187 = arith.truncf %186 : vector<16x128xf32> to vector<16x128xbf16>
      %cst_96 = arith.constant dense<0.000000e+00> : vector<16x384xf32>
      %188 = tpu.matmul %187, %146, %cst_96 {dimension_numbers = #tpu.dot_dimension_numbers<[1], [0], [0], [1], [0, 0, 1, 1], [], []>} : vector<16x128xbf16>, vector<128x384xbf16>, vector<16x384xf32> -> vector<16x384xf32>
      %189 = arith.truncf %188 : vector<16x384xf32> to vector<16x384xbf16>
      %190 = vector.extract_strided_slice %189 {offsets = [0, 0], sizes = [16, 128], strides = [1, 1]} : vector<16x384xbf16> to vector<16x128xbf16>
      %191 = vector.extract_strided_slice %190 {offsets = [0, 0], sizes = [16, 64], strides = [1, 1]} : vector<16x128xbf16> to vector<16x64xbf16>
      %192 = vector.extract_strided_slice %190 {offsets = [0, 64], sizes = [16, 64], strides = [1, 1]} : vector<16x128xbf16> to vector<16x64xbf16>
      %193 = vector.shape_cast %191 : vector<16x64xbf16> to vector<1x16x64xbf16>
      %194 = vector.shape_cast %192 : vector<16x64xbf16> to vector<1x16x64xbf16>
      %195 = tpu.concatenate %193, %194 in 0 : vector<1x16x64xbf16>, vector<1x16x64xbf16> -> vector<2x16x64xbf16>
      %196 = vector.extract_strided_slice %189 {offsets = [0, 128], sizes = [16, 128], strides = [1, 1]} : vector<16x384xbf16> to vector<16x128xbf16>
      %197 = vector.extract_strided_slice %196 {offsets = [0, 0], sizes = [16, 64], strides = [1, 1]} : vector<16x128xbf16> to vector<16x64xbf16>
      %198 = vector.extract_strided_slice %196 {offsets = [0, 64], sizes = [16, 64], strides = [1, 1]} : vector<16x128xbf16> to vector<16x64xbf16>
      %199 = vector.shape_cast %197 : vector<16x64xbf16> to vector<1x16x64xbf16>
      %200 = vector.shape_cast %198 : vector<16x64xbf16> to vector<1x16x64xbf16>
      %201 = tpu.concatenate %199, %200 in 0 : vector<1x16x64xbf16>, vector<1x16x64xbf16> -> vector<2x16x64xbf16>
      %202 = vector.extract_strided_slice %189 {offsets = [0, 256], sizes = [16, 128], strides = [1, 1]} : vector<16x384xbf16> to vector<16x128xbf16>
      %203 = vector.extract_strided_slice %202 {offsets = [0, 0], sizes = [16, 64], strides = [1, 1]} : vector<16x128xbf16> to vector<16x64xbf16>
      %204 = vector.extract_strided_slice %202 {offsets = [0, 64], sizes = [16, 64], strides = [1, 1]} : vector<16x128xbf16> to vector<16x64xbf16>
      %205 = vector.shape_cast %203 : vector<16x64xbf16> to vector<1x16x64xbf16>
      %206 = vector.shape_cast %204 : vector<16x64xbf16> to vector<1x16x64xbf16>
      %207 = tpu.concatenate %205, %206 in 0 : vector<1x16x64xbf16>, vector<1x16x64xbf16> -> vector<2x16x64xbf16>
      "tpu.trace_start"() <{level = 10 : i32, message = "hqc,hkc->hqk"}> : () -> ()
      %cst_97 = arith.constant dense<0.000000e+00> : vector<2x16x16xf32>
      %208 = tpu.matmul %195, %201, %cst_97 {dimension_numbers = #tpu.dot_dimension_numbers<[2], [2], [1], [1], [0, 0, 0, 1, 1, 1], [0], [0]>} : vector<2x16x64xbf16>, vector<2x16x64xbf16>, vector<2x16x16xf32> -> vector<2x16x16xf32>
      "tpu.trace_stop"() : () -> ()
      %cst_98 = arith.constant dense<0xFF800000> : vector<2x16xf32>
      %209 = vector.multi_reduction <maximumf>, %208, %cst_98 [2] : vector<2x16x16xf32> to vector<2x16xf32>
      %210 = vector.shape_cast %209 : vector<2x16xf32> to vector<2x16x1xf32>
      %211 = vector.broadcast %210 : vector<2x16x1xf32> to vector<2x16x16xf32>
      %212 = arith.subf %208, %211 : vector<2x16x16xf32>
      %213 = math.exp %212 : vector<2x16x16xf32>
      %cst_99 = arith.constant dense<0.000000e+00> : vector<2x16xf32>
      %214 = vector.multi_reduction <add>, %213, %cst_99 [2] : vector<2x16x16xf32> to vector<2x16xf32>
      %215 = vector.shape_cast %214 : vector<2x16xf32> to vector<2x16x1xf32>
      %216 = tpu.reciprocal %215 {approx = true} : vector<2x16x1xf32> -> vector<2x16x1xf32>
      %217 = vector.broadcast %216 : vector<2x16x1xf32> to vector<2x16x16xf32>
      %218 = arith.mulf %213, %217 : vector<2x16x16xf32>
      %219 = arith.truncf %218 : vector<2x16x16xf32> to vector<2x16x16xbf16>
      "tpu.trace_start"() <{level = 10 : i32, message = "hqk,hkc->hqc"}> : () -> ()
      %cst_100 = arith.constant dense<0.000000e+00> : vector<2x16x64xf32>
      %220 = tpu.matmul %219, %207, %cst_100 {dimension_numbers = #tpu.dot_dimension_numbers<[2], [1], [1], [2], [0, 0, 0, 1, 1, 2], [0], [0]>} : vector<2x16x16xbf16>, vector<2x16x64xbf16>, vector<2x16x64xf32> -> vector<2x16x64xf32>
      "tpu.trace_stop"() : () -> ()
      %221 = vector.extract_strided_slice %220 {offsets = [0, 0, 0], sizes = [1, 16, 64], strides = [1, 1, 1]} : vector<2x16x64xf32> to vector<1x16x64xf32>
      %222 = vector.shape_cast %221 : vector<1x16x64xf32> to vector<16x64xf32>
      %223 = vector.extract_strided_slice %220 {offsets = [1, 0, 0], sizes = [1, 16, 64], strides = [1, 1, 1]} : vector<2x16x64xf32> to vector<1x16x64xf32>
      %224 = vector.shape_cast %223 : vector<1x16x64xf32> to vector<16x64xf32>
      %225 = tpu.concatenate %222, %224 in 1 : vector<16x64xf32>, vector<16x64xf32> -> vector<16x128xf32>
      %226 = arith.truncf %225 : vector<16x128xf32> to vector<16x128xbf16>
      %cst_101 = arith.constant dense<0.000000e+00> : vector<16x128xf32>
      %227 = tpu.matmul %226, %149, %cst_101 {dimension_numbers = #tpu.dot_dimension_numbers<[1], [0], [0], [1], [0, 0, 1, 1], [], []>} : vector<16x128xbf16>, vector<128x128xbf16>, vector<16x128xf32> -> vector<16x128xf32>
      %228 = arith.addf %arg29, %227 : vector<16x128xf32>
      %229 = vector.broadcast %161 : vector<1x128xf32> to vector<16x128xf32>
      %230 = arith.addf %228, %229 : vector<16x128xf32>
      %cst_102 = arith.constant dense<0.000000e+00> : vector<16xf32>
      %231 = vector.multi_reduction <add>, %230, %cst_102 [1] : vector<16x128xf32> to vector<16xf32>
      %232 = vector.shape_cast %231 : vector<16xf32> to vector<16x1xf32>
      %cst_103 = arith.constant 1.280000e+02 : f32
      %233 = vector.broadcast %cst_103 : f32 to vector<16x1xf32>
      %234 = arith.divf %232, %233 : vector<16x1xf32>
      %235 = vector.broadcast %234 : vector<16x1xf32> to vector<16x128xf32>
      %236 = arith.subf %230, %235 : vector<16x128xf32>
      %237 = arith.mulf %236, %236 : vector<16x128xf32>
      %cst_104 = arith.constant dense<0.000000e+00> : vector<16xf32>
      %238 = vector.multi_reduction <add>, %237, %cst_104 [1] : vector<16x128xf32> to vector<16xf32>
      %239 = vector.shape_cast %238 : vector<16xf32> to vector<16x1xf32>
      %cst_105 = arith.constant 1.280000e+02 : f32
      %240 = vector.broadcast %cst_105 : f32 to vector<16x1xf32>
      %241 = arith.divf %239, %240 : vector<16x1xf32>
      %242 = vector.broadcast %234 : vector<16x1xf32> to vector<16x128xf32>
      %243 = arith.subf %230, %242 : vector<16x128xf32>
      %cst_106 = arith.constant 9.99999974E-6 : f32
      %244 = vector.broadcast %cst_106 : f32 to vector<16x1xf32>
      %245 = arith.addf %241, %244 : vector<16x1xf32>
      %246 = math.rsqrt %245 : vector<16x1xf32>
      %247 = vector.broadcast %246 : vector<16x1xf32> to vector<16x128xf32>
      %248 = arith.mulf %243, %247 : vector<16x128xf32>
      %249 = vector.broadcast %162 : vector<1x128xf32> to vector<16x128xf32>
      %250 = arith.mulf %248, %249 : vector<16x128xf32>
      %251 = vector.broadcast %163 : vector<1x128xf32> to vector<16x128xf32>
      %252 = arith.addf %250, %251 : vector<16x128xf32>
      %253 = arith.truncf %252 : vector<16x128xf32> to vector<16x128xbf16>
      %cst_107 = arith.constant dense<0.000000e+00> : vector<16x512xf32>
      %254 = tpu.matmul %253, %152, %cst_107 {dimension_numbers = #tpu.dot_dimension_numbers<[1], [0], [0], [1], [0, 0, 1, 1], [], []>} : vector<16x128xbf16>, vector<128x512xbf16>, vector<16x512xf32> -> vector<16x512xf32>
      %255 = vector.broadcast %155 : vector<1x512xf32> to vector<16x512xf32>
      %256 = arith.addf %254, %255 : vector<16x512xf32>
      %cst_108 = arith.constant 5.000000e-01 : f32
      %257 = vector.broadcast %cst_108 : f32 to vector<16x512xf32>
      %258 = arith.mulf %257, %256 : vector<16x512xf32>
      %cst_109 = arith.constant 4.471500e-02 : f32
      %259 = vector.broadcast %cst_109 : f32 to vector<16x512xf32>
      %260 = arith.mulf %259, %256 : vector<16x512xf32>
      %261 = arith.mulf %260, %256 : vector<16x512xf32>
      %262 = arith.mulf %261, %256 : vector<16x512xf32>
      %263 = arith.addf %256, %262 : vector<16x512xf32>
      %cst_110 = arith.constant 0.797884583 : f32
      %264 = vector.broadcast %cst_110 : f32 to vector<16x512xf32>
      %265 = arith.mulf %264, %263 : vector<16x512xf32>
      %266 = math.tanh %265 : vector<16x512xf32>
      %cst_111 = arith.constant 1.000000e+00 : f32
      %267 = vector.broadcast %cst_111 : f32 to vector<16x512xf32>
      %268 = arith.addf %267, %266 : vector<16x512xf32>
      %269 = arith.mulf %258, %268 : vector<16x512xf32>
      %270 = arith.truncf %269 : vector<16x512xf32> to vector<16x512xbf16>
      %cst_112 = arith.constant dense<0.000000e+00> : vector<16x128xf32>
      %271 = tpu.matmul %270, %158, %cst_112 {dimension_numbers = #tpu.dot_dimension_numbers<[1], [0], [0], [1], [0, 0, 1, 1], [], []>} : vector<16x512xbf16>, vector<512x128xbf16>, vector<16x128xf32> -> vector<16x128xf32>
      %272 = vector.broadcast %164 : vector<1x128xf32> to vector<16x128xf32>
      %273 = arith.addf %271, %272 : vector<16x128xf32>
      %274 = arith.addf %230, %273 : vector<16x128xf32>
      scf.yield %274 : vector<16x128xf32>
    }
    %c2_i32_61 = arith.constant 2 : i32
    %107 = vector.extract_strided_slice %106 {offsets = [8, 0], sizes = [8, 128], strides = [1, 1]} : vector<16x128xf32> to vector<8x128xf32>
    %c1_62 = arith.constant 1 : index
    %c0_63 = arith.constant 0 : index
    %108 = vector.load %arg17[%c1_62, %c0_63] : memref<3x128xf32, #tpu.memory_space<vmem>>, vector<1x128xf32>
    %c2_64 = arith.constant 2 : index
    %c0_65 = arith.constant 0 : index
    %109 = vector.load %arg17[%c2_64, %c0_65] : memref<3x128xf32, #tpu.memory_space<vmem>>, vector<1x128xf32>
    %cst_66 = arith.constant dense<0.000000e+00> : vector<8xf32>
    %110 = vector.multi_reduction <add>, %107, %cst_66 [1] : vector<8x128xf32> to vector<8xf32>
    %111 = vector.shape_cast %110 : vector<8xf32> to vector<8x1xf32>
    %cst_67 = arith.constant 1.280000e+02 : f32
    %112 = vector.broadcast %cst_67 : f32 to vector<8x1xf32>
    %113 = arith.divf %111, %112 : vector<8x1xf32>
    %114 = vector.broadcast %113 : vector<8x1xf32> to vector<8x128xf32>
    %115 = arith.subf %107, %114 : vector<8x128xf32>
    %116 = arith.mulf %115, %115 : vector<8x128xf32>
    %cst_68 = arith.constant dense<0.000000e+00> : vector<8xf32>
    %117 = vector.multi_reduction <add>, %116, %cst_68 [1] : vector<8x128xf32> to vector<8xf32>
    %118 = vector.shape_cast %117 : vector<8xf32> to vector<8x1xf32>
    %cst_69 = arith.constant 1.280000e+02 : f32
    %119 = vector.broadcast %cst_69 : f32 to vector<8x1xf32>
    %120 = arith.divf %118, %119 : vector<8x1xf32>
    %121 = vector.broadcast %113 : vector<8x1xf32> to vector<8x128xf32>
    %122 = arith.subf %107, %121 : vector<8x128xf32>
    %cst_70 = arith.constant 9.99999974E-6 : f32
    %123 = vector.broadcast %cst_70 : f32 to vector<8x1xf32>
    %124 = arith.addf %120, %123 : vector<8x1xf32>
    %125 = math.rsqrt %124 : vector<8x1xf32>
    %126 = vector.broadcast %125 : vector<8x1xf32> to vector<8x128xf32>
    %127 = arith.mulf %122, %126 : vector<8x128xf32>
    %128 = vector.broadcast %108 : vector<1x128xf32> to vector<8x128xf32>
    %129 = arith.mulf %127, %128 : vector<8x128xf32>
    %130 = vector.broadcast %109 : vector<1x128xf32> to vector<8x128xf32>
    %131 = arith.addf %129, %130 : vector<8x128xf32>
    %132 = arith.truncf %131 : vector<8x128xf32> to vector<8x128xbf16>
    %c0_71 = arith.constant 0 : index
    %c0_72 = arith.constant 0 : index
    %133 = vector.load %arg18[%c0_71, %c0_72] : memref<128x128xbf16, #tpu.memory_space<vmem>>, vector<128x128xbf16>
    %cst_73 = arith.constant dense<0.000000e+00> : vector<8x128xf32>
    %134 = tpu.matmul %132, %133, %cst_73 {dimension_numbers = #tpu.dot_dimension_numbers<[1], [0], [0], [1], [0, 0, 1, 1], [], []>} : vector<8x128xbf16>, vector<128x128xbf16>, vector<8x128xf32> -> vector<8x128xf32>
    %c0_74 = arith.constant 0 : index
    %c0_75 = arith.constant 0 : index
    %135 = vector.load %arg19[%c0_74, %c0_75] : memref<1x128xf32, #tpu.memory_space<vmem>>, vector<1x128xf32>
    %136 = vector.broadcast %135 : vector<1x128xf32> to vector<8x128xf32>
    %137 = arith.addf %134, %136 : vector<8x128xf32>
    %c0_76 = arith.constant 0 : index
    %c0_77 = arith.constant 0 : index
    %c0_78 = arith.constant 0 : index
    %138 = vector.load %arg26[%c0_76, %c0_77, %c0_78] : memref<1x8x128xf32, #tpu.memory_space<vmem>>, vector<1x8x128xf32>
    %139 = vector.shape_cast %138 : vector<1x8x128xf32> to vector<8x128xf32>
    %140 = vector.shape_cast %137 : vector<8x128xf32> to vector<1x8x128xf32>
    tpu.vector_store %arg26[%c0_76, %c0_77, %c0_78], %140 {strides = array<i32>} : memref<1x8x128xf32, #tpu.memory_space<vmem>>, vector<1x8x128xf32>,
    return
  }
  func.func @transform_0(%arg0: i32) -> (i32, i32, i32) {
    %c0_i32 = arith.constant 0 : i32
    %c0_i32_0 = arith.constant 0 : i32
    %c0_i32_1 = arith.constant 0 : i32
    return %arg0, %c0_i32, %c0_i32_0 : i32, i32, i32
  }
  func.func @transform_1(%arg0: i32) -> (i32, i32, i32) {
    %c0_i32 = arith.constant 0 : i32
    %c0_i32_0 = arith.constant 0 : i32
    %c0_i32_1 = arith.constant 0 : i32
    return %arg0, %c0_i32, %c0_i32_0 : i32, i32, i32
  }
  func.func @transform_2(%arg0: i32) -> (i32, i32, i32) {
    %c0_i32 = arith.constant 0 : i32
    %c0_i32_0 = arith.constant 0 : i32
    %c0_i32_1 = arith.constant 0 : i32
    return %arg0, %c0_i32, %c0_i32_0 : i32, i32, i32
  }
  func.func @transform_3(%arg0: i32) -> (i32, i32, i32) {
    %c0_i32 = arith.constant 0 : i32
    %c0_i32_0 = arith.constant 0 : i32
    %c0_i32_1 = arith.constant 0 : i32
    return %arg0, %c0_i32, %c0_i32_0 : i32, i32, i32
  }
  func.func @transform_4(%arg0: i32) -> (i32, i32) {
    %c0_i32 = arith.constant 0 : i32
    %c0_i32_0 = arith.constant 0 : i32
    %c0_i32_1 = arith.constant 0 : i32
    return %c0_i32, %c0_i32_0 : i32, i32
  }
  func.func @transform_5(%arg0: i32) -> (i32, i32) {
    %c0_i32 = arith.constant 0 : i32
    %c0_i32_0 = arith.constant 0 : i32
    %c0_i32_1 = arith.constant 0 : i32
    return %c0_i32, %c0_i32_0 : i32, i32
  }
  func.func @transform_6(%arg0: i32) -> (i32, i32) {
    %c0_i32 = arith.constant 0 : i32
    %c0_i32_0 = arith.constant 0 : i32
    %c0_i32_1 = arith.constant 0 : i32
    return %c0_i32, %c0_i32_0 : i32, i32
  }
  func.func @transform_7(%arg0: i32) -> (i32, i32, i32) {
    %c0_i32 = arith.constant 0 : i32
    %c0_i32_0 = arith.constant 0 : i32
    %c0_i32_1 = arith.constant 0 : i32
    %c0_i32_2 = arith.constant 0 : i32
    return %c0_i32, %c0_i32_0, %c0_i32_1 : i32, i32, i32
  }
  func.func @transform_8(%arg0: i32) -> (i32, i32, i32) {
    %c0_i32 = arith.constant 0 : i32
    %c0_i32_0 = arith.constant 0 : i32
    %c0_i32_1 = arith.constant 0 : i32
    %c0_i32_2 = arith.constant 0 : i32
    return %c0_i32, %c0_i32_0, %c0_i32_1 : i32, i32, i32
  }
  func.func @transform_9(%arg0: i32) -> (i32, i32, i32) {
    %c0_i32 = arith.constant 0 : i32
    %c0_i32_0 = arith.constant 0 : i32
    %c0_i32_1 = arith.constant 0 : i32
    %c0_i32_2 = arith.constant 0 : i32
    return %c0_i32, %c0_i32_0, %c0_i32_1 : i32, i32, i32
  }
  func.func @transform_10(%arg0: i32) -> (i32, i32, i32) {
    %c0_i32 = arith.constant 0 : i32
    %c0_i32_0 = arith.constant 0 : i32
    %c0_i32_1 = arith.constant 0 : i32
    %c0_i32_2 = arith.constant 0 : i32
    return %c0_i32, %c0_i32_0, %c0_i32_1 : i32, i32, i32
  }
  func.func @transform_11(%arg0: i32) -> (i32, i32, i32) {
    %c0_i32 = arith.constant 0 : i32
    %c0_i32_0 = arith.constant 0 : i32
    %c0_i32_1 = arith.constant 0 : i32
    %c0_i32_2 = arith.constant 0 : i32
    return %c0_i32, %c0_i32_0, %c0_i32_1 : i32, i32, i32
  }
  func.func @transform_12(%arg0: i32) -> (i32, i32, i32) {
    %c0_i32 = arith.constant 0 : i32
    %c0_i32_0 = arith.constant 0 : i32
    %c0_i32_1 = arith.constant 0 : i32
    %c0_i32_2 = arith.constant 0 : i32
    return %c0_i32, %c0_i32_0, %c0_i32_1 : i32, i32, i32
  }
  func.func @transform_13(%arg0: i32) -> (i32, i32) {
    %c0_i32 = arith.constant 0 : i32
    %c0_i32_0 = arith.constant 0 : i32
    %c0_i32_1 = arith.constant 0 : i32
    return %c0_i32, %c0_i32_0 : i32, i32
  }
  func.func @transform_14(%arg0: i32) -> (i32, i32) {
    %c0_i32 = arith.constant 0 : i32
    %c0_i32_0 = arith.constant 0 : i32
    %c0_i32_1 = arith.constant 0 : i32
    return %c0_i32, %c0_i32_0 : i32, i32
  }
  func.func @transform_15(%arg0: i32) -> (i32, i32) {
    %c0_i32 = arith.constant 0 : i32
    %c0_i32_0 = arith.constant 0 : i32
    %c0_i32_1 = arith.constant 0 : i32
    return %c0_i32, %c0_i32_0 : i32, i32
  }
  func.func @transform_16(%arg0: i32) -> (i32, i32) {
    %c0_i32 = arith.constant 0 : i32
    %c0_i32_0 = arith.constant 0 : i32
    %c0_i32_1 = arith.constant 0 : i32
    return %c0_i32, %c0_i32_0 : i32, i32
  }
  func.func @transform_17(%arg0: i32) -> (i32, i32) {
    %c0_i32 = arith.constant 0 : i32
    %c0_i32_0 = arith.constant 0 : i32
    %c0_i32_1 = arith.constant 0 : i32
    return %c0_i32, %c0_i32_0 : i32, i32
  }
  func.func @transform_18(%arg0: i32) -> (i32, i32) {
    %c0_i32 = arith.constant 0 : i32
    %c0_i32_0 = arith.constant 0 : i32
    %c0_i32_1 = arith.constant 0 : i32
    return %c0_i32, %c0_i32_0 : i32, i32
  }
  func.func @transform_19(%arg0: i32) -> (i32, i32, i32) {
    %c0_i32 = arith.constant 0 : i32
    %c0_i32_0 = arith.constant 0 : i32
    %c0_i32_1 = arith.constant 0 : i32
    %c0_i32_2 = arith.constant 0 : i32
    return %c0_i32, %c0_i32_0, %c0_i32_1 : i32, i32, i32
  }
  func.func @transform_20(%arg0: i32) -> (i32, i32, i32) {
    %c0_i32 = arith.constant 0 : i32
    %c0_i32_0 = arith.constant 0 : i32
    %c0_i32_1 = arith.constant 0 : i32
    %c0_i32_2 = arith.constant 0 : i32
    return %c0_i32, %c0_i32_0, %c0_i32_1 : i32, i32, i32
  }
  func.func @transform_21(%arg0: i32) -> (i32, i32, i32) {
    %c0_i32 = arith.constant 0 : i32
    %c0_i32_0 = arith.constant 0 : i32
    %c0_i32_1 = arith.constant 0 : i32
    %c0_i32_2 = arith.constant 0 : i32
    return %c0_i32, %c0_i32_0, %c0_i32_1 : i32, i32, i32
  }
  func.func @transform_22(%arg0: i32) -> (i32, i32, i32) {
    %c0_i32 = arith.constant 0 : i32
    %c0_i32_0 = arith.constant 0 : i32
    %c0_i32_1 = arith.constant 0 : i32
    %c0_i32_2 = arith.constant 0 : i32
    return %c0_i32, %c0_i32_0, %c0_i32_1 : i32, i32, i32
  }
  func.func @transform_23(%arg0: i32) -> (i32, i32, i32) {
    %c0_i32 = arith.constant 0 : i32
    %c0_i32_0 = arith.constant 0 : i32
    %c0_i32_1 = arith.constant 0 : i32
    %c0_i32_2 = arith.constant 0 : i32
    return %c0_i32, %c0_i32_0, %c0_i32_1 : i32, i32, i32
  }
  func.func @transform_24(%arg0: i32) -> (i32, i32, i32) {
    %c0_i32 = arith.constant 0 : i32
    %c0_i32_0 = arith.constant 0 : i32
    %c0_i32_1 = arith.constant 0 : i32
    %c0_i32_2 = arith.constant 0 : i32
    return %c0_i32, %c0_i32_0, %c0_i32_1 : i32, i32, i32
  }
  func.func @transform_25(%arg0: i32) -> (i32, i32, i32) {
    %c0_i32 = arith.constant 0 : i32
    %c0_i32_0 = arith.constant 0 : i32
    %c0_i32_1 = arith.constant 0 : i32
    return %arg0, %c0_i32, %c0_i32_0 : i32, i32, i32
  }
  func.func @transform_26(%arg0: i32) -> (i32, i32, i32) {
    %c0_i32 = arith.constant 0 : i32
    %c0_i32_0 = arith.constant 0 : i32
    %c0_i32_1 = arith.constant 0 : i32
    return %arg0, %c0_i32, %c0_i32_0 : i32, i32, i32
  }
}

</mosaic_0001>

<bundles_post_ra>
// kernel: tpu_custom_call.1
= control target key start
LH: loop header
LB: loop body
LE: loop exit
PB: predicated region body
PF: predicated region fallthrough
CT: control target
= control target key end

     0   :  { %s8268_s0 = inlined_call_operand.hbm [shape: f32[2,8,128], index: 0, kind: input, shape index: {}]   ;;  %s8269_s1 = inlined_call_operand.hbm [shape: f32[2,8,128], index: 1, kind: input, shape index: {}]   ;;  %s8270_s2 = inlined_call_operand.hbm [shape: f32[2,8,128], index: 2, kind: input, shape index: {}]   ;;  %s8271_s3 = inlined_call_operand.hbm [shape: f32[2,8,128], index: 3, kind: input, shape index: {}]   ;;  %s8272_s4 = inlined_call_operand.hbm [shape: bf16[128,128], index: 4, kind: input, shape index: {}]   ;;  %s8273_s5 = inlined_call_operand.hbm [shape: f32[4,128], index: 5, kind: input, shape index: {}]   ;;  %s8274_s6 = inlined_call_operand.vmem [shape: bf16[128,128], index: 6, kind: input, shape index: {}]   ;;  %s8275_s7 = inlined_call_operand.vmem [shape: f32[2,6,128], index: 7, kind: input, shape index: {}]   ;;  %s8276_s8 = inlined_call_operand.hbm [shape: bf16[2,128,384], index: 8, kind: input, shape index: {}]   ;;  %s8277_s9 = inlined_call_operand.hbm [shape: bf16[2,128,128], index: 9, kind: input, shape index: {}]   ;;  %s8278_s10 = inlined_call_operand.hbm [shape: bf16[2,128,512], index: 10, kind: input, shape index: {}]   ;;  %s8279_s11 = inlined_call_operand.hbm [shape: f32[2,1,512], index: 11, kind: input, shape index: {}]   ;;  %s8280_s12 = inlined_call_operand.hbm [shape: bf16[2,512,128], index: 12, kind: input, shape index: {}]   ;;  %s8281_s13 = inlined_call_operand.hbm [shape: bf16[128,128], index: 13, kind: input, shape index: {}]   ;;  %s8282_s14 = inlined_call_operand.hbm [shape: f32[3,128], index: 14, kind: input, shape index: {}]   ;;  %s8283_s15 = inlined_call_operand.hbm [shape: bf16[128,128], index: 15, kind: input, shape index: {}]   ;;  %s8284_s16 = inlined_call_operand.hbm [shape: f32[3,128], index: 16, kind: input, shape index: {}]   ;;  %s8285_s17 = inlined_call_operand.hbm [shape: bf16[128,128], index: 17, kind: input, shape index: {}]   ;;  %s8286_s18 = inlined_call_operand.vmem [shape: f32[1,128], index: 18, kind: input, shape index: {}]   ;;  %s8287_s19 = inlined_call_operand.vmem [shape: f32[2,6,128], index: 19, kind: input, shape index: {}]   ;;  %s8288_s20 = inlined_call_operand.hbm [shape: bf16[2,128,384], index: 20, kind: input, shape index: {}]   ;;  %s8289_s21 = inlined_call_operand.hbm [shape: bf16[2,128,128], index: 21, kind: input, shape index: {}]   ;;  %s8290_s22 = inlined_call_operand.hbm [shape: bf16[2,128,512], index: 22, kind: input, shape index: {}]   ;;  %s8291_s23 = inlined_call_operand.vmem [shape: f32[2,1,512], index: 23, kind: input, shape index: {}]   ;;  %s8292_s24 = inlined_call_operand.hbm [shape: bf16[2,512,128], index: 24, kind: input, shape index: {}]   ;;  %s8293_s25 = inlined_call_operand.hbm [shape: f32[2,8,128], index: 25, kind: output, shape index: {0}]   ;;  %s8294_s26 = inlined_call_operand.hbm [shape: f32[2,8,128], index: 26, kind: output, shape index: {1}]  }
   0x1   :  { %8335 = sst [smem:[#allocation57_spill]] %s8268_s0 }
   0x2   :  { %8336 = sst [smem:[#allocation58_spill]] %s8269_s1 }
   0x3   :  { %8337 = sst [smem:[#allocation59_spill]] %s8270_s2 }
   0x4   :  { %8338 = sst [smem:[#allocation60_spill]] %s8271_s3 }
   0x5   :  { %8339 = sst [smem:[#allocation61_spill]] %s8272_s4 }
   0x6   :  { %8340 = sst [smem:[#allocation62_spill]] %s8273_s5 }
   0x7   :  { %8341 = sst [smem:[#allocation63_spill]] %s8274_s6 }
   0x8   :  { %8342 = sst [smem:[#allocation64_spill]] %s8275_s7 }
   0x9   :  { %8343 = sst [smem:[#allocation65_spill]] %s8276_s8 }
   0xa   :  { %8344 = sst [smem:[#allocation66_spill]] %s8277_s9 }
   0xb   :  { %8345 = sst [smem:[#allocation67_spill]] %s8278_s10 }
   0xc   :  { %8346 = sst [smem:[#allocation68_spill]] %s8279_s11 }
   0xd   :  { %8347 = sst [smem:[#allocation69_spill]] %s8280_s12 }
   0xe   :  { %8348 = sst [smem:[#allocation70_spill]] %s8281_s13 }
   0xf   :  { %8349 = sst [smem:[#allocation71_spill]] %s8282_s14 }
  0x10   :  { %8350 = sst [smem:[#allocation72_spill]] %s8283_s15 }
  0x11   :  { %8351 = sst [smem:[#allocation73_spill]] %s8285_s17 }
  0x12   :  { %8352 = sst [smem:[#allocation74_spill]] %s8286_s18 }
  0x13   :  { %8353 = sst [smem:[#allocation75_spill]] %s8287_s19 }
  0x14   :  { %8354 = sst [smem:[#allocation76_spill]] %s8289_s21 }
  0x15   :  { %8355 = sst [smem:[#allocation77_spill]] %s8291_s23 }
  0x16   :  { %8356 = sst [smem:[#allocation78_spill]] %s8293_s25 }
  0x17   :  { %8357 = sst [smem:[#allocation79_spill]] %s8294_s26 }
  0x18   :  { %32 = vsyncpa [#allocation3], 0 }
  0x19   :  { %34 = vsyncpa [#allocation3 + $0x1], 0 }
  0x1a   :  { %35 = vsyncpa [#allocation6], 0 }
  0x1b   :  { %37 = vsyncpa [#allocation6 + $0x1], 0 }
  0x1c   :  { %38 = vsyncpa [#allocation9], 0 }
  0x1d   :  { %40 = vsyncpa [#allocation9 + $0x1], 0 }
  0x1e   :  { %41 = vsyncpa [#allocation12], 0 }
  0x1f   :  { %42 = vsyncpa [#allocation15], 0 }
  0x20   :  { %43 = vsyncpa [#allocation18], 0 }
  0x21   :  { %44 = vsyncpa [#allocation21], 0 }
  0x22   :  { %45 = vsyncpa [#allocation24], 0 }
  0x23   :  { %46 = vsyncpa [#allocation27], 0 }
  0x24   :  { %47 = vsyncpa [#allocation30], 0 }
  0x25   :  { %48 = vsyncpa [#allocation33], 0 }
  0x26   :  { %49 = vsyncpa [#allocation4], 0 }
  0x27   :  { %51 = vsyncpa [#allocation4 + $0x1], 0 }
  0x28   :  { %52 = vsyncpa [#allocation36], 0 }
  0x29   :  { %54 = vsyncpa [#allocation36 + $0x1], 0  ;;  %s7197_s27 = smov 0   ;;  %s7199_s3 = smov 0  }
  0x2a   :  { %s7201_s7 = smov 0   ;;  %s7203_s28 = smov 0  }
  0x2b LB: > { %8358 = sst [smem:[#allocation51_spill]] %s6990_s27  ;;  %s7024_s8 = smov [#allocation10]   ;;  %s7002_s28 = sphi %s7203_s28, %s8437_s28   ;;  %s6998_s7 = sphi %s7201_s7, %s8441_s7   ;;  %s6994_s3 = sphi %s7199_s3, %s8440_s3   ;;  %s6990_s27 = sphi %s7197_s27, %s8439_s27  }
  0x2c   : > { %s674_s4 = sshll.u32 %s7024_s8, 4  ;;  %s7218_s29 = sadd.s32 4294967295, %s7002_s28   ;;  %s675_s4 = int_to_ptr.vmem [resolvable:$true] %s674_s4 }
  0x2d   : > { %8359 = sst [smem:[#allocation52_spill]] %s7218_s29  ;;  %p4937_p0 = scmp.ge.s32.totalorder %s7002_s28, 1 }
  0x2e   : > { %p8311_p1 = scmp.eq.s32.totalorder %s7218_s29, 0  ;;  %p662_p2 = scmp.lt.s32.totalorder %s7002_s28, 3 }
  0x2f   : > { %s7025_s9 = smov [#allocation11]   ;;  %s7026_s5 = smov [#allocation14]  }
  0x30   : > { %p7223_p3 = pnand %p4937_p0, %p662_p2  ;;  %s688_s30 = sshll.u32 %s7025_s9, 4  ;;  %s689_s30 = int_to_ptr.vmem [resolvable:$true] %s688_s30 }
  0x31   : > { %s717_s10 = sshll.u32 %s7026_s5, 4  ;;  %s6327_s1 = scalar_lea.vmem %s675_s4, 1024  ;;  %s7236_s10 = int_to_ptr.vmem [resolvable:$true] %s717_s10 }
  0x32   : > { %s8360_s0 = scalar_select %p7223_p3, 1, 0 }
  0x33   : > { %p5757_p5 = pneg %p7223_p3  ;;  %p6328_p8 = scmp.ne.s32.totalorder %s675_s4, %s6327_s1 }
  0x34   : > { %p6335_p11 = scmp.lt.s32.totalorder %s675_s4, %s675_s4  ;;  %p6336_p12 = scmp.lt.s32.totalorder %s6327_s1, %s6327_s1 }
  0x35   : > { %p7232_p6 = pnand %p5757_p5, %p8311_p1 }
  0x36   : > { %p6337_p13 = por %p6336_p12, %p6335_p11 }
  0x37   : > { %s8361_s2 = scalar_select %p7232_p6, 1, 0 }
  0x38   : > { %p7240_p7 = pneg %p7232_p6 }
  0x3a   : > { %s8362_s6 = scalar_select %p7240_p7, 1, 0 }
  0x3b   : > { %p6330_p9 = pnand %p6328_p8, %p7240_p7 }
  0x3d   : > { %p6331_p10 = pneg %p6330_p9 }
  0x3f   : > { %p6338_p0 = pnand %p6337_p13, %p6331_p10 }
  0x41   : > { %6341 = shalt.err (!%p6338_p0)
}
  0x42   : > { %s8303_s8 = smov 64   ;;  %s8305_s9 = smov 4  }
  0x43   : > { %s8363_s18 = sld [smem:[#allocation61_spill]]  ;;  %s6353_s26 = scalar_lea.vmem %s689_s30, 64 }
  0x44   : > { %p6354_p2 = scmp.ne.s32.totalorder %s689_s30, %s6353_s26  ;;  %p6361_p9 = scmp.lt.s32.totalorder %s689_s30, %s689_s30 }
  0x45   : > { %p6362_p10 = scmp.lt.s32.totalorder %s6353_s26, %s6353_s26 }
  0x46   : > { %p6356_p5 = pnand %p6354_p2, %p7240_p7 }
  0x47   : > { %p6363_p11 = por %p6362_p10, %p6361_p9 }
  0x48   : > { %p6357_p8 = pneg %p6356_p5 }
  0x49   : > { %5760 = dma.hbm_to_vmem [thread:$0]  (!%p7232_p6), %s8363_s18, 1024, %s675_s4, [#allocation9], %s8303_s8, %s8303_s8, %s8305_s9  }
  0x4a   : > { %p6364_p12 = pnand %p6363_p11, %p6357_p8 }
  0x4c   : > { %6367 = shalt.err (!%p6364_p12)
}
  0x4d   : > { %s8364_s19 = sld [smem:[#allocation62_spill]]  ;;  %s6379_s18 = scalar_lea.vmem %s7236_s10, 2048 }
  0x4e   : > { %p6380_p13 = scmp.ne.s32.totalorder %s7236_s10, %s6379_s18  ;;  %p6387_p5 = scmp.lt.s32.totalorder %s7236_s10, %s7236_s10 }
  0x4f   : > { %p6388_p9 = scmp.lt.s32.totalorder %s6379_s18, %s6379_s18 }
  0x50   : > { %p6382_p0 = pnand %p6380_p13, %p7240_p7 }
  0x51   : > { %p6389_p8 = por %p6388_p9, %p6387_p5 }
  0x52   : > { %p6383_p2 = pneg %p6382_p0 }
  0x53   : > { %5763 = dma.hbm_to_vmem [thread:$0]  (!%p7232_p6), %s8364_s19, 64, %s689_s30, [#allocation12]  }
  0x54   : > { %p6390_p10 = pnand %p6389_p8, %p6383_p2 }
  0x56   : > { %6393 = shalt.err (!%p6390_p10)
}
  0x57   : > { %s8365_s19 = sld [smem:[#allocation66_spill]]  ;;  %s7029_s26 = smov [#allocation17]  }
  0x58   : > { %s743_s4 = sshll.u32 %s7029_s26, 4  ;;  %s7030_s30 = smov [#allocation20]   ;;  %s744_s4 = int_to_ptr.vmem [resolvable:$true] %s743_s4 }
  0x59   : > { %s769_s5 = sshll.u32 %s7030_s30, 4  ;;  %s6405_s1 = scalar_lea.vmem %s744_s4, 128  ;;  %s770_s5 = int_to_ptr.vmem [resolvable:$true] %s769_s5 }
  0x5a   : > { %p6406_p11 = scmp.ne.s32.totalorder %s744_s4, %s6405_s1  ;;  %p6413_p0 = scmp.lt.s32.totalorder %s744_s4, %s744_s4 }
  0x5b   : > { %p6414_p2 = scmp.lt.s32.totalorder %s6405_s1, %s6405_s1 }
  0x5c   : > { %p6408_p12 = pnand %p6406_p11, %p7240_p7 }
  0x5d   : > { %5769 = dma.hbm_to_vmem [thread:$0]  (!%p7232_p6), %s8365_s19, 2048, %s7236_s10, [#allocation15], %s8303_s8, %s8303_s8, %s8305_s9  }
  0x5e   : > { %p6409_p13 = pneg %p6408_p12  ;;  %p6415_p5 = por %p6414_p2, %p6413_p0 }
  0x60   : > { %p6416_p9 = pnand %p6415_p5, %p6409_p13 }
  0x62   : > { %6419 = shalt.err (!%p6416_p9)
}
  0x63   : > { %s8366_s11 = sld [smem:[#allocation68_spill]]  ;;  %s6431_s23 = scalar_lea.vmem %s770_s5, 1024 }
  0x64   : > { %p6432_p8 = scmp.ne.s32.totalorder %s770_s5, %s6431_s23  ;;  %p6439_p12 = scmp.lt.s32.totalorder %s770_s5, %s770_s5 }
  0x65   : > { %p6440_p0 = scmp.lt.s32.totalorder %s6431_s23, %s6431_s23 }
  0x66   : > { %p6434_p10 = pnand %p6432_p8, %p7240_p7 }
  0x67   : > { %p6441_p13 = por %p6440_p0, %p6439_p12 }
  0x68   : > { %p6435_p11 = pneg %p6434_p10 }
  0x69   : > { %5775 = dma.hbm_to_vmem [thread:$0]  (!%p7232_p6), %s8366_s11, 128, %s744_s4, [#allocation18], %s8303_s8, %s8303_s8, %s8305_s9  }
  0x6a   : > { %p6442_p2 = pnand %p6441_p13, %p6435_p11 }
  0x6c   : > { %6445 = shalt.err (!%p6442_p2)
}
  0x6d   : > { %s8367_s13 = sld [smem:[#allocation70_spill]]  ;;  %s7031_s26 = smov [#allocation23]  }
  0x6e   : > { %s793_s4 = sshll.u32 %s7031_s26, 4  ;;  %s7032_s30 = smov [#allocation26]   ;;  %s794_s4 = int_to_ptr.vmem [resolvable:$true] %s793_s4 }
  0x6f   : > { %s817_s1 = sshll.u32 %s7032_s30, 4  ;;  %s6457_s10 = scalar_lea.vmem %s794_s4, 1024  ;;  %s818_s1 = int_to_ptr.vmem [resolvable:$true] %s817_s1 }
  0x70   : > { %p6458_p5 = scmp.ne.s32.totalorder %s794_s4, %s6457_s10  ;;  %p6465_p10 = scmp.lt.s32.totalorder %s794_s4, %s794_s4 }
  0x71   : > { %p6466_p11 = scmp.lt.s32.totalorder %s6457_s10, %s6457_s10 }
  0x72   : > { %p6460_p9 = pnand %p6458_p5, %p7240_p7 }
  0x73   : > { %5781 = dma.hbm_to_vmem [thread:$0]  (!%p7232_p6), %s8367_s13, 1024, %s770_s5, [#allocation21], %s8303_s8, %s8303_s8, %s8305_s9  }
  0x74   : > { %p6461_p8 = pneg %p6460_p9  ;;  %p6467_p12 = por %p6466_p11, %p6465_p10 }
  0x76   : > { %p6468_p0 = pnand %p6467_p12, %p6461_p8 }
  0x78   : > { %6471 = shalt.err (!%p6468_p0)
}
  0x79   : > { %s8368_s15 = sld [smem:[#allocation72_spill]]  ;;  %s6483_s23 = scalar_lea.vmem %s818_s1, 1024 }
  0x7a   : > { %p6484_p13 = scmp.ne.s32.totalorder %s818_s1, %s6483_s23  ;;  %p6491_p9 = scmp.lt.s32.totalorder %s818_s1, %s818_s1 }
  0x7b   : > { %p6492_p10 = scmp.lt.s32.totalorder %s6483_s23, %s6483_s23 }
  0x7c   : > { %p6486_p2 = pnand %p6484_p13, %p7240_p7 }
  0x7d   : > { %p6493_p8 = por %p6492_p10, %p6491_p9 }
  0x7e   : > { %p6487_p5 = pneg %p6486_p2 }
  0x7f   : > { %5787 = dma.hbm_to_vmem [thread:$0]  (!%p7232_p6), %s8368_s15, 1024, %s794_s4, [#allocation24], %s8303_s8, %s8303_s8, %s8305_s9  }
  0x80   : > { %p6494_p11 = pnand %p6493_p8, %p6487_p5 }
  0x82   : > { %6497 = shalt.err (!%p6494_p11)
}
  0x83   : > { %s8369_s17 = sld [smem:[#allocation73_spill]]  ;;  %s7033_s26 = smov [#allocation29]  }
  0x84   : > { %s849_s4 = sshll.u32 %s7033_s26, 4  ;;  %s850_s4 = int_to_ptr.vmem [resolvable:$true] %s849_s4 }
  0x85   : > { %s6509_s30 = scalar_lea.vmem %s850_s4, 2048  ;;  %p6517_p2 = scmp.lt.s32.totalorder %s850_s4, %s850_s4 }
  0x86   : > { %p6510_p12 = scmp.ne.s32.totalorder %s850_s4, %s6509_s30  ;;  %p6518_p5 = scmp.lt.s32.totalorder %s6509_s30, %s6509_s30 }
  0x88   : > { %p6512_p0 = pnand %p6510_p12, %p7240_p7  ;;  %p6519_p9 = por %p6518_p5, %p6517_p2 }
  0x89   : > { %5793 = dma.hbm_to_vmem [thread:$0]  (!%p7232_p6), %s8369_s17, 1024, %s818_s1, [#allocation27], %s8303_s8, %s8303_s8, %s8305_s9  }
  0x8a   : > { %p6513_p13 = pneg %p6512_p0 }
  0x8c   : > { %p6520_p10 = pnand %p6519_p9, %p6513_p13 }
  0x8e   : > { %6523 = shalt.err (!%p6520_p10)
}
  0x8f   : > { %s8370_s21 = sld [smem:[#allocation76_spill]]  ;;  %s4936_s5 = sadd.s32 4294967294, %s7002_s28  }
  0x90   : > { %s7328_s18 = sadd.s32 1, %s7002_s28   ;;  %s67_s25 = sadd.s32 1, %s6998_s7 }
  0x91   : > { %8371 = sst [smem:[#allocation53_spill]] %s7328_s18  ;;  %s64_s23 = ssub.s32 %s7002_s28, %s7328_s18 }
  0x92   : > { %p65_p8 = scmp.eq.s32.totalorder %s64_s23, 0  ;;  %p74_p11 = scmp.ne.s32.totalorder %s6998_s7, %s6994_s3 }
  0x93   : > { %p75_p12 = scmp.eq.s32.totalorder %s7002_s28, 0  ;;  %p80_p0 = scmp.ne.s32.totalorder %s6994_s3, %s6990_s27 }
  0x94   : > { %s7339_s19 = scalar_select %p65_p8, %s6998_s7, %s67_s25  }
  0x95   : > { %5799 = dma.hbm_to_vmem [thread:$0]  (!%p7232_p6), %s8370_s21, 2048, %s850_s4, [#allocation30], %s8303_s8, %s8303_s8, %s8305_s9  }
  0x96   : > { %8372 = sst [smem:[#allocation54_spill]] %s7339_s19  ;;  %p76_p13 = por %p75_p12, %p74_p11 }
  0x97   : > { %p7343_p2 = por %p8311_p1, %p80_p0  ;;  %p623_p5 = scmp.eq.s32.totalorder %s7218_s29, 1 }
  0x98   : > { %p629_p9 = scmp.eq.s32.totalorder %s4936_s5, 1  ;;  %p5842_p10 = scmp.lt.s32.totalorder %s7002_s28, 2 }
  0x99   : > { %s8373_s26 = scalar_select %p7343_p2, 1, 0 }
  0x9a   : > { %s8307_s4 = sand.u32 1, %s6998_s7   ;;  %p7350_p4 = por %p623_p5, %p74_p11 }
  0x9b   : > { %p7354_p3 = por %p629_p9, %p80_p0  ;;  %s7360_s1 = sshll.u32 %s8307_s4, 3 }
  0x9c   : > { %s8374_s30 = scalar_select %p7350_p4, 1, 0 }
  0x9d   : > { %s8376_s10 = scalar_select %p7354_p3, 1, 0 }
  0x9e   : > { %8375 = sst [smem:[#allocation55_spill]] %s8374_s30  ;;  %s7363_s23 = sshll.u32 %s7002_s28, 7 }
  0x9f   : > { %8377 = sst [smem:[#allocation56_spill]] %s8376_s10  ;;  %p7365_p8 = pnand %p5842_p10, %p76_p13 }
  0xa0   : > { %s8312_s5 = sand.u32 1, %s7002_s28   ;;  %s8379_s11 = sld [smem:[#allocation58_spill]] }
  0xa1   : > { %s8378_s25 = scalar_select %p7365_p8, 1, 0 }
  0xa2   : > { %s914_s4 = scalar_lea.vmem [#allocation5], %s7360_s1  ;;  %s7379_s17 = scalar_lea.sflag [#allocation6], %s8312_s5 }
  0xa3   : > { %s921_s15 = sshll.u32 %s914_s4, 4  ;;  %p7385_p12 = pneg %p7365_p8  ;;  %s922_s15 = int_to_ptr.vmem [resolvable:$true] %s921_s15 }
  0xa5   : > { %s8380_s19 = scalar_select %p7385_p12, 1, 0 }
  0xa6   : > { %s7374_s13 = scalar_lea.hbm %s8379_s11, %s7363_s23  ;;  %s6529_s18 = scalar_lea.hbm %s8379_s11, 256 }
  0xa7   : > { %s6524_s21 = scalar_lea.hbm %s7374_s13, 128  ;;  %p6530_p5 = scmp.lt.s32.totalorder %s7374_s13, %s8379_s11 }
  0xa8   : > { %p6525_p11 = scmp.ne.s32.totalorder %s7374_s13, %s6524_s21  ;;  %p6531_p9 = scmp.lt.s32.totalorder %s6529_s18, %s6524_s21 }
  0xaa   : > { %p6527_p0 = pnand %p7385_p12, %p6525_p11  ;;  %p6532_p10 = por %p6531_p9, %p6530_p5 }
  0xac   : > { %p6528_p13 = pneg %p6527_p0 }
  0xae   : > { %p6533_p1 = pnand %p6532_p10, %p6528_p13 }
  0xb0   : > { %6536 = shalt.err (!%p6533_p1)
}
  0xb1   : > { %s6537_s5 = scalar_lea.vmem %s922_s15, 128  ;;  %s7034_s27 = smov [#allocation5]  }
  0xb2   : > { %p6538_p3 = scmp.ne.s32.totalorder %s922_s15, %s6537_s5  ;;  %s6542_s30 = sshll.u32 %s7034_s27, 4  ;;  %s6543_s30 = int_to_ptr.vmem [resolvable:$false] %s6542_s30 }
  0xb3   : > { %s6544_s29 = scalar_lea.vmem %s6543_s30, 256  ;;  %p6545_p11 = scmp.lt.s32.totalorder %s922_s15, %s6543_s30 }
  0xb4   : > { %p6540_p4 = pnand %p6538_p3, %p7385_p12  ;;  %p6546_p0 = scmp.lt.s32.totalorder %s6544_s29, %s6537_s5 }
  0xb6   : > { %p6541_p2 = pneg %p6540_p4  ;;  %p6547_p6 = por %p6546_p0, %p6545_p11 }
  0xb8   : > { %p6548_p7 = pnand %p6547_p6, %p6541_p2 }
  0xba   : > { %6551 = shalt.err (!%p6548_p7)
}
  0xbb   : > { %5812 = dma.hbm_to_vmem [thread:$0]  (!%p7365_p8), %s7374_s13, 128, %s922_s15, %s7379_s17  }
  0xbc   : > { %s7035_s21 = smov [#allocation13]   ;;  %p8381_p3 = scmp.ne.s32.totalorder %s8362_s6, 0 }
  0xbd   : > { %s704_s18 = sshll.u32 %s7035_s21, 4  ;;  %s705_s18 = int_to_ptr.vmem [resolvable:$true] %s704_s18 }
  0xbe   : > { %s6563_s10 = scalar_lea.vmem %s705_s18, 6144  ;;  %p6571_p5 = scmp.lt.s32.totalorder %s705_s18, %s705_s18 }
  0xbf   : > { %p6564_p1 = scmp.ne.s32.totalorder %s705_s18, %s6563_s10  ;;  %p6572_p9 = scmp.lt.s32.totalorder %s6563_s10, %s6563_s10 }
  0xc1   : > { %p6566_p4 = pnand %p6564_p1, %p8381_p3  ;;  %p6573_p10 = por %p6572_p9, %p6571_p5 }
  0xc3   : > { %p6567_p13 = pneg %p6566_p4 }
  0xc5   : > { %p6574_p11 = pnand %p6573_p10, %p6567_p13 }
  0xc7   : > { %6577 = shalt.err (!%p6574_p11)
}
  0xc8   : > { %s8325_s27 = smov 192   ;;  %s8326_s29 = smov 12  }
  0xc9   : > { %p8382_p6 = scmp.ne.s32.totalorder %s8361_s2, 0  ;;  %s8383_s30 = sld [smem:[#allocation65_spill]] }
  0xca   : > { %s7038_s5 = smov [#allocation16]  }
  0xcb   : > { %s730_s8 = sshll.u32 %s7038_s5, 4  ;;  %s731_s8 = int_to_ptr.vmem [resolvable:$true] %s730_s8 }
  0xcc   : > { %s6589_s9 = scalar_lea.vmem %s731_s8, 8192  ;;  %p6597_p1 = scmp.lt.s32.totalorder %s731_s8, %s731_s8 }
  0xcd   : > { %p6590_p7 = scmp.ne.s32.totalorder %s731_s8, %s6589_s9  ;;  %p6598_p4 = scmp.lt.s32.totalorder %s6589_s9, %s6589_s9 }
  0xcf   : > { %5766 = dma.hbm_to_vmem [thread:$0]  (!%p8382_p6), %s8383_s30, 6144, %s705_s18, [#allocation12], %s8325_s27, %s8325_s27, %s8326_s29  }
  0xd0   : > { %p6592_p2 = pnand %p6590_p7, %p8381_p3  ;;  %p6599_p13 = por %p6598_p4, %p6597_p1 }
  0xd2   : > { %p6593_p0 = pneg %p6592_p2 }
  0xd4   : > { %p6600_p5 = pnand %p6599_p13, %p6593_p0 }
  0xd6   : > { %6603 = shalt.err (!%p6600_p5)
}
  0xd7   : > { %s8327_s4 = smov 256   ;;  %s8332_s21 = smov 16  }
  0xd8   : > { %s8384_s13 = sld [smem:[#allocation67_spill]]  ;;  %s7041_s15 = smov [#allocation19]  }
  0xd9   : > { %s756_s30 = sshll.u32 %s7041_s15, 4  ;;  %s7042_s5 = smov [#allocation22]   ;;  %s757_s30 = int_to_ptr.vmem [resolvable:$true] %s756_s30 }
  0xda   : > { %s783_s9 = sshll.u32 %s7042_s5, 4  ;;  %s6615_s27 = scalar_lea.vmem %s757_s30, 8192  ;;  %s784_s9 = int_to_ptr.vmem [resolvable:$true] %s783_s9 }
  0xdb   : > { %p6616_p9 = scmp.ne.s32.totalorder %s757_s30, %s6615_s27  ;;  %p6623_p7 = scmp.lt.s32.totalorder %s757_s30, %s757_s30 }
  0xdc   : > { %p6624_p2 = scmp.lt.s32.totalorder %s6615_s27, %s6615_s27 }
  0xdd   : > { %p6618_p10 = pnand %p6616_p9, %p8381_p3 }
  0xde   : > { %5772 = dma.hbm_to_vmem [thread:$0]  (!%p8382_p6), %s8384_s13, 8192, %s731_s8, [#allocation15], %s8327_s4, %s8327_s4, %s8332_s21  }
  0xdf   : > { %p6619_p11 = pneg %p6618_p10  ;;  %p6625_p0 = por %p6624_p2, %p6623_p7 }
  0xe1   : > { %p6626_p1 = pnand %p6625_p0, %p6619_p11 }
  0xe3   : > { %6629 = shalt.err (!%p6626_p1)
}
  0xe4   : > { %s8385_s29 = smov 4   ;;  %s8386_s18 = smov 64  }
  0xe5   : > { %s8387_s12 = sld [smem:[#allocation69_spill]]  ;;  %s6641_s13 = scalar_lea.vmem %s784_s9, 64 }
  0xe6   : > { %p6642_p4 = scmp.ne.s32.totalorder %s784_s9, %s6641_s13  ;;  %p6649_p9 = scmp.lt.s32.totalorder %s784_s9, %s784_s9 }
  0xe7   : > { %p6650_p10 = scmp.lt.s32.totalorder %s6641_s13, %s6641_s13 }
  0xe8   : > { %p6644_p13 = pnand %p6642_p4, %p8381_p3 }
  0xe9   : > { %p6651_p11 = por %p6650_p10, %p6649_p9 }
  0xea   : > { %p6645_p5 = pneg %p6644_p13 }
  0xeb   : > { %5778 = dma.hbm_to_vmem [thread:$0]  (!%p8382_p6), %s8387_s12, 8192, %s757_s30, [#allocation18], %s8386_s18, %s8386_s18, %s8385_s29  }
  0xec   : > { %p6652_p7 = pnand %p6651_p11, %p6645_p5 }
  0xee   : > { %6655 = shalt.err (!%p6652_p7)
}
  0xef   : > { %s8388_s14 = sld [smem:[#allocation71_spill]]  ;;  %s7043_s5 = smov [#allocation25]  }
  0xf0   : > { %s807_s30 = sshll.u32 %s7043_s5, 4  ;;  %s7044_s8 = smov [#allocation28]   ;;  %s808_s30 = int_to_ptr.vmem [resolvable:$true] %s807_s30 }
  0xf1   : > { %s836_s10 = sshll.u32 %s7044_s8, 4  ;;  %s6667_s4 = scalar_lea.vmem %s808_s30, 64  ;;  %s837_s10 = int_to_ptr.vmem [resolvable:$true] %s836_s10 }
  0xf2   : > { %p6668_p2 = scmp.ne.s32.totalorder %s808_s30, %s6667_s4  ;;  %p6675_p4 = scmp.lt.s32.totalorder %s808_s30, %s808_s30 }
  0xf3   : > { %p6676_p13 = scmp.lt.s32.totalorder %s6667_s4, %s6667_s4 }
  0xf4   : > { %p6670_p0 = pnand %p6668_p2, %p8381_p3 }
  0xf5   : > { %5784 = dma.hbm_to_vmem [thread:$0]  (!%p8382_p6), %s8388_s14, 64, %s784_s9, [#allocation21]  }
  0xf6   : > { %p6671_p1 = pneg %p6670_p0  ;;  %p6677_p5 = por %p6676_p13, %p6675_p4 }
  0xf8   : > { %p6678_p9 = pnand %p6677_p5, %p6671_p1 }
  0xfa   : > { %6681 = shalt.err (!%p6678_p9)
}
  0xfb   : > { %5790 = dma.hbm_to_vmem [thread:$0]  (!%p8382_p6), %s8284_s16, 64, %s808_s30, [#allocation24]  }
  0xfc   : > { %s6693_s9 = scalar_lea.vmem %s837_s10, 6144  ;;  %p6701_p2 = scmp.lt.s32.totalorder %s837_s10, %s837_s10 }
  0xfd   : > { %p6694_p10 = scmp.ne.s32.totalorder %s837_s10, %s6693_s9  ;;  %p6702_p0 = scmp.lt.s32.totalorder %s6693_s9, %s6693_s9 }
  0xff   : > { %p6696_p11 = pnand %p6694_p10, %p8381_p3  ;;  %p6703_p8 = por %p6702_p0, %p6701_p2 }
 0x101   : > { %p6697_p7 = pneg %p6696_p11 }
 0x103   : > { %p6704_p12 = pnand %p6703_p8, %p6697_p7 }
 0x105   : > { %6707 = shalt.err (!%p6704_p12)
}
 0x106   : > { %s8389_s4 = smov 12   ;;  %s8390_s15 = smov 192  }
 0x107   : > { %5796 = dma.hbm_to_vmem [thread:$0]  (!%p8382_p6), %s8288_s20, 6144, %s837_s10, [#allocation27], %s8390_s15, %s8390_s15, %s8389_s4  }
 0x108   : > { %s7045_s30 = smov [#allocation31]   ;;  %s7046_s27 = smov [#allocation32]  }
 0x109   : > { %s862_s13 = sshll.u32 %s7045_s30, 4  ;;  %s878_s21 = sshll.u32 %s7046_s27, 4  ;;  %s863_s13 = int_to_ptr.vmem [resolvable:$true] %s862_s13  ;;  %s879_s21 = int_to_ptr.vmem [resolvable:$true] %s878_s21 }
 0x10a   : > { %s6719_s11 = scalar_lea.vmem %s863_s13, 8192  ;;  %p6727_p4 = scmp.lt.s32.totalorder %s863_s13, %s863_s13 }
 0x10b   : > { %p6720_p1 = scmp.ne.s32.totalorder %s863_s13, %s6719_s11  ;;  %p6728_p13 = scmp.lt.s32.totalorder %s6719_s11, %s6719_s11 }
 0x10d   : > { %p6722_p8 = pnand %p6720_p1, %p8381_p3  ;;  %p6729_p5 = por %p6728_p13, %p6727_p4 }
 0x10f   : > { %p6723_p12 = pneg %p6722_p8 }
 0x111   : > { %p6730_p9 = pnand %p6729_p5, %p6723_p12 }
 0x113   : > { %6733 = shalt.err (!%p6730_p9)
}
 0x114   : > { %s8391_s9 = smov 16   ;;  %s8392_s5 = smov 256  }
 0x115   : > { %5802 = dma.hbm_to_vmem [thread:$0]  (!%p8382_p6), %s8290_s22, 8192, %s863_s13, [#allocation30], %s8392_s5, %s8392_s5, %s8391_s9  }
 0x116   : > { %s6745_s15 = scalar_lea.vmem %s879_s21, 8192  ;;  %p6753_p2 = scmp.lt.s32.totalorder %s879_s21, %s879_s21 }
 0x117   : > { %p6746_p10 = scmp.ne.s32.totalorder %s879_s21, %s6745_s15  ;;  %p6754_p0 = scmp.lt.s32.totalorder %s6745_s15, %s6745_s15 }
 0x119   : > { %p6748_p11 = pnand %p6746_p10, %p8381_p3  ;;  %p6755_p1 = por %p6754_p0, %p6753_p2 }
 0x11b   : > { %p6749_p7 = pneg %p6748_p11 }
 0x11d   : > { %p6756_p8 = pnand %p6755_p1, %p6749_p7 }
 0x11f   : > { %6759 = shalt.err (!%p6756_p8)
}
 0x120   : > { %5805 = dma.hbm_to_vmem [thread:$0]  (!%p8382_p6), %s8292_s24, 8192, %s879_s21, [#allocation33], %s8386_s18, %s8386_s18, %s8385_s29  }
 0x121   : > { %s8393_s13 = sld [smem:[#allocation57_spill]]  ;;  %s896_s2 = scalar_lea.vmem [#allocation2], %s7360_s1 }
 0x122   : > { %s903_s9 = sshll.u32 %s896_s2, 4  ;;  %s8394_s4 = sld [smem:[#allocation59_spill]]  ;;  %s904_s9 = int_to_ptr.vmem [resolvable:$true] %s903_s9 }
 0x123   : > { %s8395_s11 = sand.u32 1, %s6998_s7   ;;  %p8396_p6 = scmp.ne.s32.totalorder %s8380_s19, 0 }
 0x124   : > { %s893_s8 = scalar_lea.sflag [#allocation3], %s8395_s11 }
 0x127   : > { %s7482_s27 = scalar_lea.hbm %s8393_s13, %s7363_s23  ;;  %s6765_s18 = scalar_lea.hbm %s8393_s13, 256 }
 0x128   : > { %s7489_s15 = scalar_lea.hbm %s8394_s4, %s7363_s23  ;;  %s6760_s12 = scalar_lea.hbm %s7482_s27, 128 }
 0x129   : > { %p6761_p3 = scmp.ne.s32.totalorder %s7482_s27, %s6760_s12  ;;  %p6766_p13 = scmp.lt.s32.totalorder %s7482_s27, %s8393_s13 }
 0x12a   : > { %p6767_p5 = scmp.lt.s32.totalorder %s6765_s18, %s6760_s12 }
 0x12b   : > { %p6763_p12 = pnand %p6761_p3, %p8396_p6 }
 0x12c   : > { %p6768_p9 = por %p6767_p5, %p6766_p13 }
 0x12d   : > { %p6764_p4 = pneg %p6763_p12 }
 0x12f   : > { %p6769_p10 = pnand %p6768_p9, %p6764_p4 }
 0x131   : > { %6772 = shalt.err (!%p6769_p10)
}
 0x132   : > { %s6773_s2 = scalar_lea.vmem %s904_s9, 128  ;;  %s7047_s5 = smov [#allocation2]  }
 0x133   : > { %p6774_p11 = scmp.ne.s32.totalorder %s904_s9, %s6773_s2  ;;  %s6778_s10 = sshll.u32 %s7047_s5, 4  ;;  %s6779_s10 = int_to_ptr.vmem [resolvable:$false] %s6778_s10 }
 0x134   : > { %s6780_s11 = scalar_lea.vmem %s6779_s10, 256  ;;  %p6781_p0 = scmp.lt.s32.totalorder %s904_s9, %s6779_s10 }
 0x135   : > { %p6776_p7 = pnand %p6774_p11, %p8396_p6  ;;  %p6782_p1 = scmp.lt.s32.totalorder %s6780_s11, %s6773_s2 }
 0x137   : > { %p6777_p2 = pneg %p6776_p7  ;;  %p6783_p8 = por %p6782_p1, %p6781_p0 }
 0x139   : > { %p6784_p3 = pnand %p6783_p8, %p6777_p2 }
 0x13b   : > { %6787 = shalt.err (!%p6784_p3)
}
 0x13c   : > { %p8397_p12 = scmp.ne.s32.totalorder %s8378_s25, 0  ;;  %s932_s12 = scalar_lea.vmem [#allocation7], %s7360_s1 }
 0x13d   : > { %s939_s29 = sshll.u32 %s932_s12, 4  ;;  %s8398_s6 = sld [smem:[#allocation60_spill]]  ;;  %s940_s29 = int_to_ptr.vmem [resolvable:$true] %s939_s29 }
 0x13e   : > { %5809 = dma.hbm_to_vmem [thread:$0]  (!%p8397_p12), %s7482_s27, 128, %s904_s9, %s893_s8  }
 0x13f   : > { %s6788_s2 = scalar_lea.hbm %s7489_s15, 128  ;;  %s6793_s11 = scalar_lea.hbm %s8394_s4, 256 }
 0x140   : > { %p6789_p4 = scmp.ne.s32.totalorder %s7489_s15, %s6788_s2  ;;  %p6794_p9 = scmp.lt.s32.totalorder %s7489_s15, %s8394_s4 }
 0x141   : > { %p6795_p10 = scmp.lt.s32.totalorder %s6793_s11, %s6788_s2 }
 0x142   : > { %p6791_p13 = pnand %p6789_p4, %p8396_p6 }
 0x143   : > { %s7514_s30 = scalar_lea.hbm %s8398_s6, %s7363_s23  ;;  %p6796_p11 = por %p6795_p10, %p6794_p9 }
 0x144   : > { %p6792_p5 = pneg %p6791_p13 }
 0x146   : > { %p6797_p7 = pnand %p6796_p11, %p6792_p5 }
 0x148   : > { %6800 = shalt.err (!%p6797_p7)
}
 0x149   : > { %s6801_s27 = scalar_lea.vmem %s940_s29, 128  ;;  %s7048_s23 = smov [#allocation7]  }
 0x14a   : > { %p6802_p2 = scmp.ne.s32.totalorder %s940_s29, %s6801_s27  ;;  %s6806_s9 = sshll.u32 %s7048_s23, 4  ;;  %s6807_s9 = int_to_ptr.vmem [resolvable:$false] %s6806_s9 }
 0x14b   : > { %s6808_s8 = scalar_lea.vmem %s6807_s9, 256  ;;  %p6809_p8 = scmp.lt.s32.totalorder %s940_s29, %s6807_s9 }
 0x14c   : > { %p6804_p0 = pnand %p6802_p2, %p8396_p6  ;;  %p6810_p3 = scmp.lt.s32.totalorder %s6808_s8, %s6801_s27 }
 0x14e   : > { %p6805_p1 = pneg %p6804_p0  ;;  %p6811_p4 = por %p6810_p3, %p6809_p8 }
 0x150   : > { %p6812_p13 = pnand %p6811_p4, %p6805_p1 }
 0x152   : > { %6815 = shalt.err (!%p6812_p13)
}
 0x153   : > { %5815 = dma.hbm_to_vmem [thread:$0]  (!%p8397_p12), %s7489_s15, 128, %s940_s29, %s7379_s17  }
 0x154   : > { %s950_s14 = scalar_lea.vmem [#allocation8], %s7360_s1  ;;  %s8399_s12 = sand.u32 1, %s7002_s28  }
 0x155   : > { %s957_s13 = sshll.u32 %s950_s14, 4  ;;  %s947_s21 = scalar_lea.sflag [#allocation9], %s8399_s12  ;;  %s958_s13 = int_to_ptr.vmem [resolvable:$true] %s957_s13 }
 0x156   : > { %s6816_s18 = scalar_lea.hbm %s7514_s30, 128  ;;  %s6821_s10 = scalar_lea.hbm %s8398_s6, 256 }
 0x157   : > { %p6817_p5 = scmp.ne.s32.totalorder %s7514_s30, %s6816_s18  ;;  %p6822_p11 = scmp.lt.s32.totalorder %s7514_s30, %s8398_s6 }
 0x158   : > { %p6823_p7 = scmp.lt.s32.totalorder %s6821_s10, %s6816_s18 }
 0x159   : > { %p6819_p9 = pnand %p6817_p5, %p8396_p6 }
 0x15a   : > { %p6824_p2 = por %p6823_p7, %p6822_p11 }
 0x15b   : > { %p6820_p10 = pneg %p6819_p9 }
 0x15d   : > { %p6825_p0 = pnand %p6824_p2, %p6820_p10 }
 0x15f   : > { %6828 = shalt.err (!%p6825_p0)
}
 0x160   : > { %s6829_s17 = scalar_lea.vmem %s958_s13, 128  ;;  %s7049_s1 = smov [#allocation8]  }
 0x161   : > { %p6830_p1 = scmp.ne.s32.totalorder %s958_s13, %s6829_s17  ;;  %s6834_s15 = sshll.u32 %s7049_s1, 4  ;;  %s6835_s15 = int_to_ptr.vmem [resolvable:$false] %s6834_s15 }
 0x162   : > { %s6836_s29 = scalar_lea.vmem %s6835_s15, 256  ;;  %p6837_p4 = scmp.lt.s32.totalorder %s958_s13, %s6835_s15 }
 0x163   : > { %p6832_p8 = pnand %p6830_p1, %p8396_p6  ;;  %p6838_p13 = scmp.lt.s32.totalorder %s6836_s29, %s6829_s17 }
 0x165   : > { %p6833_p3 = pneg %p6832_p8  ;;  %p6839_p5 = por %p6838_p13, %p6837_p4 }
 0x167   : > { %p6840_p9 = pnand %p6839_p5, %p6833_p3 }
 0x169   : > { %6843 = shalt.err (!%p6840_p9)
}
 0x16a   : > { %5818 = dma.hbm_to_vmem [thread:$0]  (!%p8397_p12), %s7514_s30, 128, %s958_s13, %s947_s21  }
 0x16b   : > { %p8400_p10 = scmp.ne.s32.totalorder %s8360_s0, 0 }
 0x16c   : > { %s7555_s19 = sand.u32 (!%p8400_p10), 1, %s6994_s3   ;;  %p8401_p6 = scmp.ne.s32.totalorder (!%p8400_p10), %s8373_s26, 0 }
 0x16d   : > { %966 = sbr.rel (%p8400_p10) target bundleno = 7179 (0x1c0b), region = 120  ;;  %s7558_s23 = sshll.u32 (!%p8400_p10), %s7555_s19, 3 }
 0x16e   : > { %s969_s9 = scalar_lea.sflag (!%p8400_p10), [#allocation3], %s7555_s19  ;;  %s972_s8 = scalar_lea.vmem (!%p8400_p10), [#allocation2], %s7558_s23 }
 0x172   : > { %6933 = dma.done.wait (%p8401_p6), %s969_s9, 128  }
 0x173   : > { %6935 = vsyncadd (%p8401_p6), %s969_s9, 4294967168  ;;  %s8402_s25 = sld [smem:[#allocation52_spill]]  ;;  %s981_s14 = scalar_lea.vmem [#allocation5], %s7558_s23 }
 0x179   : > { %s977_s0 = sand.u32 1, %s8402_s25  }
 0x17a   : > { %s978_s30 = scalar_lea.sflag [#allocation6], %s977_s0 }
 0x17b   : > { %6937 = dma.done.wait (%p8401_p6), %s978_s30, 256  }
 0x17c   : > { %6939 = vsyncadd (%p8401_p6), %s978_s30, 4294967040  ;;  %s990_s13 = scalar_lea.vmem [#allocation7], %s7558_s23  ;;  %s996_s12 = scalar_lea.sflag [#allocation9], %s977_s0 }
 0x17d   : > { %s999_s21 = scalar_lea.vmem [#allocation8], %s7558_s23 }
 0x17e   : > { %6941 = dma.done.wait (%p8401_p6), %s996_s12, 128  }
 0x17f   : > { %6943 = vsyncadd (%p8401_p6), %s996_s12, 4294967168  ;;  %p8403_p12 = scmp.eq.s32.totalorder %s8402_s25, 0 }
 0x181   : > { %6945 = dma.done.wait (%p8403_p12), [#allocation9], 1024   ;;  %p8404_p11 = pmov %p8403_p12 }
 0x183   : > { %6947 = vsyncadd (%p8404_p11), [#allocation9], 4294966272  ;;  %p8405_p7 = pmov %p8404_p11 }
 0x185   : > { %6949 = dma.done.wait (%p8405_p7), [#allocation12], 6208   ;;  %p8406_p2 = pmov %p8405_p7 }
 0x187   : > { %6951 = vsyncadd (%p8406_p2), [#allocation12], 4294961088  ;;  %p8407_p0 = pmov %p8406_p2 }
 0x189   : > { %6953 = dma.done.wait (%p8407_p0), [#allocation15], 10240   ;;  %p8408_p1 = pmov %p8407_p0 }
 0x18a   : > { %p8409_p8 = pmov %p8407_p0 }
 0x18b   : > { %6955 = vsyncadd (%p8408_p1), [#allocation15], 4294957056 }
 0x18c   : > { %6957 = dma.done.wait (%p8409_p8), [#allocation18], 8320   ;;  %p8410_p3 = pmov %p8407_p0 }
 0x18d   : > { %p8411_p4 = pmov %p8407_p0 }
 0x18e   : > { %6959 = vsyncadd (%p8410_p3), [#allocation18], 4294958976 }
 0x18f   : > { %6961 = dma.done.wait (%p8411_p4), [#allocation21], 1088   ;;  %p8412_p13 = pmov %p8407_p0 }
 0x190   : > { %p8413_p5 = pmov %p8407_p0 }
 0x191   : > { %6963 = vsyncadd (%p8412_p13), [#allocation21], 4294966208 }
 0x192   : > { %6965 = dma.done.wait (%p8413_p5), [#allocation24], 1088   ;;  %p8414_p9 = pmov %p8407_p0 }
 0x193   : > { %p8415_p10 = pmov %p8407_p0 }
 0x194   : > { %6967 = vsyncadd (%p8414_p9), [#allocation24], 4294966208 }
 0x195   : > { %6969 = dma.done.wait (%p8415_p10), [#allocation27], 7168   ;;  %p8416_p6 = pmov %p8407_p0 }
 0x196   : > { %p8417_p12 = pmov %p8407_p0 }
 0x197   : > { %6971 = vsyncadd (%p8416_p6), [#allocation27], 4294960128 }
 0x198   : > { %6973 = dma.done.wait (%p8417_p12), [#allocation30], 10240   ;;  %p8418_p11 = pmov %p8407_p0 }
 0x199   : > { %p8419_p7 = pmov %p8407_p0 }
 0x19a   : > { %6975 = vsyncadd (%p8418_p11), [#allocation30], 4294957056 }
 0x19b   : > { %6977 = dma.done.wait (%p8419_p7), [#allocation33], 8192   ;;  %p8420_p2 = pmov %p8407_p0 }
 0x19c   : > { %v7050_v0 = vmov 0.0   ;;  %vm7051_vm0 = vmmov 0   ;;  %v5964_v1 = vld [vmem:[#allocation10 + $0x38] sm:$0xff]   ;;  %v5965_v2 = vld [vmem:[#allocation10 + $0x30] sm:$0xff]   ;;  %v5966_v3 = vld [vmem:[#allocation10 + $0x28] sm:$0xff]   ;;  %s1144_s26 = scalar_lea.vmem [#allocation34], %s7558_s23 }
 0x19d   : > { %6979 = vsyncadd (%p8420_p2), [#allocation33], 4294959104  ;;  %5453 = vmatprep.subr.bf16.mxu0 %v7050_v0  ;;  %5469 = vmatprep.mubr.msk.bf16.mxu0 %vm7051_vm0, %v7050_v0  ;;  %v5967_v4 = vld [vmem:[#allocation10 + $0x20] sm:$0xff]   ;;  %v5968_v5 = vld [vmem:[#allocation10 + $0x18] sm:$0xff]   ;;  %s1151_s18 = scalar_lea.vmem [#allocation35], %s7558_s23  ;;  %s7632_s2 = smov 0  }
 0x19e   : > { %5454 = vmatpush3.bf16.msra.mxu0 %v5964_v1  ;;  %v5969_v6 = vld [vmem:[#allocation10 + $0x10] sm:$0xff]   ;;  %v5970_v7 = vld [vmem:[#allocation10 + $0x8] sm:$0xff]   ;;  %v5971_v8 = vld [vmem:[#allocation10] sm:$0xff]  }
 0x19f   : > { %5455 = vmatprep.subr.bf16.mxu0 %v7050_v0  ;;  %v1153_v9 = vld [vmem:[%s972_s8] sm:$0xff]  ;;  %v1264_v13 = vld [vmem:[%s981_s14] sm:$0xff] }
 0x1a0   : > { %v1154_v10 = vpack.c.bf16 %v1153_v9, %v1153_v9  ;;  %v4986_v11 = vld [vmem:[#allocation11] ss:$0 sm:$0xff] }
 0x1a2   : > { %5456 = vmatpush3.bf16.msra.mxu0 %v5965_v2 }
 0x1a3   : > { %5457 = vmatprep.subr.bf16.mxu0 %v7050_v0 }
 0x1a6   : > { %5458 = vmatpush3.bf16.msra.mxu0 %v5966_v3 }
 0x1a7   : > { %5459 = vmatprep.subr.bf16.mxu0 %v7050_v0 }
 0x1aa   : > { %5460 = vmatpush3.bf16.msra.mxu0 %v5967_v4 }
 0x1ab   : > { %5461 = vmatprep.subr.bf16.mxu0 %v7050_v0 }
 0x1ae   : > { %5462 = vmatpush3.bf16.msra.mxu0 %v5968_v5 }
 0x1af   : > { %5463 = vmatprep.subr.bf16.mxu0 %v7050_v0 }
 0x1b2   : > { %5464 = vmatpush3.bf16.msra.mxu0 %v5969_v6 }
 0x1b3   : > { %5465 = vmatprep.subr.bf16.mxu0 %v7050_v0 }
 0x1b6   : > { %5466 = vmatpush3.bf16.msra.mxu0 %v5970_v7 }
 0x1b7   : > { %5467 = vmatprep.subr.bf16.mxu0 %v7050_v0 }
 0x1ba   : > { %5468 = vmatpush3.bf16.msra.mxu0 %v5971_v8 }
 0x1bd   : > { %5470 = vmatmul.mubr.bf16.vlgmr.msra.gmra.mxu0 %v1154_v10 }
 0x27d   : > { %v1258_v12 = vpop.f32.mrf.mxu0 }
 0x27e   : > { %v1259_v14 = vadd.f32 %v4986_v11, %v1258_v12 }
 0x27f   : > { %v5471_v15 = vpop.f32.mrf.mxu0 }
 0x280   : > { %v1265_v16 = vadd.f32 %v1264_v13, %v1259_v14  }
 0x281   : > { %v1261_v17 = vpop.f32.mrf.mxu0 }
 0x283   : > { %v5472_v18 = vpop.f32.mrf.mxu0 }
 0x284 LB: >> { %1434 = vadd.xlane.f32.xlu0 %v7006_v16  ;;  %v7052_v19 = vmov 0.0   ;;  %s5260_s5 = smul.u32 192, %s7010_s2  ;;  %v7053_v40 = vmov 0   ;;  %vm7054_vm1 = vmmov 0   ;;  %v1446_v52 = vlaneseq  ;;  %s4995_s11 = sshll.u32 %s7010_s2, 3  ;;  %s7010_s2 = sphi %s7632_s2, %s1271_s2   ;;  %v7006_v16 = vphi %v1265_v16, %v8422_v16  }
 0x285   : >> { %5473 = vmatprep.subr.bf16.mxu1 %v7052_v19  ;;  %1617 = vmatprep.mubr.bf16.mxu0 %v7053_v40  ;;  %s8421_s1 = sld [smem:[#allocation64_spill]]  ;;  %vm1678_vm2 = vcmask 523264   ;;  %s7055_s29 = smov 64   ;;  %vm1799_vm3 = vcmask 1043456   ;;  %vm1771_vm4 = vcmask 64512  }
 0x286   : >> { %s7643_s10 = scalar_lea.vmem [#allocation13], %s5260_s5  ;;  %5489 = vmatprep.mubr.msk.bf16.mxu1 %vm7054_vm1, %v7052_v19  ;;  %v7687_v53 = vshrl.u32 %v1446_v52, 7  ;;  %s5261_s9 = sshll.u32 %s7010_s2, 6 }
 0x287   : >> { %v5972_v20 = vld [vmem:[%s7643_s10 + $0xac] ss:$12 sps:$4 sm:$0xff]   ;;  %v5974_v21 = vld [vmem:[%s7643_s10 + $0xa8] ss:$12 sps:$4 sm:$0xff]   ;;  %v5975_v22 = vld [vmem:[%s7643_s10 + $0xb0] ss:$12 sps:$4 sm:$0xff]  }
 0x288   : >> { %1585 = vmatprep.subr.bf16.mxu0 %v5972_v20  ;;  %v5976_v23 = vld [vmem:[%s7643_s10 + $0x94] ss:$12 sps:$4 sm:$0xff]   ;;  %v5978_v24 = vld [vmem:[%s7643_s10 + $0x90] ss:$12 sps:$4 sm:$0xff]   ;;  %5474 = vmatpush3.bf16.msra.mxu1 %v5975_v22  ;;  %v5979_v25 = vld [vmem:[%s7643_s10 + $0x98] ss:$12 sps:$4 sm:$0xff]  }
 0x289   : >> { %1586 = vmatpush1.bf16.msra.mxu0 %v5974_v21  ;;  %5475 = vmatprep.subr.bf16.mxu1 %v7052_v19  ;;  %v5980_v30 = vld [vmem:[%s7643_s10 + $0x7c] ss:$12 sps:$4 sm:$0xff]   ;;  %v5982_v31 = vld [vmem:[%s7643_s10 + $0x78] ss:$12 sps:$4 sm:$0xff]   ;;  %v5983_v32 = vld [vmem:[%s7643_s10 + $0x80] ss:$12 sps:$4 sm:$0xff]  }
 0x28a   : >> { %1587 = vmatprep.subr.bf16.mxu0 %v5976_v23  ;;  %v5984_v33 = vld [vmem:[%s7643_s10 + $0x64] ss:$12 sps:$4 sm:$0xff]   ;;  %v5986_v34 = vld [vmem:[%s7643_s10 + $0x60] ss:$12 sps:$4 sm:$0xff]   ;;  %v5987_v35 = vld [vmem:[%s7643_s10 + $0x68] ss:$12 sps:$4 sm:$0xff]  }
 0x28b   : >> { %v5988_v36 = vld [vmem:[%s7643_s10 + $0x4c] ss:$12 sps:$4 sm:$0xff]   ;;  %v5990_v37 = vld [vmem:[%s7643_s10 + $0x48] ss:$12 sps:$4 sm:$0xff]   ;;  %v5991_v38 = vld [vmem:[%s7643_s10 + $0x50] ss:$12 sps:$4 sm:$0xff]   ;;  %s1274_s15 = scalar_lea.vmem %s8421_s1, %s4995_s11 }
 0x28c   : >> { %5476 = vmatpush3.bf16.msra.mxu1 %v5979_v25  ;;  %v5992_v39 = vld [vmem:[%s7643_s10 + $0x34] ss:$12 sps:$4 sm:$0xff]   ;;  %v5994_v41 = vld [vmem:[%s7643_s10 + $0x30] ss:$12 sps:$4 sm:$0xff]   ;;  %v5995_v42 = vld [vmem:[%s7643_s10 + $0x38] ss:$12 sps:$4 sm:$0xff]  }
 0x28d   : >> { %1588 = vmatpush1.bf16.msra.mxu0 %v5978_v24  ;;  %5477 = vmatprep.subr.bf16.mxu1 %v7052_v19  ;;  %v5996_v43 = vld [vmem:[%s7643_s10 + $0x1c] ss:$12 sps:$4 sm:$0xff]   ;;  %v5998_v44 = vld [vmem:[%s7643_s10 + $0x18] ss:$12 sps:$4 sm:$0xff]   ;;  %v5999_v45 = vld [vmem:[%s7643_s10 + $0x20] ss:$12 sps:$4 sm:$0xff]  }
 0x28e   : >> { %1589 = vmatprep.subr.bf16.mxu0 %v5980_v30  ;;  %v6000_v46 = vld [vmem:[%s7643_s10 + $0x4] ss:$12 sps:$4 sm:$0xff]   ;;  %v6002_v47 = vld [vmem:[%s7643_s10] ss:$12 sps:$4 sm:$0xff]   ;;  %v6003_v48 = vld [vmem:[%s7643_s10 + $0x8] ss:$12 sps:$4 sm:$0xff]  }
 0x28f   : >> { %v7693_v54 = vsub.s32 0, %v7687_v53  ;;  %v7695_v55 = vld [vmem:[%s1274_s15] sm:$0x3f]  ;;  %v7698_v56 = vsub.s32 1, %v7687_v53  ;;  %s1313_s8 = scalar_lea.vmem [#allocation14], %s5261_s9  ;;  %s5262_s25 = sshll.u32 %s7010_s2, 8 }
 0x290   : >> { %5478 = vmatpush3.bf16.msra.mxu1 %v5983_v32  ;;  %s7755_s0 = scalar_lea.vmem [#allocation16], %s5262_s25  ;;  %s7765_s30 = scalar_lea.vmem [#allocation19], %s5262_s25 }
 0x291   : >> { %1590 = vmatpush1.bf16.msra.mxu0 %v5982_v31  ;;  %5479 = vmatprep.subr.bf16.mxu1 %v7052_v19  ;;  %v1449_v57 = vrot.slane %v7695_v55, %v7693_v54  ;;  %v1454_v60 = vrot.slane %v7695_v55, %v7698_v56  ;;  %s5001_s14 = sshll.u32 %s7010_s2, 2  ;;  %s1271_s2 = sadd.s32 1, %s7010_s2  }
 0x292   : >> { %1591 = vmatprep.subr.bf16.mxu0 %v5984_v33  ;;  %s1366_s12 = scalar_lea.vmem [#allocation17], %s5001_s14  ;;  %p1268_p0 = scmp.ge.s32.totalorder %s1271_s2, 2  }
 0x293   : > { %s8423_s11 = sld [smem:[#allocation63_spill]] (%p1268_p0)  ;;  %s7913_s10 = smov (%p1268_p0), 0  }
 0x294   : >> { %5480 = vmatpush3.bf16.msra.mxu1 %v5987_v35 }
 0x295   : >> { %1592 = vmatpush1.bf16.msra.mxu0 %v5986_v34  ;;  %5481 = vmatprep.subr.bf16.mxu1 %v7052_v19 }
 0x296   : >> { %1593 = vmatprep.subr.bf16.mxu0 %v5988_v36 }
 0x298   : >> { %5482 = vmatpush3.bf16.msra.mxu1 %v5991_v38 }
 0x299   : >> { %1594 = vmatpush1.bf16.msra.mxu0 %v5990_v37  ;;  %5483 = vmatprep.subr.bf16.mxu1 %v7052_v19 }
 0x29a   : >> { %1595 = vmatprep.subr.bf16.mxu0 %v5992_v39 }
 0x29c   : >> { %5484 = vmatpush3.bf16.msra.mxu1 %v5995_v42 }
 0x29d   : >> { %1596 = vmatpush1.bf16.msra.mxu0 %v5994_v41  ;;  %5485 = vmatprep.subr.bf16.mxu1 %v7052_v19 }
 0x29e   : >> { %1597 = vmatprep.subr.bf16.mxu0 %v5996_v43 }
 0x2a0   : >> { %5486 = vmatpush3.bf16.msra.mxu1 %v5999_v45 }
 0x2a1   : >> { %1598 = vmatpush1.bf16.msra.mxu0 %v5998_v44  ;;  %5487 = vmatprep.subr.bf16.mxu1 %v7052_v19 }
 0x2a2   : >> { %1599 = vmatprep.subr.bf16.mxu0 %v6000_v46 }
 0x2a4   : >> { %5488 = vmatpush3.bf16.msra.mxu1 %v6003_v48 }
 0x2a5   : >> { %1600 = vmatpush1.bf16.msra.mxu0 %v6002_v47  ;;  %5493 = vmatprep.subr.bf16.mxu1 %v7052_v19 }
 0x2a6   : >> { %5517 = vmatprep.subr.bf16.mxu0 %v7052_v19 }
 0x30d   : >> { %v1435_v26 = vpop.xlane.xlu0 %1434 }
 0x30e   : >> { %v1437_v27 = vmul.f32 0.0078125, %v1435_v26 }
 0x310   : >> { %v7654_v28 = vsub.f32 %v7006_v16, %v1437_v27 }
 0x312   : >> { %v1439_v29 = vmul.f32 %v7654_v28, %v7654_v28 }
 0x314   : >> { %1440 = vadd.xlane.f32.xlu0 %v1439_v29 }
 0x39d   : >> { %v1441_v49 = vpop.xlane.xlu0 %1440 }
 0x39e   : >> { %v1442_v50 = vmul.f32 0.0078125, %v1441_v49 }
 0x3a0   : >> { %v1443_v51 = vadd.f32 1e-05, %v1442_v50  ;;  %v6004_v50 = vld [vmem:[%s1313_s8 + $0x38] sm:$0xff]  }
 0x3a2   : >> { %6092 = vrsqrt.f32 %v1443_v51  ;;  %v6005_v51 = vld [vmem:[%s1313_s8 + $0x30] sm:$0xff]  }
 0x3af   : >> { %v6093_v58 = vpop.eup %6092 }
 0x3b0   : >> { %v1445_v59 = vmul.f32 %v6093_v58, %v7654_v28 }
 0x3b2   : >> { %v1450_v61 = vmul.f32 %v1449_v57, %v1445_v59  ;;  %v6006_v57 = vld [vmem:[%s1313_s8 + $0x28] sm:$0xff]  }
 0x3b4   : >> { %v1455_v62 = vadd.f32 %v1454_v60, %v1450_v61  ;;  %v6007_v60 = vld [vmem:[%s1313_s8 + $0x20] sm:$0xff]  }
 0x3b6   : >> { %v1456_v63 = vpack.c.bf16 %v1455_v62, %v1455_v62  ;;  %v6008_v62 = vld [vmem:[%s1313_s8 + $0x18] sm:$0xff]  }
 0x3b8   : >> { %1618 = vmatmul.mubr.bf16.vlgmr.msra.gmra.mxu0 %v1456_v63  ;;  %5490 = vmatmul.mubr.bf16.vlgmr.msra.gmra.mxu1 %v1456_v63  ;;  %v6009_v63 = vld [vmem:[%s1313_s8 + $0x10] sm:$0xff]  }
 0x3b9   : >> { %5495 = vmatprep.mubr.msk.bf16.mxu1 %vm7054_vm1, %v7052_v19  ;;  %5533 = vmatprep.mubr.msk.bf16.mxu0 %vm7054_vm1, %v7052_v19 }
 0x3ba   : >> { %5518 = vmatpush3.bf16.msra.mxu0 %v6004_v50  ;;  %v6056_v50 = vld [vmem:[%s7755_s0 + $0x4] ss:$16 sps:$4 sm:$0xff]  }
 0x3bb   : >> { %5519 = vmatprep.subr.bf16.mxu0 %v7052_v19 }
 0x3be   : >> { %5520 = vmatpush3.bf16.msra.mxu0 %v6005_v51  ;;  %v6059_v51 = vld [vmem:[%s7755_s0 + $0xc] ss:$16 sps:$4 sm:$0xff]  }
 0x3bf   : >> { %5521 = vmatprep.subr.bf16.mxu0 %v7052_v19 }
 0x3c2   : >> { %5522 = vmatpush3.bf16.msra.mxu0 %v6006_v57  ;;  %v6057_v57 = vld [vmem:[%s7755_s0 + $0x8] ss:$16 sps:$4 sm:$0xff]  }
 0x3c3   : >> { %5523 = vmatprep.subr.bf16.mxu0 %v7052_v19 }
 0x3c6   : >> { %5524 = vmatpush3.bf16.msra.mxu0 %v6007_v60 }
 0x3c7   : >> { %5525 = vmatprep.subr.bf16.mxu0 %v7052_v19 }
 0x3ca   : >> { %5526 = vmatpush3.bf16.msra.mxu0 %v6008_v62  ;;  %v2007_v62 = vsub.s32 4, %v7687_v53 }
 0x3cb   : >> { %5527 = vmatprep.subr.bf16.mxu0 %v7052_v19 }
 0x3ce   : >> { %5528 = vmatpush3.bf16.msra.mxu0 %v6009_v63 }
 0x3cf   : >> { %5529 = vmatprep.subr.bf16.mxu0 %v7052_v19 }
 0x478   : >> { %v1619_v1 = vpop.f32.mrf.mxu0  ;;  %v1660_v2 = vpop.f32.mrf.mxu1 }
 0x479   : >> { %v1666_v11 = vpack.c.bf16 %v1619_v1, %v1619_v1  ;;  %v1668_v14 = vpack.c.bf16 %v1660_v2, %v1660_v2  ;;  %v6010_v1 = vld [vmem:[%s1313_s8 + $0x8] sm:$0xff]   ;;  %v6011_v2 = vld [vmem:[%s1313_s8] sm:$0xff]  }
 0x47a   : >> { %v1621_v3 = vpop.f32.mrf.mxu0  ;;  %v5491_v4 = vpop.f32.mrf.mxu1  ;;  %5530 = vmatpush3.bf16.msra.mxu0 %v6010_v1 }
 0x47b   : >> { %v1667_v5 = vpack.c.bf16 %v1621_v3, %v1621_v3  ;;  %v1801_v17 = vsel %vm1799_vm3, %v1668_v14, 0  ;;  %5531 = vmatprep.subr.bf16.mxu0 %v7052_v19 }
 0x47c   : >> { %v1623_v6 = vpop.f32.mrf.mxu0  ;;  %v1663_v7 = vpop.f32.mrf.mxu1 }
 0x47d   : >> { %v1683_v8 = vsel %vm1678_vm2, %v1667_v5, 0  ;;  %1673 = vrot.lane.b32.xlu1 %v1667_v5, %s7055_s29 }
 0x47e   : >> { %v1624_v9 = vpop.f32.mrf.mxu0  ;;  %v5492_v10 = vpop.f32.mrf.mxu1  ;;  %5494 = vmatpush3.bf16.xpose.msra.mxu1 %v1683_v8  ;;  %5532 = vmatpush3.bf16.msra.mxu0 %v6011_v2 }
 0x47f   : >> { %5499 = vmatprep.subr.bf16.mxu1 %v7052_v19  ;;  %v7746_v10 = vsub.s32 2, %v7687_v53 }
 0x481   : >> { %1670 = vrot.lane.b32.xlu1 %v1666_v11, %s7055_s29 }
 0x485   : >> { %5496 = vmatmul.mubr.msk.bf16.vlgmr.msra.gmra.mxu1 %vm1678_vm2, %v1666_v11 }
 0x486   : >> { %5501 = vmatprep.mubr.msk.bf16.mxu1 %vm7054_vm1, %v7052_v19 }
 0x4ef   : >> { %v1674_v12 = vpop.permute.xlu1 %1673 }
 0x4f0   : >> { %v1729_v13 = vsel %vm1678_vm2, %v1674_v12, 0 }
 0x4f1   : >> { %5500 = vmatpush3.bf16.xpose.msra.mxu1 %v1729_v13 }
 0x4f2   : >> { %5505 = vmatprep.subr.bf16.mxu1 %v7052_v19 }
 0x4f3   : >> { %v1671_v15 = vpop.permute.xlu1 %1670 }
 0x4f8   : >> { %5502 = vmatmul.mubr.msk.bf16.vlgmr.msra.gmra.mxu1 %vm1678_vm2, %v1671_v15 }
 0x4f9   : >> { %5506 = vmatpush3.bf16.msra.mxu1 %v1801_v17  ;;  %5507 = vmatprep.mubr.msk.bf16.mxu1 %vm7054_vm1, %v7052_v19 }
 0x4fa   : >> { %5511 = vmatprep.subr.bf16.mxu1 %v7052_v19 }
 0x545   : >> { %v1719_v18 = vpop.f32.mrf.mxu1 }
 0x546   : >> { %v1772_v20 = vsel %vm1771_vm4, %v1719_v18, -inf }
 0x547   : >> { %1773 = vmax.xlane.f32.xlu0 %v1772_v20  ;;  %v5497_v21 = vpop.f32.mrf.mxu1  ;;  %v6017_v20 = vld [vmem:[%s7755_s0 + $0xec] ss:$16 sps:$4 sm:$0xff]  }
 0x548   : >> { %v6018_v21 = vld [vmem:[%s7755_s0 + $0xc0] ss:$16 sps:$4 sm:$0xff]   ;;  %2233 = vmatprep.subr.bf16.mxu0 %v6017_v20 }
 0x549   : >> { %v1722_v22 = vpop.f32.mrf.mxu1  ;;  %v6072_v20 = vld [vmem:[%s7765_s30 + $0x60] sm:$0xff]  }
 0x54a   : >> { %v6020_v22 = vld [vmem:[%s7755_s0 + $0xc4] ss:$16 sps:$4 sm:$0xff]  }
 0x54b   : >> { %v5498_v23 = vpop.f32.mrf.mxu1 }
 0x54c   : >> { %v6021_v23 = vld [vmem:[%s7755_s0 + $0xc8] ss:$16 sps:$4 sm:$0xff]  }
 0x5b8   : >> { %v1765_v24 = vpop.f32.mrf.mxu1 }
 0x5b9   : >> { %v1775_v25 = vsel %vm1771_vm4, %v1765_v24, -inf }
 0x5ba   : >> { %1776 = vmax.xlane.f32.xlu1 %v1775_v25  ;;  %v5503_v26 = vpop.f32.mrf.mxu1 }
 0x5bc   : >> { %v1768_v27 = vpop.f32.mrf.mxu1 }
 0x5be   : >> { %v5504_v28 = vpop.f32.mrf.mxu1 }
 0x5d0   : >> { %v1774_v29 = vpop.xlane.xlu0 %1773 }
 0x5d1   : >> { %v1778_v30 = vsub.f32 %v1719_v18, %v1774_v29  ;;  %v6015_v18 = vld [vmem:[%s7755_s0 + $0xe8] ss:$16 sps:$4 sm:$0xff]   ;;  %v6026_v29 = vld [vmem:[%s7755_s0 + $0xa4] ss:$16 sps:$4 sm:$0xff]  }
 0x5d3   : >> { %v1780_v31 = vmul.f32 1.442695, %v1778_v30  ;;  %v6029_v30 = vld [vmem:[%s7755_s0 + $0xac] ss:$16 sps:$4 sm:$0xff]  }
 0x5d5   : >> { %6094 = vpow2.f32 %v1780_v31  ;;  %v6024_v31 = vld [vmem:[%s7755_s0 + $0xa0] ss:$16 sps:$4 sm:$0xff]  }
 0x5e2   : >> { %v6095_v32 = vpop.eup %6094 }
 0x5e3   : >> { %v1784_v33 = vsel %vm1771_vm4, %v6095_v32, 0.0 }
 0x5e4   : >> { %1785 = vadd.xlane.f32.xlu0 %v1784_v33  ;;  %v6030_v33 = vld [vmem:[%s7755_s0 + $0x80] ss:$16 sps:$4 sm:$0xff]  }
 0x643   : >> { %v1777_v34 = vpop.xlane.xlu1 %1776 }
 0x644   : >> { %v1779_v35 = vsub.f32 %v1765_v24, %v1777_v34  ;;  %v6023_v24 = vld [vmem:[%s7755_s0 + $0xcc] ss:$16 sps:$4 sm:$0xff]   ;;  %v6032_v34 = vld [vmem:[%s7755_s0 + $0x84] ss:$16 sps:$4 sm:$0xff]  }
 0x646   : >> { %v1782_v36 = vmul.f32 1.442695, %v1779_v35  ;;  %v6033_v35 = vld [vmem:[%s7755_s0 + $0x88] ss:$16 sps:$4 sm:$0xff]  }
 0x648   : >> { %6096 = vpow2.f32 %v1782_v36  ;;  %v6035_v36 = vld [vmem:[%s7755_s0 + $0x8c] ss:$16 sps:$4 sm:$0xff]  }
 0x655   : >> { %v6097_v37 = vpop.eup %6096 }
 0x656   : >> { %v1787_v38 = vsel %vm1771_vm4, %v6097_v37, 0.0 }
 0x657   : >> { %1788 = vadd.xlane.f32.xlu0 %v1787_v38  ;;  %v6041_v38 = vld [vmem:[%s7755_s0 + $0x6c] ss:$16 sps:$4 sm:$0xff]  }
 0x66d   : >> { %v1786_v39 = vpop.xlane.xlu0 %1785  ;;  %1676 = vrot.lane.b32.xlu0 %v1668_v14, %s7055_s29 }
 0x66e   : >> { %6098 = vrcp.f32 %v1786_v39  ;;  %v6036_v39 = vld [vmem:[%s7755_s0 + $0x60] ss:$16 sps:$4 sm:$0xff]  }
 0x67b   : >> { %v6099_v41 = vpop.eup %6098 }
 0x67c   : >> { %v1792_v42 = vmul.f32 %v6099_v41, %v6095_v32  ;;  %v6027_v32 = vld [vmem:[%s7755_s0 + $0xa8] ss:$16 sps:$4 sm:$0xff]  }
 0x67d   : >> { %v6039_v41 = vld [vmem:[%s7755_s0 + $0x68] ss:$16 sps:$4 sm:$0xff]  }
 0x67e   : >> { %v1794_v43 = vpack.c.bf16 %v1792_v42, %v1792_v42  ;;  %v6044_v42 = vld [vmem:[%s7755_s0 + $0x44] ss:$16 sps:$4 sm:$0xff]  }
 0x680   : >> { %5508 = vmatmul.mubr.msk.bf16.vlgmr.msra.gmra.mxu1 %vm1771_vm4, %v1794_v43  ;;  %v6047_v43 = vld [vmem:[%s7755_s0 + $0x4c] ss:$16 sps:$4 sm:$0xff]  }
 0x681   : >> { %5513 = vmatprep.mubr.msk.bf16.mxu1 %vm7054_vm1, %v7052_v19  ;;  %v1987_v19 = vrot.slane %v7695_v55, %v7746_v10 }
 0x6e0   : >> { %v1789_v44 = vpop.xlane.xlu0 %1788 }
 0x6e1   : >> { %6100 = vrcp.f32 %v1789_v44  ;;  %v6042_v44 = vld [vmem:[%s7755_s0 + $0x40] ss:$16 sps:$4 sm:$0xff]  }
 0x6e4   : >> { %v1677_v45 = vpop.permute.xlu0 %1676 }
 0x6e5   : >> { %v1847_v46 = vsel %vm1799_vm3, %v1677_v45, 0  ;;  %v6045_v45 = vld [vmem:[%s7755_s0 + $0x48] ss:$16 sps:$4 sm:$0xff]  }
 0x6e6   : >> { %5512 = vmatpush3.bf16.msra.mxu1 %v1847_v46  ;;  %v6050_v46 = vld [vmem:[%s7755_s0 + $0x24] ss:$16 sps:$4 sm:$0xff]  }
 0x6ee   : >> { %v6101_v47 = vpop.eup %6100 }
 0x6ef   : >> { %v1793_v48 = vmul.f32 %v6101_v47, %v6097_v37  ;;  %v6038_v37 = vld [vmem:[%s7755_s0 + $0x64] ss:$16 sps:$4 sm:$0xff]   ;;  %v6053_v47 = vld [vmem:[%s7755_s0 + $0x2c] ss:$16 sps:$4 sm:$0xff]  }
 0x6f1   : >> { %v1795_v49 = vpack.c.bf16 %v1793_v48, %v1793_v48  ;;  %v6048_v48 = vld [vmem:[%s7755_s0 + $0x20] ss:$16 sps:$4 sm:$0xff]  }
 0x6f3   : >> { %5514 = vmatmul.mubr.msk.bf16.vlgmr.msra.gmra.mxu1 %vm1771_vm4, %v1795_v49  ;;  %v6051_v49 = vld [vmem:[%s7755_s0 + $0x28] ss:$16 sps:$4 sm:$0xff]  }
 0x6f4   : >> { %2224 = vmatprep.mubr.bf16.mxu1 %v7053_v40 }
 0x740   : >> { %v1837_v52 = vpop.f32.mrf.mxu1 }
 0x742   : >> { %v5509_v58 = vpop.f32.mrf.mxu1 }
 0x744   : >> { %v1840_v59 = vpop.f32.mrf.mxu1 }
 0x746   : >> { %v5510_v61 = vpop.f32.mrf.mxu1 }
 0x747   : >> { %v7793_v61 = vsub.s32 3, %v7687_v53 }
 0x749   : >> { %v2003_v63 = vrot.slane %v7695_v55, %v7793_v61 }
 0x7b3   : >> { %v1883_v3 = vpop.f32.mrf.mxu1 }
 0x7b4   : >> { %1890 = vrot.lane.b32.xlu0 %v1883_v3, %s7055_s29  ;;  %v2008_v3 = vrot.slane %v7695_v55, %v2007_v62 }
 0x7b5   : >> { %v5515_v4 = vpop.f32.mrf.mxu1 }
 0x7b7   : >> { %v1886_v5 = vpop.f32.mrf.mxu1 }
 0x7b9   : >> { %v5516_v6 = vpop.f32.mrf.mxu1 }
 0x826   : >> { %v1891_v7 = vpop.permute.xlu0 %1890 }
 0x827   : >> { %v1893_v8 = vsel %vm1678_vm2, %v1837_v52, %v1891_v7  ;;  %v6054_v52 = vld [vmem:[%s7755_s0] ss:$16 sps:$4 sm:$0xff]   ;;  %v6060_v7 = vld [vmem:[%s7765_s30 + $0x78] sm:$0xff]  }
 0x828   : >> { %v1894_v9 = vpack.c.bf16 %v1893_v8, %v1893_v8  ;;  %v6061_v8 = vld [vmem:[%s7765_s30 + $0xf8] sm:$0xff]  }
 0x82a   : >> { %5534 = vmatmul.mubr.bf16.vlgmr.msra.gmra.mxu0 %v1894_v9  ;;  %v6062_v9 = vld [vmem:[%s7765_s30 + $0x38] sm:$0xff]  }
 0x82b   : >> { %2265 = vmatprep.mubr.bf16.mxu0 %v7053_v40  ;;  %v6012_v40 = vld [vmem:[%s7755_s0 + $0xe0] ss:$16 sps:$4 sm:$0xff]   ;;  %2234 = vmatpush1.bf16.msra.mxu0 %v6015_v18  ;;  %v6071_v18 = vld [vmem:[%s7765_s30 + $0xa8] sm:$0xff]  }
 0x82c   : >> { %2235 = vmatprep.subr.bf16.mxu0 %v6023_v24  ;;  %v6076_v24 = vld [vmem:[%s7765_s30 + $0x58] sm:$0xff]  }
 0x82f   : >> { %2236 = vmatpush1.bf16.msra.mxu0 %v6021_v23  ;;  %v6075_v23 = vld [vmem:[%s7765_s30 + $0xa0] sm:$0xff]  }
 0x830   : >> { %2237 = vmatprep.subr.bf16.mxu0 %v6029_v30  ;;  %v6082_v30 = vld [vmem:[%s7765_s30 + $0x10] sm:$0xff]  }
 0x833   : >> { %2238 = vmatpush1.bf16.msra.mxu0 %v6027_v32  ;;  %v6084_v32 = vld [vmem:[%s7765_s30 + $0x48] sm:$0xff]  }
 0x834   : >> { %2239 = vmatprep.subr.bf16.mxu0 %v6035_v36  ;;  %v6088_v36 = vld [vmem:[%s7765_s30 + $0x40] sm:$0xff]  }
 0x837   : >> { %2240 = vmatpush1.bf16.msra.mxu0 %v6033_v35  ;;  %v6087_v35 = vld [vmem:[%s7765_s30 + $0x88] sm:$0xff]  }
 0x838   : >> { %2241 = vmatprep.subr.bf16.mxu0 %v6041_v38  ;;  %v6090_v38 = vld [vmem:[%s7765_s30] sm:$0xff]  }
 0x83b   : >> { %2242 = vmatpush1.bf16.msra.mxu0 %v6039_v41  ;;  %v1367_v41 = vld [vmem:[%s1366_s12] sm:$0xf] }
 0x83c   : >> { %2243 = vmatprep.subr.bf16.mxu0 %v6047_v43  ;;  %v2023_v43 = vrot.slane %v1367_v41, %v7746_v10 }
 0x83f   : >> { %2244 = vmatpush1.bf16.msra.mxu0 %v6045_v45  ;;  %v2027_v45 = vrot.slane %v1367_v41, %v7793_v61 }
 0x840   : >> { %2245 = vmatprep.subr.bf16.mxu0 %v6053_v47 }
 0x843   : >> { %2246 = vmatpush1.bf16.msra.mxu0 %v6051_v49 }
 0x844   : >> { %2247 = vmatprep.subr.bf16.mxu0 %v6059_v51 }
 0x847   : >> { %2248 = vmatpush1.bf16.msra.mxu0 %v6057_v57 }
 0x848   : >> { %5325 = vmatprep.subr.bf16.mxu0 %v6061_v8 }
 0x8ea   : >> { %v1977_v11 = vpop.f32.mrf.mxu0 }
 0x8eb   : >> { %v1983_v12 = vadd.f32 %v7006_v16, %v1977_v11  ;;  %v6014_v16 = vld [vmem:[%s7755_s0 + $0xe4] ss:$16 sps:$4 sm:$0xff]  }
 0x8ec   : >> { %v5535_v13 = vpop.f32.mrf.mxu0  ;;  %2192 = vmatprep.subr.bf16.mxu1 %v6014_v16  ;;  %v6064_v11 = vld [vmem:[%s7765_s30 + $0x70] sm:$0xff]   ;;  %v6070_v16 = vld [vmem:[%s7765_s30 + $0x28] sm:$0xff]  }
 0x8ed   : >> { %v7751_v14 = vadd.f32 %v1987_v19, %v1983_v12  ;;  %2193 = vmatpush1.bf16.msra.mxu1 %v6012_v40  ;;  %v6063_v19 = vld [vmem:[%s7765_s30 + $0xb8] sm:$0xff]   ;;  %v6065_v12 = vld [vmem:[%s7765_s30 + $0xf0] sm:$0xff]   ;;  %v6069_v40 = vld [vmem:[%s7765_s30 + $0xe8] sm:$0xff]  }
 0x8ee   : >> { %v1980_v15 = vpop.f32.mrf.mxu0  ;;  %2194 = vmatprep.subr.bf16.mxu1 %v6020_v22  ;;  %v6066_v13 = vld [vmem:[%s7765_s30 + $0x30] sm:$0xff]   ;;  %v6074_v22 = vld [vmem:[%s7765_s30 + $0x20] sm:$0xff]  }
 0x8ef   : >> { %1989 = vadd.xlane.f32.xlu1 %v7751_v14  ;;  %v6067_v15 = vld [vmem:[%s7765_s30 + $0xb0] sm:$0xff]  }
 0x8f0   : >> { %v5536_v17 = vpop.f32.mrf.mxu0 }
 0x8f1   : >> { %2195 = vmatpush1.bf16.msra.mxu1 %v6018_v21  ;;  %v6068_v17 = vld [vmem:[%s7765_s30 + $0x68] sm:$0xff]   ;;  %v6073_v21 = vld [vmem:[%s7765_s30 + $0xe0] sm:$0xff]  }
 0x8f2   : >> { %2196 = vmatprep.subr.bf16.mxu1 %v6026_v29  ;;  %v6081_v29 = vld [vmem:[%s7765_s30 + $0xd0] sm:$0xff]  }
 0x8f5   : >> { %2197 = vmatpush1.bf16.msra.mxu1 %v6024_v31  ;;  %v6083_v31 = vld [vmem:[%s7765_s30 + $0x90] sm:$0xff]  }
 0x8f6   : >> { %2198 = vmatprep.subr.bf16.mxu1 %v6032_v34  ;;  %v6086_v34 = vld [vmem:[%s7765_s30 + $0x8] sm:$0xff]  }
 0x8f9   : >> { %2199 = vmatpush1.bf16.msra.mxu1 %v6030_v33  ;;  %v6085_v33 = vld [vmem:[%s7765_s30 + $0xc8] sm:$0xff]  }
 0x8fa   : >> { %2200 = vmatprep.subr.bf16.mxu1 %v6038_v37  ;;  %v6089_v37 = vld [vmem:[%s7765_s30 + $0xc0] sm:$0xff]  }
 0x8fd   : >> { %2201 = vmatpush1.bf16.msra.mxu1 %v6036_v39  ;;  %v6091_v39 = vld [vmem:[%s7765_s30 + $0x80] sm:$0xff]  }
 0x8fe   : >> { %2202 = vmatprep.subr.bf16.mxu1 %v6044_v42  ;;  %v2015_v42 = vrot.slane %v1367_v41, %v7693_v54 }
 0x901   : >> { %2203 = vmatpush1.bf16.msra.mxu1 %v6042_v44  ;;  %v2019_v44 = vrot.slane %v1367_v41, %v7698_v56 }
 0x902   : >> { %2204 = vmatprep.subr.bf16.mxu1 %v6050_v46 }
 0x905   : >> { %2205 = vmatpush1.bf16.msra.mxu1 %v6048_v48 }
 0x906   : >> { %2206 = vmatprep.subr.bf16.mxu1 %v6056_v50 }
 0x909   : >> { %2207 = vmatpush1.bf16.msra.mxu1 %v6054_v52 }
 0x90a   : >> { %5303 = vmatprep.subr.bf16.mxu1 %v6060_v7 }
 0x978   : >> { %v1990_v25 = vpop.xlane.xlu1 %1989 }
 0x979   : >> { %v1991_v26 = vmul.f32 0.0078125, %v1990_v25  ;;  %v6077_v25 = vld [vmem:[%s7765_s30 + $0xd8] sm:$0xff]  }
 0x97b   : >> { %v1992_v27 = vsub.f32 %v7751_v14, %v1991_v26  ;;  %v6078_v26 = vld [vmem:[%s7765_s30 + $0x18] sm:$0xff]  }
 0x97d   : >> { %v1993_v28 = vmul.f32 %v1992_v27, %v1992_v27 }
 0x97f   : >> { %1994 = vadd.xlane.f32.xlu0 %v1993_v28  ;;  %v6080_v28 = vld [vmem:[%s7765_s30 + $0x50] sm:$0xff]  }
 0xa08   : >> { %v1995_v58 = vpop.xlane.xlu0 %1994 }
 0xa09   : >> { %v1996_v59 = vmul.f32 0.0078125, %v1995_v58 }
 0xa0b   : >> { %v1997_v60 = vadd.f32 1e-05, %v1996_v59 }
 0xa0d   : >> { %6102 = vrsqrt.f32 %v1997_v60 }
 0xa1a   : >> { %v6103_v1 = vpop.eup %6102 }
 0xa1b   : >> { %v1999_v2 = vmul.f32 %v6103_v1, %v1992_v27  ;;  %v6079_v27 = vld [vmem:[%s7765_s30 + $0x98] sm:$0xff]  }
 0xa1d   : >> { %v2004_v4 = vmul.f32 %v2003_v63, %v1999_v2 }
 0xa1f   : >> { %v2009_v5 = vadd.f32 %v2008_v3, %v2004_v4 }
 0xa21   : >> { %v2010_v6 = vpack.c.bf16 %v2009_v5, %v2009_v5 }
 0xa23   : >> { %2225 = vmatmul.mubr.bf16.vlgmr.msra.gmra.mxu1 %v2010_v6  ;;  %2266 = vmatmul.mubr.bf16.vlgmr.msra.gmra.mxu0 %v2010_v6 }
 0xa24   : >> { %5304 = vmatpush3.bf16.msra.mxu1 %v6062_v9  ;;  %5326 = vmatpush3.bf16.msra.mxu0 %v6063_v19 }
 0xa25   : >> { %5305 = vmatprep.subr.bf16.mxu1 %v6064_v11  ;;  %5327 = vmatprep.subr.bf16.mxu0 %v6065_v12 }
 0xa28   : >> { %5306 = vmatpush3.bf16.msra.mxu1 %v6066_v13  ;;  %5328 = vmatpush3.bf16.msra.mxu0 %v6067_v15 }
 0xa29   : >> { %5307 = vmatprep.subr.bf16.mxu1 %v6068_v17  ;;  %5329 = vmatprep.subr.bf16.mxu0 %v6069_v40 }
 0xa2c   : >> { %5308 = vmatpush3.bf16.msra.mxu1 %v6070_v16  ;;  %5330 = vmatpush3.bf16.msra.mxu0 %v6071_v18 }
 0xa2d   : >> { %5309 = vmatprep.subr.bf16.mxu1 %v6072_v20  ;;  %5331 = vmatprep.subr.bf16.mxu0 %v6073_v21 }
 0xa30   : >> { %5310 = vmatpush3.bf16.msra.mxu1 %v6074_v22  ;;  %5332 = vmatpush3.bf16.msra.mxu0 %v6075_v23 }
 0xa31   : >> { %5311 = vmatprep.subr.bf16.mxu1 %v6076_v24  ;;  %5333 = vmatprep.subr.bf16.mxu0 %v6077_v25 }
 0xa34   : >> { %5312 = vmatpush3.bf16.msra.mxu1 %v6078_v26  ;;  %5334 = vmatpush3.bf16.msra.mxu0 %v6079_v27 }
 0xa35   : >> { %5313 = vmatprep.subr.bf16.mxu1 %v6080_v28  ;;  %5335 = vmatprep.subr.bf16.mxu0 %v6081_v29 }
 0xa38   : >> { %5314 = vmatpush3.bf16.msra.mxu1 %v6082_v30  ;;  %5336 = vmatpush3.bf16.msra.mxu0 %v6083_v31 }
 0xa39   : >> { %5315 = vmatprep.subr.bf16.mxu1 %v6084_v32  ;;  %5337 = vmatprep.subr.bf16.mxu0 %v6085_v33 }
 0xa3c   : >> { %5316 = vmatpush3.bf16.msra.mxu1 %v6086_v34  ;;  %5338 = vmatpush3.bf16.msra.mxu0 %v6087_v35 }
 0xa3d   : >> { %5317 = vmatprep.subr.bf16.mxu1 %v6088_v36  ;;  %5339 = vmatprep.subr.bf16.mxu0 %v6089_v37 }
 0xa40   : >> { %5318 = vmatpush3.bf16.msra.mxu1 %v6090_v38  ;;  %5340 = vmatpush3.bf16.msra.mxu0 %v6091_v39 }
 0xa41   : > { %5537 = vmatprep.subr.bf16.mxu0 (%p1268_p0), %v7050_v0  ;;  %5557 = vmatprep.subr.bf16.mxu1 (%p1268_p0), %v7050_v0 }
 0xae3   : >> { %v2226_v46 = vpop.f32.mrf.mxu1  ;;  %v2267_v47 = vpop.f32.mrf.mxu0 }
 0xae4   : >> { %v2227_v48 = vadd.f32 %v2226_v46, %v2015_v42  ;;  %v2268_v49 = vadd.f32 %v2267_v47, %v2023_v43  ;;  %v2316_v43 = vsub.s32 5, %v7687_v53 }
 0xae5   : >> { %v2228_v50 = vpop.f32.mrf.mxu1  ;;  %v2269_v51 = vpop.f32.mrf.mxu0 }
 0xae6   : >> { %v2278_v52 = vmul.f32 0.044715, %v2227_v48  ;;  %v2280_v57 = vmul.f32 0.044715, %v2268_v49  ;;  %v2229_v58 = vadd.f32 %v2228_v50, %v2019_v44  ;;  %v2270_v59 = vadd.f32 %v2269_v51, %v2027_v45 }
 0xae7   : >> { %v2230_v60 = vpop.f32.mrf.mxu1  ;;  %v2271_v63 = vpop.f32.mrf.mxu0  ;;  %v2274_v26 = vmul.f32 0.5, %v2227_v48  ;;  %v2276_v31 = vmul.f32 0.5, %v2268_v49  ;;  %v2317_v46 = vrot.slane %v7695_v55, %v2316_v43  ;;  %v6112_v55 = vld [vmem:[%s8423_s11 + $0x38] sm:$0xff] (%p1268_p0)  }
 0xae8   : >> { %v2282_v1 = vmul.f32 %v2278_v52, %v2227_v48  ;;  %v2284_v2 = vmul.f32 %v2280_v57, %v2268_v49  ;;  %v2279_v3 = vmul.f32 0.044715, %v2229_v58  ;;  %v2281_v4 = vmul.f32 0.044715, %v2270_v59 }
 0xae9   : >> { %v2231_v5 = vpop.f32.mrf.mxu1  ;;  %v2272_v6 = vpop.f32.mrf.mxu0  ;;  %v2275_v29 = vmul.f32 0.5, %v2229_v58  ;;  %v2277_v32 = vmul.f32 0.5, %v2270_v59 }
 0xaea   : >> { %v2286_v7 = vmul.f32 %v2282_v1, %v2227_v48  ;;  %v2288_v8 = vmul.f32 %v2284_v2, %v2268_v49  ;;  %v2283_v9 = vmul.f32 %v2279_v3, %v2229_v58  ;;  %v2285_v19 = vmul.f32 %v2281_v4, %v2270_v59  ;;  %v6113_v4 = vld [vmem:[%s8423_s11 + $0x30] sm:$0xff] (%p1268_p0)   ;;  %v6114_v5 = vld [vmem:[%s8423_s11 + $0x28] sm:$0xff] (%p1268_p0)   ;;  %v6115_v6 = vld [vmem:[%s8423_s11 + $0x20] sm:$0xff] (%p1268_p0)  }
 0xaec   : >> { %v2290_v11 = vadd.f32 %v2286_v7, %v2227_v48  ;;  %v2292_v12 = vadd.f32 %v2288_v8, %v2268_v49  ;;  %v2287_v13 = vmul.f32 %v2283_v9, %v2229_v58  ;;  %v2289_v15 = vmul.f32 %v2285_v19, %v2270_v59  ;;  %v6116_v7 = vld [vmem:[%s8423_s11 + $0x18] sm:$0xff] (%p1268_p0)   ;;  %v6117_v8 = vld [vmem:[%s8423_s11 + $0x10] sm:$0xff] (%p1268_p0)   ;;  %v6118_v9 = vld [vmem:[%s8423_s11 + $0x8] sm:$0xff] (%p1268_p0)  }
 0xaed   : > { %v6119_v19 = vld [vmem:[%s8423_s11] sm:$0xff] (%p1268_p0)  }
 0xaee   : >> { %v2294_v17 = vmul.f32 0.7978846, %v2290_v11  ;;  %v2296_v40 = vmul.f32 0.7978846, %v2292_v12  ;;  %v2291_v16 = vadd.f32 %v2287_v13, %v2229_v58  ;;  %v2293_v18 = vadd.f32 %v2289_v15, %v2270_v59  ;;  %v6120_v11 = vld [vmem:[#allocation20 + $0x38] sm:$0xff] (%p1268_p0)   ;;  %v6121_v12 = vld [vmem:[#allocation20 + $0x30] sm:$0xff] (%p1268_p0)  }
 0xaef   : > { %v6122_v13 = vld [vmem:[#allocation20 + $0x28] sm:$0xff] (%p1268_p0)   ;;  %v6123_v15 = vld [vmem:[#allocation20 + $0x20] sm:$0xff] (%p1268_p0)  }
 0xaf0   : >> { %v2295_v20 = vmul.f32 0.7978846, %v2291_v16  ;;  %v2297_v21 = vmul.f32 0.7978846, %v2293_v18  ;;  %6104 = vtanh.f32 %v2294_v17  ;;  %v6124_v17 = vld [vmem:[#allocation20 + $0x18] sm:$0xff] (%p1268_p0)  }
 0xaf1   : >> { %6106 = vtanh.f32 %v2296_v40  ;;  %v6125_v40 = vld [vmem:[#allocation20 + $0x10] sm:$0xff] (%p1268_p0)  }
 0xaf2   : >> { %6108 = vtanh.f32 %v2295_v20 }
 0xaf3   : >> { %6110 = vtanh.f32 %v2297_v21 }
 0xafd   : >> { %v6105_v22 = vpop.eup %6104 }
 0xafe   : >> { %v6107_v23 = vpop.eup %6106  ;;  %v2302_v24 = vadd.f32 1.0, %v6105_v22 }
 0xaff   : >> { %v6109_v25 = vpop.eup %6108  ;;  %v2304_v27 = vadd.f32 1.0, %v6107_v23  ;;  %v5103_v23 = vld [vmem:[#allocation11 + $0x1] ss:$0 sm:$0xff] (%p1268_p0) }
 0xb00   : >> { %v6111_v28 = vpop.eup %6110  ;;  %v2303_v30 = vadd.f32 1.0, %v6109_v25  ;;  %v2306_v34 = vmul.f32 %v2302_v24, %v2274_v26  ;;  %v5104_v25 = vld [vmem:[#allocation11 + $0x2] ss:$0 sm:$0xff] (%p1268_p0) }
 0xb01   : >> { %v2305_v33 = vadd.f32 1.0, %v6111_v28  ;;  %v2308_v36 = vmul.f32 %v2304_v27, %v2276_v31 }
 0xb02   : >> { %v2307_v35 = vmul.f32 %v2303_v30, %v2275_v29  ;;  %v2310_v41 = vpack.c.bf16 %v2306_v34, %v2306_v34  ;;  %v6127_v29 = vld [vmem:[#allocation20] sm:$0xff] (%p1268_p0)   ;;  %v5105_v30 = vld [vmem:[#allocation11 + $0x3] ss:$0 sm:$0xff] (%p1268_p0) }
 0xb03   : >> { %v2309_v37 = vmul.f32 %v2305_v33, %v2277_v32  ;;  %v2312_v42 = vpack.c.bf16 %v2308_v36, %v2308_v36 }
 0xb04   : >> { %v2311_v38 = vpack.c.bf16 %v2307_v35, %v2307_v35 }
 0xb05   : >> { %v2313_v39 = vpack.c.bf16 %v2309_v37, %v2309_v37  ;;  %v5114_v37 = vld [vmem:[#allocation22] ss:$0 sm:$0xff] (%p1268_p0) }
 0xb06   : >> { %2542 = vmatprep.mubr.bf16.mxu1 %v2311_v38 }
 0xb07   : >> { %2582 = vmatprep.mubr.bf16.mxu0 %v2313_v39  ;;  %2543 = vmatmul.mubr.bf16.vlgmr.msra.gmra.mxu1 %v2310_v41 }
 0xb08   : >> { %2583 = vmatmul.mubr.bf16.vlgmr.msra.gmra.mxu0 %v2312_v42  ;;  %5573 = vmatprep.mubr.msk.bf16.mxu1 (%p1268_p0), %vm7051_vm0, %v7050_v0 }
 0xb09   : > { %5553 = vmatprep.mubr.msk.bf16.mxu0 (%p1268_p0), %vm7051_vm0, %v7050_v0  ;;  %5538 = vmatpush3.bf16.msra.mxu0 (%p1268_p0), %v6112_v55 }
 0xb0a   : > { %5539 = vmatprep.subr.bf16.mxu0 (%p1268_p0), %v7050_v0  ;;  %5558 = vmatpush3.bf16.msra.mxu1 (%p1268_p0), %v6120_v11 }
 0xb0b   : > { %5559 = vmatprep.subr.bf16.mxu1 (%p1268_p0), %v7050_v0 }
 0xb0d   : > { %5540 = vmatpush3.bf16.msra.mxu0 (%p1268_p0), %v6113_v4  ;;  %v5124_v4 = vld [vmem:[#allocation22 + $0x2] ss:$0 sm:$0xff] (%p1268_p0) }
 0xb0e   : > { %5541 = vmatprep.subr.bf16.mxu0 (%p1268_p0), %v7050_v0  ;;  %5560 = vmatpush3.bf16.msra.mxu1 (%p1268_p0), %v6121_v12 }
 0xb0f   : > { %5561 = vmatprep.subr.bf16.mxu1 (%p1268_p0), %v7050_v0 }
 0xb11   : > { %5542 = vmatpush3.bf16.msra.mxu0 (%p1268_p0), %v6114_v5 }
 0xb12   : > { %5543 = vmatprep.subr.bf16.mxu0 (%p1268_p0), %v7050_v0  ;;  %5562 = vmatpush3.bf16.msra.mxu1 (%p1268_p0), %v6122_v13 }
 0xb13   : > { %5563 = vmatprep.subr.bf16.mxu1 (%p1268_p0), %v7050_v0 }
 0xb15   : > { %5544 = vmatpush3.bf16.msra.mxu0 (%p1268_p0), %v6115_v6 }
 0xb16   : > { %5545 = vmatprep.subr.bf16.mxu0 (%p1268_p0), %v7050_v0  ;;  %5564 = vmatpush3.bf16.msra.mxu1 (%p1268_p0), %v6123_v15 }
 0xb17   : > { %5565 = vmatprep.subr.bf16.mxu1 (%p1268_p0), %v7050_v0 }
 0xb19   : > { %5546 = vmatpush3.bf16.msra.mxu0 (%p1268_p0), %v6116_v7 }
 0xb1a   : > { %5547 = vmatprep.subr.bf16.mxu0 (%p1268_p0), %v7050_v0  ;;  %5566 = vmatpush3.bf16.msra.mxu1 (%p1268_p0), %v6124_v17  ;;  %v5134_v17 = vld [vmem:[#allocation25] ss:$0 sm:$0xff] (%p1268_p0) }
 0xb1b   : > { %5567 = vmatprep.subr.bf16.mxu1 (%p1268_p0), %v7050_v0 }
 0xb1d   : > { %5548 = vmatpush3.bf16.msra.mxu0 (%p1268_p0), %v6117_v8 }
 0xb1e   : > { %5549 = vmatprep.subr.bf16.mxu0 (%p1268_p0), %v7050_v0  ;;  %5568 = vmatpush3.bf16.msra.mxu1 (%p1268_p0), %v6125_v40  ;;  %v2974_v40 = vld [vmem:[%s999_s21] sm:$0xff] (%p1268_p0) }
 0xb1f   : > { %5569 = vmatprep.subr.bf16.mxu1 (%p1268_p0), %v7050_v0 }
 0xb21   : > { %5550 = vmatpush3.bf16.msra.mxu0 (%p1268_p0), %v6118_v9 }
 0xb22   : > { %5551 = vmatprep.subr.bf16.mxu0 (%p1268_p0), %v7050_v0 }
 0xb25   : > { %5552 = vmatpush3.bf16.msra.mxu0 (%p1268_p0), %v6119_v19 }
 0xb26   : > { %5577 = vmatprep.subr.bf16.mxu0 (%p1268_p0), %v7050_v0 }
 0xbc7   : >> { %v5319_v44 = vpop.f32.mrf.mxu1 }
 0xbc8   : >> { %v5341_v45 = vpop.f32.mrf.mxu0 }
 0xbc9   : >> { %v5320_v47 = vpop.f32.mrf.mxu1 }
 0xbca   : >> { %v5321_v48 = vadd.f32 %v5320_v47, %v5319_v44  ;;  %v5342_v49 = vpop.f32.mrf.mxu0 }
 0xbcb   : >> { %v5322_v50 = vpop.f32.mrf.mxu1  ;;  %v5343_v52 = vadd.f32 %v5342_v49, %v5341_v45  ;;  %v6128_v49 = vld [vmem:[#allocation23 + $0x38] sm:$0xff] (%p1268_p0)  }
 0xbcc   : >> { %v2545_v51 = vadd.f32 %v5321_v48, %v2317_v46  ;;  %v5344_v57 = vpop.f32.mrf.mxu0  ;;  %v6129_v50 = vld [vmem:[#allocation23 + $0x30] sm:$0xff] (%p1268_p0)  }
 0xbcd   : >> { %v5323_v58 = vpop.f32.mrf.mxu1  ;;  %v6132_v57 = vld [vmem:[#allocation23 + $0x18] sm:$0xff] (%p1268_p0)  }
 0xbce   : >> { %v2585_v59 = vadd.f32 %v5343_v52, %v2545_v51  ;;  %v5345_v60 = vpop.f32.mrf.mxu0  ;;  %1270 = sbr.rel (!%p1268_p0) target bundleno = 644 (0x284), region = 309  ;;  %v6130_v51 = vld [vmem:[#allocation23 + $0x28] sm:$0xff] (%p1268_p0)   ;;  %v6131_v52 = vld [vmem:[#allocation23 + $0x20] sm:$0xff] (%p1268_p0)   ;;  %v6133_v58 = vld [vmem:[#allocation23 + $0x10] sm:$0xff] (%p1268_p0)  }
 0xbcf   : > { %v6135_v60 = vld [vmem:[#allocation23] sm:$0xff] (%p1268_p0)  }
 0xbd0   : >> { %v2590_v63 = vadd.f32 %v2585_v59, %v7751_v14   ;;  %v6134_v59 = vld [vmem:[#allocation23 + $0x8] sm:$0xff] (%p1268_p0)  }
 0xbd2   : >> { %v8422_v16 = vmov %v2590_v63  ;;  %2593 = vadd.xlane.f32.xlu0 (%p1268_p0), %v2590_v63 }
 0xbd3   : > { %v6126_v16 = vld [vmem:[#allocation20 + $0x8] sm:$0xff]  }
 0xbd4   : > { %5570 = vmatpush3.bf16.msra.mxu1 %v6126_v16  ;;  %v2979_v16 = vadd.f32 %v5134_v17, %v2974_v40  }
 0xbd5   : > { %5571 = vmatprep.subr.bf16.mxu1 %v7050_v0 }
 0xbd8   : > { %5572 = vmatpush3.bf16.msra.mxu1 %v6127_v29 }
 0xc5b   : > { %v2594_v14 = vpop.xlane.xlu0 %2593 }
 0xc5c   : > { %v2596_v1 = vmul.f32 0.0078125, %v2594_v14 }
 0xc5e   : > { %v2597_v2 = vsub.f32 %v2590_v63, %v2596_v1 }
 0xc60   : > { %v2598_v3 = vmul.f32 %v2597_v2, %v2597_v2 }
 0xc62   : > { %2599 = vadd.xlane.f32.xlu0 %v2598_v3 }
 0xceb   : > { %v2600_v18 = vpop.xlane.xlu0 %2599 }
 0xcec   : > { %v2601_v20 = vmul.f32 0.0078125, %v2600_v18  ;;  %v2884_v18 = vld [vmem:[%s990_s13] sm:$0xff] }
 0xcee   : > { %v2602_v21 = vadd.f32 1e-05, %v2601_v20 }
 0xcf0   : > { %6136 = vrsqrt.f32 %v2602_v21 }
 0xcfd   : > { %v6137_v22 = vpop.eup %6136 }
 0xcfe   : > { %v2604_v24 = vmul.f32 %v6137_v22, %v2597_v2  ;;  %v5123_v2 = vld [vmem:[#allocation22 + $0x1] ss:$0 sm:$0xff] }
 0xd00   : > { %v2609_v26 = vmul.f32 %v5103_v23, %v2604_v24 }
 0xd02   : > { %v2614_v27 = vadd.f32 %v5104_v25, %v2609_v26 }
 0xd04   : > { %v2615_v28 = vpack.c.bf16 %v2614_v27, %v2614_v27 }
 0xd06   : > { %5554 = vmatmul.mubr.bf16.vlgmr.msra.gmra.mxu0 %v2615_v28 }
 0xd07   : > { %5593 = vmatprep.mubr.msk.bf16.mxu0 %vm7051_vm0, %v7050_v0  ;;  %5578 = vmatpush3.bf16.msra.mxu0 %v6128_v49 }
 0xd08   : > { %5579 = vmatprep.subr.bf16.mxu0 %v7050_v0 }
 0xd0b   : > { %5580 = vmatpush3.bf16.msra.mxu0 %v6129_v50 }
 0xd0c   : > { %5581 = vmatprep.subr.bf16.mxu0 %v7050_v0 }
 0xd0f   : > { %5582 = vmatpush3.bf16.msra.mxu0 %v6130_v51 }
 0xd10   : > { %5583 = vmatprep.subr.bf16.mxu0 %v7050_v0 }
 0xd13   : > { %5584 = vmatpush3.bf16.msra.mxu0 %v6131_v52 }
 0xd14   : > { %5585 = vmatprep.subr.bf16.mxu0 %v7050_v0 }
 0xd17   : > { %5586 = vmatpush3.bf16.msra.mxu0 %v6132_v57 }
 0xd18   : > { %5587 = vmatprep.subr.bf16.mxu0 %v7050_v0 }
 0xd1b   : > { %5588 = vmatpush3.bf16.msra.mxu0 %v6133_v58 }
 0xd1c   : > { %5589 = vmatprep.subr.bf16.mxu0 %v7050_v0 }
 0xd1f   : > { %5590 = vmatpush3.bf16.msra.mxu0 %v6134_v59 }
 0xd20   : > { %5591 = vmatprep.subr.bf16.mxu0 %v7050_v0 }
 0xd23   : > { %5592 = vmatpush3.bf16.msra.mxu0 %v6135_v60 }
 0xdc6   : > { %v2719_v31 = vpop.f32.mrf.mxu0 }
 0xdc7   : > { %v2720_v32 = vadd.f32 %v5105_v30, %v2719_v31 }
 0xdc8   : > { %v5555_v33 = vpop.f32.mrf.mxu0 }
 0xdc9   : > { %v2725_v34 = vpack.c.bf16 %v2720_v32, %v2720_v32 }
 0xdca   : > { %v2722_v35 = vpop.f32.mrf.mxu0 }
 0xdcb   : > { %5574 = vmatmul.mubr.bf16.vlgmr.msra.gmra.mxu1 %v2725_v34 }
 0xdcc   : > { %v5556_v36 = vpop.f32.mrf.mxu0 }
 0xe8b   : > { %v2829_v38 = vpop.f32.mrf.mxu1 }
 0xe8c   : > { %v2830_v39 = vadd.f32 %v5114_v37, %v2829_v38 }
 0xe8d   : > { %v5575_v41 = vpop.f32.mrf.mxu1 }
 0xe8e   : > { %2837 = vadd.xlane.f32.xlu1 %v2830_v39 }
 0xe8f   : > { %v2832_v42 = vpop.f32.mrf.mxu1 }
 0xe91   : > { %v5576_v44 = vpop.f32.mrf.mxu1 }
 0xf17   : > { %v2838_v45 = vpop.xlane.xlu1 %2837 }
 0xf18   : > { %v2839_v46 = vmul.f32 0.0078125, %v2838_v45 }
 0xf1a   : > { %v2840_v47 = vsub.f32 %v2830_v39, %v2839_v46 }
 0xf1c   : > { %v2841_v48 = vmul.f32 %v2840_v47, %v2840_v47 }
 0xf1e   : > { %2842 = vadd.xlane.f32.xlu1 %v2841_v48 }
 0xfa7   : > { %v2843_v63 = vpop.xlane.xlu1 %2842 }
 0xfa8   : > { %v2844_v55 = vmul.f32 0.0078125, %v2843_v63 }
 0xfaa   : > { %v2845_v14 = vadd.f32 1e-05, %v2844_v55 }
 0xfac   : > { %6138 = vrsqrt.f32 %v2845_v14 }
 0xfb9   : > { %v6139_v1 = vpop.eup %6138 }
 0xfba   : > { %v2847_v3 = vmul.f32 %v6139_v1, %v2840_v47 }
 0xfbc   : > { %v2852_v5 = vmul.f32 %v5123_v2, %v2847_v3 }
 0xfbe   : > { %v2857_v6 = vadd.f32 %v5124_v4, %v2852_v5 }
 0xfc0   : > { %v2858_v7 = vadd.f32 1.0, %v2857_v6 }
 0xfc2   : > { %v2859_v8 = vmul.f32 0.5, %v2858_v7 }
 0xfc4   : > { %v2860_v9 = vmax.f32 %v2859_v8, 0.0 }
 0xfc6   : > { %v2861_v19 = vmin.f32 %v2860_v9, 1.0 }
 0xfc8   : > { %vm2862_vm5 = vcmp.gt.f32.partialorder %v2861_v19, 0.5 }
 0xfc9   : > { %v2863_v11 = vsel %vm2862_vm5, 1.0, %v7050_v0 }
 0xfca   : > { %v2864_v12 = vmul.f32 2.0, %v2863_v11 }
 0xfcc   : > { %v5125_v13 = vadd.f32 -1.0, %v2864_v12 }
 0xfce   : > { %2866 = vst [vmem:[%s1151_s18] sm:$0xff] %v5125_v13  ;;  %v2867_v15 = vpack.c.bf16 %v5125_v13, %v5125_v13 }
 0xfd0   : > { %5594 = vmatmul.mubr.bf16.vlgmr.msra.gmra.mxu0 %v2867_v15 }
0x1090   : > { %v2967_v20 = vpop.f32.mrf.mxu0 }
0x1091   : > { %v2968_v21 = vadd.f32 %v2967_v20, %v2884_v18  }
0x1092   : > { %v5595_v22 = vpop.f32.mrf.mxu0 }
0x1094   : > { %v2970_v23 = vpop.f32.mrf.mxu0 }
0x1096   : > { %v5596_v24 = vpop.f32.mrf.mxu0 }
0x1097 LB: >> { %3149 = vadd.xlane.f32.xlu0 %v7018_v21  ;;  %v7056_v25 = vmov 0.0   ;;  %s5264_s13 = smul.u32 192, %s7022_s10  ;;  %v7057_v52 = vmov 0   ;;  %vm7058_vm6 = vmmov 0   ;;  %s5135_s2 = sshll.u32 %s7022_s10, 3  ;;  %vm3504_vm7 = vcmask 130048   ;;  %s7022_s10 = sphi %s7913_s10, %s2985_s10   ;;  %v7018_v21 = vphi %v2968_v21, %v4403_v21   ;;  %v7014_v16 = vphi %v2979_v16, %v8426_v16  }
0x1098   : >> { %5597 = vmatprep.subr.bf16.mxu1 %v7056_v25  ;;  %3344 = vmatprep.mubr.bf16.mxu0 %v7057_v52  ;;  %s8424_s1 = sld [smem:[#allocation75_spill]]  ;;  %s7059_s29 = smov 64  }
0x1099   : >> { %s7928_s21 = scalar_lea.vmem [#allocation28], %s5264_s13  ;;  %5613 = vmatprep.mubr.msk.bf16.mxu1 %vm7058_vm6, %v7056_v25  ;;  %s5265_s9 = sshll.u32 %s7022_s10, 6 }
0x109a   : >> { %v6145_v26 = vld [vmem:[%s7928_s21 + $0xac] ss:$12 sps:$4 sm:$0xff]   ;;  %v6147_v27 = vld [vmem:[%s7928_s21 + $0xa8] ss:$12 sps:$4 sm:$0xff]   ;;  %v6148_v28 = vld [vmem:[%s7928_s21 + $0xb0] ss:$12 sps:$4 sm:$0xff]  }
0x109b   : >> { %3151 = vadd.xlane.f32.xlu0 %v7014_v16  ;;  %3312 = vmatprep.subr.bf16.mxu0 %v6145_v26  ;;  %v6149_v37 = vld [vmem:[%s7928_s21 + $0x94] ss:$12 sps:$4 sm:$0xff]   ;;  %v6151_v38 = vld [vmem:[%s7928_s21 + $0x90] ss:$12 sps:$4 sm:$0xff]   ;;  %v6152_v39 = vld [vmem:[%s7928_s21 + $0x98] ss:$12 sps:$4 sm:$0xff]  }
0x109c   : >> { %3313 = vmatpush1.bf16.msra.mxu0 %v6147_v27  ;;  %5598 = vmatpush3.bf16.msra.mxu1 %v6148_v28  ;;  %v6153_v41 = vld [vmem:[%s7928_s21 + $0x7c] ss:$12 sps:$4 sm:$0xff]   ;;  %v6155_v42 = vld [vmem:[%s7928_s21 + $0x78] ss:$12 sps:$4 sm:$0xff]   ;;  %v6156_v44 = vld [vmem:[%s7928_s21 + $0x80] ss:$12 sps:$4 sm:$0xff]  }
0x109d   : >> { %5599 = vmatprep.subr.bf16.mxu1 %v7056_v25  ;;  %3314 = vmatprep.subr.bf16.mxu0 %v6149_v37  ;;  %v6157_v45 = vld [vmem:[%s7928_s21 + $0x64] ss:$12 sps:$4 sm:$0xff]   ;;  %v6159_v46 = vld [vmem:[%s7928_s21 + $0x60] ss:$12 sps:$4 sm:$0xff]   ;;  %v6160_v47 = vld [vmem:[%s7928_s21 + $0x68] ss:$12 sps:$4 sm:$0xff]  }
0x109e   : >> { %v6161_v48 = vld [vmem:[%s7928_s21 + $0x4c] ss:$12 sps:$4 sm:$0xff]   ;;  %v6163_v49 = vld [vmem:[%s7928_s21 + $0x48] ss:$12 sps:$4 sm:$0xff]   ;;  %v6164_v50 = vld [vmem:[%s7928_s21 + $0x50] ss:$12 sps:$4 sm:$0xff]   ;;  %s7980_s15 = scalar_lea.vmem %s8424_s1, %s5135_s2 }
0x109f   : >> { %v6165_v51 = vld [vmem:[%s7928_s21 + $0x34] ss:$12 sps:$4 sm:$0xff]   ;;  %v6167_v57 = vld [vmem:[%s7928_s21 + $0x30] ss:$12 sps:$4 sm:$0xff]   ;;  %v6168_v58 = vld [vmem:[%s7928_s21 + $0x38] ss:$12 sps:$4 sm:$0xff]  }
0x10a0   : >> { %3315 = vmatpush1.bf16.msra.mxu0 %v6151_v38  ;;  %5600 = vmatpush3.bf16.msra.mxu1 %v6152_v39  ;;  %v6169_v59 = vld [vmem:[%s7928_s21 + $0x1c] ss:$12 sps:$4 sm:$0xff]   ;;  %v6171_v60 = vld [vmem:[%s7928_s21 + $0x18] ss:$12 sps:$4 sm:$0xff]   ;;  %v6172_v63 = vld [vmem:[%s7928_s21 + $0x20] ss:$12 sps:$4 sm:$0xff]  }
0x10a1   : >> { %5601 = vmatprep.subr.bf16.mxu1 %v7056_v25  ;;  %3316 = vmatprep.subr.bf16.mxu0 %v6153_v41  ;;  %v6173_v55 = vld [vmem:[%s7928_s21 + $0x4] ss:$12 sps:$4 sm:$0xff]   ;;  %v6175_v14 = vld [vmem:[%s7928_s21] ss:$12 sps:$4 sm:$0xff]   ;;  %v6176_v1 = vld [vmem:[%s7928_s21 + $0x8] ss:$12 sps:$4 sm:$0xff]  }
0x10a2   : >> { %v7983_v8 = vld [vmem:[%s7980_s15] sm:$0x3f]  ;;  %s3028_s8 = scalar_lea.vmem [#allocation29], %s5265_s9  ;;  %s5266_s25 = sshll.u32 %s7022_s10, 8 }
0x10a3   : >> { %v3174_v11 = vrot.slane %v7983_v8, %v7693_v54  ;;  %v3180_v17 = vrot.slane %v7983_v8, %v7698_v56  ;;  %s8049_s0 = scalar_lea.vmem [#allocation31], %s5266_s25  ;;  %s8055_s30 = scalar_lea.vmem [#allocation32], %s5266_s25 }
0x10a4   : >> { %3317 = vmatpush1.bf16.msra.mxu0 %v6155_v42  ;;  %5602 = vmatpush3.bf16.msra.mxu1 %v6156_v44  ;;  %s5141_s14 = sshll.u32 %s7022_s10, 2  ;;  %s8425_s13 = sld [smem:[#allocation77_spill]] }
0x10a5   : >> { %5603 = vmatprep.subr.bf16.mxu1 %v7056_v25  ;;  %3318 = vmatprep.subr.bf16.mxu0 %v6157_v45  ;;  %s2985_s10 = sadd.s32 1, %s7022_s10  }
0x10a6   : >> { %p2982_p1 = scmp.ge.s32.totalorder %s2985_s10, 2  }
0x10a7   : > { %v6309_v53 = vld [vmem:[#allocation26 + $0x20] sm:$0xff] (%p2982_p1)   ;;  %s8427_s10 = sld [smem:[#allocation52_spill]] (%p2982_p1)  ;;  %s4573_s9 = sshll.u32 (%p2982_p1), %s1151_s18, 4  ;;  %s4574_s9 = int_to_ptr.vmem [resolvable:$true] %s4573_s9 }
0x10a8   : >> { %3319 = vmatpush1.bf16.msra.mxu0 %v6159_v46  ;;  %5604 = vmatpush3.bf16.msra.mxu1 %v6160_v47  ;;  %s8428_s2 = sld [smem:[#allocation55_spill]] (%p2982_p1)  ;;  %s6844_s25 = scalar_lea.vmem (%p2982_p1), %s4574_s9, 128 }
0x10a9   : >> { %3320 = vmatprep.subr.bf16.mxu0 %v6161_v48  ;;  %5605 = vmatprep.subr.bf16.mxu1 %v7056_v25  ;;  %p6845_p8 = scmp.ne.s32.totalorder (%p2982_p1), %s4574_s9, %s6844_s25 }
0x10aa   : >> { %s3081_s21 = scalar_lea.vmem %s8425_s13, %s5141_s14 }
0x10ac   : >> { %3321 = vmatpush1.bf16.msra.mxu0 %v6163_v49  ;;  %5606 = vmatpush3.bf16.msra.mxu1 %v6164_v50 }
0x10ad   : >> { %3322 = vmatprep.subr.bf16.mxu0 %v6165_v51  ;;  %5607 = vmatprep.subr.bf16.mxu1 %v7056_v25  ;;  %s5256_s27 = sshll.u32 (%p2982_p1), %s8427_s10, 7 }
0x10ae   : > { %p8430_p3 = scmp.ne.s32.totalorder (%p2982_p1), %s8428_s2, 0 }
0x10b0   : >> { %3323 = vmatpush1.bf16.msra.mxu0 %v6167_v57  ;;  %5608 = vmatpush3.bf16.msra.mxu1 %v6168_v58  ;;  %p6846_p4 = pnand (%p2982_p1), %p6845_p8, %p8430_p3 }
0x10b1   : >> { %3324 = vmatprep.subr.bf16.mxu0 %v6169_v59  ;;  %5609 = vmatprep.subr.bf16.mxu1 %v7056_v25 }
0x10b2   : > { %p6847_p13 = pneg (%p2982_p1), %p6846_p4 }
0x10b4   : >> { %3325 = vmatpush1.bf16.msra.mxu0 %v6171_v60  ;;  %5610 = vmatpush3.bf16.msra.mxu1 %v6172_v63 }
0x10b5   : >> { %3326 = vmatprep.subr.bf16.mxu0 %v6173_v55  ;;  %5611 = vmatprep.subr.bf16.mxu1 %v7056_v25 }
0x10b8   : >> { %3327 = vmatpush1.bf16.msra.mxu0 %v6175_v14  ;;  %5612 = vmatpush3.bf16.msra.mxu1 %v6176_v1 }
0x10b9   : >> { %5617 = vmatprep.subr.bf16.mxu1 %v7056_v25  ;;  %5641 = vmatprep.subr.bf16.mxu0 %v7056_v25 }
0x1120   : >> { %v3150_v29 = vpop.xlane.xlu0 %3149 }
0x1121   : >> { %v3153_v30 = vmul.f32 0.0078125, %v3150_v29 }
0x1123   : >> { %v7935_v31 = vsub.f32 %v7018_v21, %v3153_v30 }
0x1124   : >> { %v3152_v32 = vpop.xlane.xlu0 %3151 }
0x1125   : >> { %v3154_v33 = vmul.f32 0.0078125, %v3152_v32  ;;  %v3157_v34 = vmul.f32 %v7935_v31, %v7935_v31 }
0x1127   : >> { %v7940_v35 = vsub.f32 %v7014_v16, %v3154_v33  ;;  %3159 = vadd.xlane.f32.xlu1 %v3157_v34 }
0x1129   : >> { %v3158_v36 = vmul.f32 %v7940_v35, %v7940_v35 }
0x112b   : >> { %3161 = vadd.xlane.f32.xlu1 %v3158_v36 }
0x11b0   : >> { %v3160_v2 = vpop.xlane.xlu1 %3159 }
0x11b1   : >> { %v3163_v3 = vmul.f32 0.0078125, %v3160_v2 }
0x11b3   : >> { %v3165_v4 = vadd.f32 1e-05, %v3163_v3 }
0x11b4   : >> { %v3162_v5 = vpop.xlane.xlu1 %3161 }
0x11b5   : >> { %6265 = vrsqrt.f32 %v3165_v4  ;;  %v3164_v6 = vmul.f32 0.0078125, %v3162_v5 }
0x11b7   : >> { %v3166_v7 = vadd.f32 1e-05, %v3164_v6 }
0x11b9   : >> { %6267 = vrsqrt.f32 %v3166_v7 }
0x11c2   : >> { %v6266_v9 = vpop.eup %6265 }
0x11c3   : >> { %v3169_v19 = vmul.f32 %v6266_v9, %v7935_v31 }
0x11c5   : >> { %v3175_v15 = vmul.f32 %v3174_v11, %v3169_v19 }
0x11c6   : >> { %v6268_v12 = vpop.eup %6267 }
0x11c7   : >> { %v3170_v13 = vmul.f32 %v6268_v12, %v7940_v35  ;;  %v3181_v18 = vadd.f32 %v3180_v17, %v3175_v15 }
0x11c9   : >> { %v3176_v40 = vmul.f32 %v3174_v11, %v3170_v13 }
0x11cb   : >> { %v3182_v20 = vadd.f32 %v3180_v17, %v3176_v40 }
0x11cd   : >> { %v3183_v22 = vpack.c.bf16 %v3182_v20, %v3181_v18 }
0x11cf   : >> { %3345 = vmatmul.mubr.bf16.vlgmr.msra.gmra.mxu0 %v3183_v22  ;;  %5614 = vmatmul.mubr.bf16.vlgmr.msra.gmra.mxu1 %v3183_v22 }
0x11d0   : >> { %5619 = vmatprep.mubr.msk.bf16.mxu1 %vm7058_vm6, %v7056_v25  ;;  %5657 = vmatprep.mubr.msk.bf16.mxu0 %vm7058_vm6, %v7056_v25 }
0x128f   : >> { %v3346_v23 = vpop.f32.mrf.mxu0  ;;  %v3389_v24 = vpop.f32.mrf.mxu1 }
0x1291   : >> { %v3348_v26 = vpop.f32.mrf.mxu0  ;;  %v5615_v27 = vpop.f32.mrf.mxu1 }
0x1293   : >> { %v3350_v28 = vpop.f32.mrf.mxu0  ;;  %v3392_v29 = vpop.f32.mrf.mxu1 }
0x1294   : >> { %v3396_v30 = vpack.c.bf16 %v3350_v28, %v3346_v23  ;;  %v7995_v31 = vpack.c.bf16 %v3392_v29, %v3389_v24 }
0x1295   : >> { %v3352_v32 = vpop.f32.mrf.mxu0  ;;  %v5616_v33 = vpop.f32.mrf.mxu1 }
0x1296   : >> { %v3397_v34 = vpack.c.bf16 %v3352_v32, %v3348_v26  ;;  %3400 = vrot.lane.b32.xlu1 %v3396_v30, %s7059_s29 }
0x1298   : >> { %v3414_v35 = vsel %vm1678_vm2, %v3397_v34, 0  ;;  %3403 = vrot.lane.b32.xlu0 %v3397_v34, %s7059_s29 }
0x1299   : >> { %5618 = vmatpush3.bf16.xpose.msra.mxu1 %v3414_v35  ;;  %v6177_v35 = vld [vmem:[%s3028_s8 + $0x38] sm:$0xff]  }
0x129a   : >> { %5623 = vmatprep.subr.bf16.mxu1 %v7056_v25  ;;  %5642 = vmatpush3.bf16.msra.mxu0 %v6177_v35  ;;  %v6208_v35 = vld [vmem:[%s8049_s0 + $0x8c] ss:$16 sps:$4 sm:$0xff]  }
0x129b   : >> { %5643 = vmatprep.subr.bf16.mxu0 %v7056_v25 }
0x12a0   : >> { %5620 = vmatmul.mubr.msk.bf16.vlgmr.msra.gmra.mxu1 %vm1678_vm2, %v3396_v30 }
0x12a1   : >> { %5625 = vmatprep.mubr.msk.bf16.mxu1 %vm7058_vm6, %v7056_v25 }
0x1308   : >> { %v3401_v38 = vpop.permute.xlu1 %3400 }
0x130a   : >> { %v3404_v36 = vpop.permute.xlu0 %3403 }
0x130b   : >> { %v3461_v37 = vsel %vm1678_vm2, %v3404_v36, 0  ;;  %v6178_v36 = vld [vmem:[%s3028_s8 + $0x30] sm:$0xff]  }
0x130c   : >> { %5624 = vmatpush3.bf16.xpose.msra.mxu1 %v3461_v37  ;;  %5644 = vmatpush3.bf16.msra.mxu0 %v6178_v36  ;;  %v6211_v36 = vld [vmem:[%s8049_s0 + $0x64] ss:$16 sps:$4 sm:$0xff]  }
0x130d   : >> { %5629 = vmatprep.subr.bf16.mxu1 %v7056_v25  ;;  %5645 = vmatprep.subr.bf16.mxu0 %v7056_v25 }
0x1313   : >> { %5626 = vmatmul.mubr.msk.bf16.vlgmr.msra.gmra.mxu1 %vm1678_vm2, %v3401_v38 }
0x1314   : >> { %5630 = vmatpush3.bf16.msra.mxu1 %v7995_v31  ;;  %5631 = vmatprep.mubr.msk.bf16.mxu1 %vm7058_vm6, %v7056_v25 }
0x1315   : >> { %5635 = vmatprep.subr.bf16.mxu1 %v7056_v25 }
0x1360   : >> { %v3450_v39 = vpop.f32.mrf.mxu1 }
0x1361   : >> { %v3505_v41 = vsel %vm3504_vm7, %v3450_v39, -inf }
0x1362   : >> { %3506 = vmax.xlane.f32.xlu1 %v3505_v41  ;;  %v5621_v42 = vpop.f32.mrf.mxu1 }
0x1364   : >> { %v3453_v44 = vpop.f32.mrf.mxu1 }
0x1365   : >> { %v3508_v45 = vsel %vm3504_vm7, %v3453_v44, -inf }
0x1366   : >> { %3509 = vmax.xlane.f32.xlu0 %v3508_v45  ;;  %v5622_v46 = vpop.f32.mrf.mxu1  ;;  %v6181_v45 = vld [vmem:[%s3028_s8 + $0x18] sm:$0xff]  }
0x1367   : >> { %v6182_v46 = vld [vmem:[%s3028_s8 + $0x10] sm:$0xff]  }
0x13d3   : >> { %v3497_v47 = vpop.f32.mrf.mxu1 }
0x13d4   : >> { %v3511_v48 = vsel %vm3504_vm7, %v3497_v47, -inf }
0x13d5   : >> { %3512 = vmax.xlane.f32.xlu0 %v3511_v48  ;;  %v5627_v49 = vpop.f32.mrf.mxu1  ;;  %v6184_v48 = vld [vmem:[%s3028_s8] sm:$0xff]  }
0x13d7   : >> { %v3500_v50 = vpop.f32.mrf.mxu1 }
0x13d8   : >> { %v3514_v51 = vsel %vm3504_vm7, %v3500_v50, -inf }
0x13d9   : >> { %3515 = vmax.xlane.f32.xlu1 %v3514_v51  ;;  %v5628_v57 = vpop.f32.mrf.mxu1 }
0x13eb   : >> { %v3507_v58 = vpop.xlane.xlu1 %3506 }
0x13ec   : >> { %v3517_v59 = vsub.f32 %v3450_v39, %v3507_v58  ;;  %v6179_v39 = vld [vmem:[%s3028_s8 + $0x28] sm:$0xff]  }
0x13ed   : >> { %5646 = vmatpush3.bf16.msra.mxu0 %v6179_v39  ;;  %v6212_v39 = vld [vmem:[%s8049_s0 + $0x68] ss:$16 sps:$4 sm:$0xff]  }
0x13ee   : >> { %v3521_v60 = vmul.f32 1.442695, %v3517_v59  ;;  %5647 = vmatprep.subr.bf16.mxu0 %v7056_v25 }
0x13ef   : >> { %v3510_v63 = vpop.xlane.xlu0 %3509 }
0x13f0   : >> { %6269 = vpow2.f32 %v3521_v60  ;;  %v3518_v55 = vsub.f32 %v3453_v44, %v3510_v63  ;;  %v6180_v44 = vld [vmem:[%s3028_s8 + $0x20] sm:$0xff]  }
0x13f1   : >> { %5648 = vmatpush3.bf16.msra.mxu0 %v6180_v44  ;;  %v6215_v44 = vld [vmem:[%s8049_s0 + $0x40] ss:$16 sps:$4 sm:$0xff]  }
0x13f2   : >> { %v3523_v14 = vmul.f32 1.442695, %v3518_v55  ;;  %5649 = vmatprep.subr.bf16.mxu0 %v7056_v25 }
0x13f4   : >> { %6271 = vpow2.f32 %v3523_v14 }
0x13f5   : >> { %5650 = vmatpush3.bf16.msra.mxu0 %v6181_v45  ;;  %v6218_v45 = vld [vmem:[%s8049_s0 + $0x48] ss:$16 sps:$4 sm:$0xff]  }
0x13f6   : >> { %5651 = vmatprep.subr.bf16.mxu0 %v7056_v25 }
0x13f9   : >> { %5652 = vmatpush3.bf16.msra.mxu0 %v6182_v46  ;;  %v6223_v46 = vld [vmem:[%s8049_s0 + $0x24] ss:$16 sps:$4 sm:$0xff]  }
0x13fa   : >> { %5653 = vmatprep.subr.bf16.mxu0 %v7056_v25 }
0x13fd   : >> { %v6270_v1 = vpop.eup %6269 }
0x13fe   : >> { %v3529_v2 = vsel %vm3504_vm7, %v6270_v1, 0.0 }
0x13ff   : >> { %3530 = vadd.xlane.f32.xlu0 %v3529_v2 }
0x1401   : >> { %v6272_v3 = vpop.eup %6271 }
0x1402   : >> { %v3532_v4 = vsel %vm3504_vm7, %v6272_v3, 0.0 }
0x1403   : >> { %3533 = vadd.xlane.f32.xlu1 %v3532_v4 }
0x145e   : >> { %v3513_v5 = vpop.xlane.xlu0 %3512 }
0x145f   : >> { %v3519_v6 = vsub.f32 %v3497_v47, %v3513_v5  ;;  %v6183_v47 = vld [vmem:[%s3028_s8 + $0x8] sm:$0xff]   ;;  %s4547_s8 = scalar_lea.sflag (%p2982_p1), [#allocation36], %s7555_s19 }
0x1460   : >> { %5654 = vmatpush3.bf16.msra.mxu0 %v6183_v47  ;;  %v6226_v47 = vld [vmem:[%s8049_s0 + $0x2c] ss:$16 sps:$4 sm:$0xff]  }
0x1461   : >> { %v3525_v7 = vmul.f32 1.442695, %v3519_v6  ;;  %5655 = vmatprep.subr.bf16.mxu0 %v7056_v25 }
0x1462   : >> { %v3516_v9 = vpop.xlane.xlu1 %3515 }
0x1463   : >> { %6273 = vpow2.f32 %v3525_v7  ;;  %v3520_v19 = vsub.f32 %v3500_v50, %v3516_v9 }
0x1464   : >> { %5656 = vmatpush3.bf16.msra.mxu0 %v6184_v48  ;;  %v6221_v48 = vld [vmem:[%s8049_s0 + $0x20] ss:$16 sps:$4 sm:$0xff]  }
0x1465   : >> { %v3527_v11 = vmul.f32 1.442695, %v3520_v19 }
0x1467   : >> { %6275 = vpow2.f32 %v3527_v11  ;;  %v6188_v11 = vld [vmem:[%s8049_s0 + $0xe8] ss:$16 sps:$4 sm:$0xff]  }
0x1470   : >> { %v6274_v12 = vpop.eup %6273 }
0x1471   : >> { %v3535_v13 = vsel %vm3504_vm7, %v6274_v12, 0.0 }
0x1472   : >> { %3536 = vadd.xlane.f32.xlu0 %v3535_v13 }
0x1474   : >> { %v6276_v15 = vpop.eup %6275 }
0x1475   : >> { %v3538_v17 = vsel %vm3504_vm7, %v6276_v15, 0.0 }
0x1476   : >> { %3539 = vadd.xlane.f32.xlu1 %v3538_v17 }
0x1488   : >> { %3406 = vrot.lane.b32.xlu0 %v7995_v31, %s7059_s29  ;;  %v3531_v40 = vpop.xlane.xlu0 %3530 }
0x1489   : >> { %6277 = vrcp.f32 %v3531_v40 }
0x148c   : >> { %v3534_v18 = vpop.xlane.xlu1 %3533 }
0x148d   : >> { %6279 = vrcp.f32 %v3534_v18 }
0x1496   : >> { %v6278_v20 = vpop.eup %6277 }
0x1497   : >> { %v3545_v23 = vmul.f32 %v6278_v20, %v6270_v1 }
0x149a   : >> { %v6280_v22 = vpop.eup %6279 }
0x149b   : >> { %v3546_v24 = vmul.f32 %v6280_v22, %v6272_v3 }
0x149d   : >> { %v3549_v26 = vpack.c.bf16 %v3546_v24, %v3545_v23  ;;  %v6193_v23 = vld [vmem:[%s8049_s0 + $0xc4] ss:$16 sps:$4 sm:$0xff]   ;;  %v6196_v24 = vld [vmem:[%s8049_s0 + $0xcc] ss:$16 sps:$4 sm:$0xff]  }
0x149f   : >> { %5632 = vmatmul.mubr.msk.bf16.vlgmr.msra.gmra.mxu1 %vm3504_vm7, %v3549_v26  ;;  %v6191_v26 = vld [vmem:[%s8049_s0 + $0xc0] ss:$16 sps:$4 sm:$0xff]  }
0x14a0   : >> { %5637 = vmatprep.mubr.msk.bf16.mxu1 %vm7058_vm6, %v7056_v25  ;;  %v3744_v25 = vrot.slane %v7983_v8, %v7746_v10 }
0x14fb   : >> { %v3537_v27 = vpop.xlane.xlu0 %3536 }
0x14fc   : >> { %6281 = vrcp.f32 %v3537_v27  ;;  %v6194_v27 = vld [vmem:[%s8049_s0 + $0xc8] ss:$16 sps:$4 sm:$0xff]  }
0x14ff   : >> { %v3407_v28 = vpop.permute.xlu0 %3406  ;;  %v3540_v29 = vpop.xlane.xlu1 %3539 }
0x1500   : >> { %6283 = vrcp.f32 %v3540_v29  ;;  %5636 = vmatpush3.bf16.msra.mxu1 %v3407_v28  ;;  %v6199_v28 = vld [vmem:[%s8049_s0 + $0xa4] ss:$16 sps:$4 sm:$0xff]   ;;  %v6202_v29 = vld [vmem:[%s8049_s0 + $0xac] ss:$16 sps:$4 sm:$0xff]  }
0x1509   : >> { %v6282_v30 = vpop.eup %6281 }
0x150a   : >> { %v3547_v32 = vmul.f32 %v6282_v30, %v6274_v12  ;;  %v6190_v12 = vld [vmem:[%s8049_s0 + $0xec] ss:$16 sps:$4 sm:$0xff]   ;;  %v6197_v30 = vld [vmem:[%s8049_s0 + $0xa0] ss:$16 sps:$4 sm:$0xff]  }
0x150b   : >> { %4006 = vmatprep.subr.bf16.mxu0 %v6190_v12 }
0x150d   : >> { %v6284_v31 = vpop.eup %6283 }
0x150e   : >> { %v3548_v33 = vmul.f32 %v6284_v31, %v6276_v15  ;;  %v6200_v31 = vld [vmem:[%s8049_s0 + $0xa8] ss:$16 sps:$4 sm:$0xff]  }
0x1510   : >> { %v3550_v34 = vpack.c.bf16 %v3548_v33, %v3547_v32  ;;  %v6203_v32 = vld [vmem:[%s8049_s0 + $0x80] ss:$16 sps:$4 sm:$0xff]   ;;  %v6205_v33 = vld [vmem:[%s8049_s0 + $0x84] ss:$16 sps:$4 sm:$0xff]  }
0x1512   : >> { %5638 = vmatmul.mubr.msk.bf16.vlgmr.msra.gmra.mxu1 %vm3504_vm7, %v3550_v34  ;;  %v6206_v34 = vld [vmem:[%s8049_s0 + $0x88] ss:$16 sps:$4 sm:$0xff]  }
0x1513   : >> { %3995 = vmatprep.mubr.bf16.mxu1 %v7057_v52 }
0x155f   : >> { %v3588_v37 = vpop.f32.mrf.mxu1 }
0x1561   : >> { %v5633_v38 = vpop.f32.mrf.mxu1 }
0x1562   : >> { %v6209_v38 = vld [vmem:[%s8049_s0 + $0x60] ss:$16 sps:$4 sm:$0xff]  }
0x1563   : >> { %v3591_v41 = vpop.f32.mrf.mxu1 }
0x1565   : >> { %v5634_v42 = vpop.f32.mrf.mxu1 }
0x1566   : >> { %v6220_v42 = vld [vmem:[%s8049_s0 + $0x4c] ss:$16 sps:$4 sm:$0xff]  }
0x15d2   : >> { %v3632_v49 = vpop.f32.mrf.mxu1 }
0x15d4   : >> { %v5639_v50 = vpop.f32.mrf.mxu1 }
0x15d5   : >> { %v6229_v50 = vld [vmem:[%s8049_s0 + $0x4] ss:$16 sps:$4 sm:$0xff]  }
0x15d6   : >> { %v3635_v51 = vpop.f32.mrf.mxu1 }
0x15d7   : >> { %v6140_v57 = vpack.i.bf16 %v3635_v51, %v3632_v49  ;;  %v6224_v49 = vld [vmem:[%s8049_s0 + $0x28] ss:$16 sps:$4 sm:$0xff]   ;;  %v6232_v51 = vld [vmem:[%s8049_s0 + $0xc] ss:$16 sps:$4 sm:$0xff]  }
0x15d8   : >> { %v5640_v58 = vpop.f32.mrf.mxu1 }
0x15d9   : >> { %6141 = vrot.lane.b32.xlu1 %v6140_v57, %s7059_s29  ;;  %v6227_v57 = vld [vmem:[%s8049_s0] ss:$16 sps:$4 sm:$0xff]   ;;  %v6230_v58 = vld [vmem:[%s8049_s0 + $0x8] ss:$16 sps:$4 sm:$0xff]  }
0x164b   : >> { %v6142_v59 = vpop.permute.xlu1 %6141 }
0x164c   : >> { %v6144_v60 = vunpack.i.h.bf16 %v6142_v59  ;;  %v6143_v63 = vunpack.i.l.bf16 %v6142_v59 }
0x164e   : >> { %v3648_v55 = vsel %vm1678_vm2, %v3591_v41, %v6144_v60  ;;  %v3647_v14 = vsel %vm1678_vm2, %v3588_v37, %v6143_v63  ;;  %v6214_v37 = vld [vmem:[%s8049_s0 + $0x6c] ss:$16 sps:$4 sm:$0xff]   ;;  %v6217_v41 = vld [vmem:[%s8049_s0 + $0x44] ss:$16 sps:$4 sm:$0xff]  }
0x164f   : >> { %v3649_v1 = vpack.c.bf16 %v3648_v55, %v3647_v14 }
0x1651   : >> { %5658 = vmatmul.mubr.bf16.vlgmr.msra.gmra.mxu0 %v3649_v1 }
0x1652   : >> { %4038 = vmatprep.mubr.bf16.mxu0 %v7057_v52  ;;  %v6187_v52 = vld [vmem:[%s8049_s0 + $0xe4] ss:$16 sps:$4 sm:$0xff]   ;;  %4007 = vmatpush1.bf16.msra.mxu0 %v6188_v11 }
0x1653   : >> { %3963 = vmatprep.subr.bf16.mxu1 %v6187_v52  ;;  %4008 = vmatprep.subr.bf16.mxu0 %v6196_v24  ;;  %v6243_v24 = vld [vmem:[%s8055_s30 + $0x28] sm:$0xff]  }
0x1656   : >> { %4009 = vmatpush1.bf16.msra.mxu0 %v6194_v27  ;;  %v6245_v27 = vld [vmem:[%s8055_s30 + $0x60] sm:$0xff]  }
0x1657   : >> { %4010 = vmatprep.subr.bf16.mxu0 %v6202_v29  ;;  %v6247_v29 = vld [vmem:[%s8055_s30 + $0x20] sm:$0xff]  }
0x165a   : >> { %4011 = vmatpush1.bf16.msra.mxu0 %v6200_v31  ;;  %v6249_v31 = vld [vmem:[%s8055_s30 + $0x58] sm:$0xff]  }
0x165b   : >> { %4012 = vmatprep.subr.bf16.mxu0 %v6208_v35  ;;  %v6253_v35 = vld [vmem:[%s8055_s30 + $0x50] sm:$0xff]  }
0x165e   : >> { %4013 = vmatpush1.bf16.msra.mxu0 %v6206_v34  ;;  %v6252_v34 = vld [vmem:[%s8055_s30 + $0x98] sm:$0xff]  }
0x165f   : >> { %4014 = vmatprep.subr.bf16.mxu0 %v6214_v37  ;;  %v6255_v37 = vld [vmem:[%s8055_s30 + $0x10] sm:$0xff]  }
0x1662   : >> { %4015 = vmatpush1.bf16.msra.mxu0 %v6212_v39  ;;  %v6257_v39 = vld [vmem:[%s8055_s30 + $0x48] sm:$0xff]  }
0x1663   : >> { %4016 = vmatprep.subr.bf16.mxu0 %v6220_v42  ;;  %v6259_v42 = vld [vmem:[%s8055_s30 + $0x8] sm:$0xff]  }
0x1666   : >> { %4017 = vmatpush1.bf16.msra.mxu0 %v6218_v45  ;;  %v6261_v45 = vld [vmem:[%s8055_s30 + $0x40] sm:$0xff]  }
0x1667   : >> { %4018 = vmatprep.subr.bf16.mxu0 %v6226_v47  ;;  %v6263_v47 = vld [vmem:[%s8055_s30] sm:$0xff]  }
0x166a   : >> { %4019 = vmatpush1.bf16.msra.mxu0 %v6224_v49  ;;  %v3082_v49 = vld [vmem:[%s3081_s21] sm:$0xf] }
0x166b   : >> { %4020 = vmatprep.subr.bf16.mxu0 %v6232_v51  ;;  %v3794_v51 = vrot.slane %v3082_v49, %v7746_v10  ;;  %v6312_v10 = vld [vmem:[#allocation26 + $0x8] sm:$0xff] (%p2982_p1)  }
0x166e   : >> { %4021 = vmatpush1.bf16.msra.mxu0 %v6230_v58  ;;  %v3798_v58 = vrot.slane %v3082_v49, %v7793_v61 }
0x1711   : >> { %v3732_v2 = vpop.f32.mrf.mxu0 }
0x1712   : >> { %v3739_v3 = vadd.f32 %v7018_v21, %v3732_v2  ;;  %v6185_v21 = vld [vmem:[%s8049_s0 + $0xe0] ss:$16 sps:$4 sm:$0xff]   ;;  %s7060_s0 = smov (%p2982_p1), [#allocation35]  }
0x1713   : >> { %v5659_v4 = vpop.f32.mrf.mxu0  ;;  %3964 = vmatpush1.bf16.msra.mxu1 %v6185_v21 }
0x1714   : >> { %v8041_v5 = vadd.f32 %v3744_v25, %v3739_v3  ;;  %3965 = vmatprep.subr.bf16.mxu1 %v6193_v23  ;;  %v3772_v3 = vrot.slane %v7983_v8, %v7793_v61  ;;  %v6242_v23 = vld [vmem:[%s8055_s30 + $0xe8] sm:$0xff]   ;;  %v6313_v61 = vld [vmem:[#allocation26] sm:$0xff] (%p2982_p1)  }
0x1715   : >> { %v3735_v6 = vpop.f32.mrf.mxu0 }
0x1716   : >> { %v3740_v7 = vadd.f32 %v7014_v16, %v3735_v6  ;;  %3747 = vadd.xlane.f32.xlu1 %v8041_v5 }
0x1717   : >> { %v5660_v9 = vpop.f32.mrf.mxu0  ;;  %3966 = vmatpush1.bf16.msra.mxu1 %v6191_v26  ;;  %v6244_v26 = vld [vmem:[%s8055_s30 + $0xa8] sm:$0xff]  }
0x1718   : >> { %v8045_v19 = vadd.f32 %v3744_v25, %v3740_v7  ;;  %3967 = vmatprep.subr.bf16.mxu1 %v6199_v28  ;;  %v3778_v9 = vrot.slane %v7983_v8, %v2007_v62  ;;  %v6237_v8 = vld [vmem:[%s8055_s30 + $0x70] sm:$0xff]   ;;  %v6246_v28 = vld [vmem:[%s8055_s30 + $0xe0] sm:$0xff]  }
0x171a   : >> { %3749 = vadd.xlane.f32.xlu0 %v8045_v19 }
0x171b   : >> { %3968 = vmatpush1.bf16.msra.mxu1 %v6197_v30  ;;  %v6248_v30 = vld [vmem:[%s8055_s30 + $0xa0] sm:$0xff]  }
0x171c   : >> { %3969 = vmatprep.subr.bf16.mxu1 %v6205_v33  ;;  %v6251_v33 = vld [vmem:[%s8055_s30 + $0x18] sm:$0xff]  }
0x171f   : >> { %3970 = vmatpush1.bf16.msra.mxu1 %v6203_v32  ;;  %v6250_v32 = vld [vmem:[%s8055_s30 + $0xd8] sm:$0xff]  }
0x1720   : >> { %3971 = vmatprep.subr.bf16.mxu1 %v6211_v36  ;;  %v6254_v36 = vld [vmem:[%s8055_s30 + $0xd0] sm:$0xff]  }
0x1723   : >> { %3972 = vmatpush1.bf16.msra.mxu1 %v6209_v38  ;;  %v6256_v38 = vld [vmem:[%s8055_s30 + $0x90] sm:$0xff]  }
0x1724   : >> { %3973 = vmatprep.subr.bf16.mxu1 %v6217_v41  ;;  %v6258_v41 = vld [vmem:[%s8055_s30 + $0xc8] sm:$0xff]  }
0x1727   : >> { %3974 = vmatpush1.bf16.msra.mxu1 %v6215_v44  ;;  %v6260_v44 = vld [vmem:[%s8055_s30 + $0x88] sm:$0xff]  }
0x1728   : >> { %3975 = vmatprep.subr.bf16.mxu1 %v6223_v46  ;;  %v6262_v46 = vld [vmem:[%s8055_s30 + $0xc0] sm:$0xff]  }
0x172b   : >> { %3976 = vmatpush1.bf16.msra.mxu1 %v6221_v48  ;;  %v6264_v48 = vld [vmem:[%s8055_s30 + $0x80] sm:$0xff]  }
0x172c   : >> { %3977 = vmatprep.subr.bf16.mxu1 %v6229_v50  ;;  %v3786_v50 = vrot.slane %v3082_v49, %v7693_v54  ;;  %v6310_v54 = vld [vmem:[#allocation26 + $0x18] sm:$0xff] (%p2982_p1)  }
0x172f   : >> { %3978 = vmatpush1.bf16.msra.mxu1 %v6227_v57  ;;  %v3790_v57 = vrot.slane %v3082_v49, %v7698_v56  ;;  %v6311_v56 = vld [vmem:[#allocation26 + $0x10] sm:$0xff] (%p2982_p1)  }
0x179f   : >> { %v3748_v16 = vpop.xlane.xlu1 %3747 }
0x17a0   : >> { %v3751_v13 = vmul.f32 0.0078125, %v3748_v16  ;;  %v6233_v16 = vld [vmem:[%s8055_s30 + $0x78] sm:$0xff]  }
0x17a1   : >> { %5400 = vmatprep.subr.bf16.mxu1 %v6233_v16 }
0x17a2   : >> { %v8058_v15 = vsub.f32 %v8041_v5, %v3751_v13  ;;  %v6234_v13 = vld [vmem:[%s8055_s30 + $0xf8] sm:$0xff]  }
0x17a3   : >> { %v3750_v17 = vpop.xlane.xlu0 %3749  ;;  %5422 = vmatprep.subr.bf16.mxu0 %v6234_v13 }
0x17a4   : >> { %v3752_v40 = vmul.f32 0.0078125, %v3750_v17  ;;  %v3755_v18 = vmul.f32 %v8058_v15, %v8058_v15  ;;  %v6236_v17 = vld [vmem:[%s8055_s30 + $0xb8] sm:$0xff]  }
0x17a6   : >> { %v8063_v20 = vsub.f32 %v8045_v19, %v3752_v40  ;;  %3757 = vadd.xlane.f32.xlu0 %v3755_v18  ;;  %v6238_v40 = vld [vmem:[%s8055_s30 + $0xf0] sm:$0xff]  }
0x17a7   : >> { %v6239_v18 = vld [vmem:[%s8055_s30 + $0x30] sm:$0xff]  }
0x17a8   : >> { %v3756_v22 = vmul.f32 %v8063_v20, %v8063_v20 }
0x17aa   : >> { %3759 = vadd.xlane.f32.xlu1 %v3756_v22  ;;  %v6241_v22 = vld [vmem:[%s8055_s30 + $0x68] sm:$0xff]  }
0x182f   : >> { %v3758_v59 = vpop.xlane.xlu0 %3757 }
0x1830   : >> { %v3761_v60 = vmul.f32 0.0078125, %v3758_v59 }
0x1832   : >> { %v3763_v63 = vadd.f32 1e-05, %v3761_v60 }
0x1833   : >> { %v3760_v55 = vpop.xlane.xlu1 %3759 }
0x1834   : >> { %6285 = vrsqrt.f32 %v3763_v63  ;;  %v3762_v14 = vmul.f32 0.0078125, %v3760_v55 }
0x1836   : >> { %v3764_v1 = vadd.f32 1e-05, %v3762_v14 }
0x1838   : >> { %6287 = vrsqrt.f32 %v3764_v1 }
0x1841   : >> { %v6286_v25 = vpop.eup %6285 }
0x1842   : >> { %v3767_v2 = vmul.f32 %v6286_v25, %v8058_v15  ;;  %v6235_v15 = vld [vmem:[%s8055_s30 + $0x38] sm:$0xff]  }
0x1844   : >> { %v3773_v7 = vmul.f32 %v3772_v3, %v3767_v2 }
0x1845   : >> { %v6288_v4 = vpop.eup %6287 }
0x1846   : >> { %v3768_v6 = vmul.f32 %v6288_v4, %v8063_v20  ;;  %v3779_v52 = vadd.f32 %v3778_v9, %v3773_v7  ;;  %v6240_v20 = vld [vmem:[%s8055_s30 + $0xb0] sm:$0xff]   ;;  %s6848_s30 = sshll.u32 (%p2982_p1), %s7060_s0, 4  ;;  %s6849_s30 = int_to_ptr.vmem [resolvable:$false] %s6848_s30 }
0x1847   : > { %s6850_s14 = scalar_lea.vmem (%p2982_p1), %s6849_s30, 256  ;;  %p6851_p5 = scmp.lt.s32.totalorder (%p2982_p1), %s4574_s9, %s6849_s30 }
0x1848   : >> { %v3774_v21 = vmul.f32 %v3772_v3, %v3768_v6  ;;  %p6852_p9 = scmp.lt.s32.totalorder (%p2982_p1), %s6850_s14, %s6844_s25 }
0x184a   : >> { %v3780_v11 = vadd.f32 %v3778_v9, %v3774_v21  ;;  %p6853_p10 = por (%p2982_p1), %p6852_p9, %p6851_p5 }
0x184c   : >> { %v3781_v12 = vpack.c.bf16 %v3780_v11, %v3779_v52  ;;  %p6854_p6 = pnand (%p2982_p1), %p6853_p10, %p6847_p13 }
0x184e   : >> { %3996 = vmatmul.mubr.bf16.vlgmr.msra.gmra.mxu1 %v3781_v12  ;;  %4039 = vmatmul.mubr.bf16.vlgmr.msra.gmra.mxu0 %v3781_v12 }
0x184f   : >> { %5401 = vmatpush3.bf16.msra.mxu1 %v6235_v15  ;;  %5423 = vmatpush3.bf16.msra.mxu0 %v6236_v17 }
0x1850   : >> { %5402 = vmatprep.subr.bf16.mxu1 %v6237_v8  ;;  %5424 = vmatprep.subr.bf16.mxu0 %v6238_v40 }
0x1853   : >> { %5403 = vmatpush3.bf16.msra.mxu1 %v6239_v18  ;;  %5425 = vmatpush3.bf16.msra.mxu0 %v6240_v20 }
0x1854   : >> { %5404 = vmatprep.subr.bf16.mxu1 %v6241_v22  ;;  %5426 = vmatprep.subr.bf16.mxu0 %v6242_v23 }
0x1857   : >> { %5405 = vmatpush3.bf16.msra.mxu1 %v6243_v24  ;;  %5427 = vmatpush3.bf16.msra.mxu0 %v6244_v26 }
0x1858   : >> { %5406 = vmatprep.subr.bf16.mxu1 %v6245_v27  ;;  %5428 = vmatprep.subr.bf16.mxu0 %v6246_v28 }
0x185b   : >> { %5407 = vmatpush3.bf16.msra.mxu1 %v6247_v29  ;;  %5429 = vmatpush3.bf16.msra.mxu0 %v6248_v30 }
0x185c   : >> { %5408 = vmatprep.subr.bf16.mxu1 %v6249_v31  ;;  %5430 = vmatprep.subr.bf16.mxu0 %v6250_v32 }
0x185f   : >> { %5409 = vmatpush3.bf16.msra.mxu1 %v6251_v33  ;;  %5431 = vmatpush3.bf16.msra.mxu0 %v6252_v34 }
0x1860   : >> { %5410 = vmatprep.subr.bf16.mxu1 %v6253_v35  ;;  %5432 = vmatprep.subr.bf16.mxu0 %v6254_v36 }
0x1863   : >> { %5411 = vmatpush3.bf16.msra.mxu1 %v6255_v37  ;;  %5433 = vmatpush3.bf16.msra.mxu0 %v6256_v38 }
0x1864   : >> { %5412 = vmatprep.subr.bf16.mxu1 %v6257_v39  ;;  %5434 = vmatprep.subr.bf16.mxu0 %v6258_v41 }
0x1867   : >> { %5413 = vmatpush3.bf16.msra.mxu1 %v6259_v42  ;;  %5435 = vmatpush3.bf16.msra.mxu0 %v6260_v44 }
0x1868   : >> { %5414 = vmatprep.subr.bf16.mxu1 %v6261_v45  ;;  %5436 = vmatprep.subr.bf16.mxu0 %v6262_v46 }
0x186b   : >> { %5415 = vmatpush3.bf16.msra.mxu1 %v6263_v47  ;;  %5437 = vmatpush3.bf16.msra.mxu0 %v6264_v48 }
0x186c   : > { %5661 = vmatprep.subr.bf16.mxu0 (%p2982_p1), %v7050_v0 }
0x190e   : >> { %v3997_v59 = vpop.f32.mrf.mxu1  ;;  %v4040_v60 = vpop.f32.mrf.mxu0 }
0x190f   : >> { %v8142_v63 = vadd.f32 %v3997_v59, %v3786_v50  ;;  %v8144_v55 = vadd.f32 %v4040_v60, %v3794_v51 }
0x1910   : >> { %v3999_v14 = vpop.f32.mrf.mxu1  ;;  %v4042_v1 = vpop.f32.mrf.mxu0 }
0x1911   : >> { %v4057_v25 = vmul.f32 0.044715, %v8142_v63  ;;  %v4059_v2 = vmul.f32 0.044715, %v8144_v55  ;;  %v4000_v3 = vadd.f32 %v3999_v14, %v3790_v57  ;;  %v8148_v4 = vadd.f32 %v4042_v1, %v3798_v58 }
0x1912   : >> { %v4001_v6 = vpop.f32.mrf.mxu1  ;;  %v4044_v7 = vpop.f32.mrf.mxu0 }
0x1913   : >> { %v4065_v9 = vmul.f32 %v4057_v25, %v8142_v63  ;;  %v4067_v21 = vmul.f32 %v4059_v2, %v8144_v55  ;;  %v4058_v52 = vmul.f32 0.044715, %v4000_v3  ;;  %v4060_v11 = vmul.f32 0.044715, %v8148_v4 }
0x1914   : >> { %v4002_v12 = vadd.f32 %v4001_v6, %v3786_v50  ;;  %v8153_v16 = vadd.f32 %v4044_v7, %v3794_v51  ;;  %v4003_v13 = vpop.f32.mrf.mxu1  ;;  %v4046_v15 = vpop.f32.mrf.mxu0 }
0x1915   : >> { %v4073_v17 = vmul.f32 %v4065_v9, %v8142_v63  ;;  %v4075_v8 = vmul.f32 %v4067_v21, %v8144_v55  ;;  %v4066_v40 = vmul.f32 %v4058_v52, %v4000_v3  ;;  %v4068_v18 = vmul.f32 %v4060_v11, %v8148_v4 }
0x1916   : >> { %v4061_v20 = vmul.f32 0.044715, %v4002_v12  ;;  %v4063_v22 = vmul.f32 0.044715, %v8153_v16  ;;  %v4004_v23 = vadd.f32 %v4003_v13, %v3790_v57  ;;  %v4047_v24 = vadd.f32 %v4046_v15, %v3798_v58 }
0x1917   : >> { %v4081_v26 = vadd.f32 %v4073_v17, %v8142_v63  ;;  %v4083_v27 = vadd.f32 %v4075_v8, %v8144_v55  ;;  %v4074_v28 = vmul.f32 %v4066_v40, %v4000_v3  ;;  %v4076_v29 = vmul.f32 %v4068_v18, %v8148_v4 }
0x1918   : >> { %v4069_v30 = vmul.f32 %v4061_v20, %v4002_v12  ;;  %v4071_v31 = vmul.f32 %v4063_v22, %v8153_v16  ;;  %v4062_v32 = vmul.f32 0.044715, %v4004_v23  ;;  %v4064_v33 = vmul.f32 0.044715, %v4047_v24 }
0x1919   : >> { %v4089_v34 = vmul.f32 0.7978846, %v4081_v26  ;;  %v4091_v35 = vmul.f32 0.7978846, %v4083_v27  ;;  %v4082_v36 = vadd.f32 %v4074_v28, %v4000_v3  ;;  %v4084_v44 = vadd.f32 %v4076_v29, %v8148_v4 }
0x191a   : >> { %v4077_v37 = vmul.f32 %v4069_v30, %v4002_v12  ;;  %v4079_v38 = vmul.f32 %v4071_v31, %v8153_v16  ;;  %v4070_v39 = vmul.f32 %v4062_v32, %v4004_v23  ;;  %v4072_v41 = vmul.f32 %v4064_v33, %v4047_v24 }
0x191b   : >> { %v4090_v42 = vmul.f32 0.7978846, %v4082_v36  ;;  %6289 = vtanh.f32 %v4089_v34  ;;  %v4092_v49 = vmul.f32 0.7978846, %v4084_v44  ;;  %v4050_v9 = vmul.f32 0.5, %v4000_v3 }
0x191c   : >> { %v4085_v45 = vadd.f32 %v4077_v37, %v4002_v12  ;;  %v4087_v46 = vadd.f32 %v4079_v38, %v8153_v16  ;;  %v4078_v47 = vmul.f32 %v4070_v39, %v4004_v23  ;;  %6291 = vtanh.f32 %v4091_v35  ;;  %v6305_v39 = vld [vmem:[%s7980_s15] sm:$0x3f]  ;;  %s8429_s15 = sld [smem:[#allocation79_spill]] (%p2982_p1) }
0x191d   : >> { %v4080_v48 = vmul.f32 %v4072_v41, %v4047_v24  ;;  %6293 = vtanh.f32 %v4090_v42  ;;  %v4049_v52 = vmul.f32 0.5, %v8142_v63  ;;  %v4053_v17 = vmul.f32 0.5, %v4002_v12 }
0x191e   : >> { %v4093_v50 = vmul.f32 0.7978846, %v4085_v45  ;;  %v4095_v51 = vmul.f32 0.7978846, %v4087_v46  ;;  %v4086_v57 = vadd.f32 %v4078_v47, %v4004_v23  ;;  %6295 = vtanh.f32 %v4092_v49 }
0x191f   : >> { %v4088_v58 = vadd.f32 %v4080_v48, %v4047_v24  ;;  %v4054_v20 = vmul.f32 0.5, %v4004_v23  ;;  %v4055_v26 = vmul.f32 0.5, %v8153_v16  ;;  %v4052_v28 = vmul.f32 0.5, %v8148_v4 }
0x1920   : >> { %6297 = vtanh.f32 %v4093_v50  ;;  %v4094_v59 = vmul.f32 0.7978846, %v4086_v57  ;;  %v4056_v29 = vmul.f32 0.5, %v4047_v24  ;;  %v4051_v63 = vmul.f32 0.5, %v8144_v55 }
0x1921   : >> { %6299 = vtanh.f32 %v4095_v51  ;;  %v4096_v60 = vmul.f32 0.7978846, %v4088_v58  ;;  %v4128_v55 = vrot.slane %v6305_v39, %v2316_v43 }
0x1922   : >> { %6301 = vtanh.f32 %v4094_v59  ;;  %s4571_s29 = scalar_lea.hbm (%p2982_p1), %s8429_s15, %s5256_s27 }
0x1923   : >> { %6303 = vtanh.f32 %v4096_v60 }
0x1928   : >> { %v6290_v14 = vpop.eup %6289 }
0x1929   : >> { %v6292_v1 = vpop.eup %6291  ;;  %v4105_v8 = vadd.f32 1.0, %v6290_v14 }
0x192a   : >> { %v6294_v25 = vpop.eup %6293  ;;  %v4107_v27 = vadd.f32 1.0, %v6292_v1 }
0x192b   : >> { %v6296_v2 = vpop.eup %6295  ;;  %v4106_v21 = vadd.f32 1.0, %v6294_v25  ;;  %v4113_v35 = vmul.f32 %v4105_v8, %v4049_v52  ;;  %v5243_v52 = vld [vmem:[#allocation25 + $0x1] ss:$0 sm:$0xff] (%p2982_p1) }
0x192c   : >> { %v4108_v15 = vadd.f32 1.0, %v6296_v2  ;;  %v4115_v23 = vmul.f32 %v4107_v27, %v4051_v63 }
0x192d   : >> { %v6298_v6 = vpop.eup %6297  ;;  %v4114_v31 = vmul.f32 %v4106_v21, %v4050_v9 }
0x192e   : >> { %v6300_v7 = vpop.eup %6299  ;;  %v4109_v11 = vadd.f32 1.0, %v6298_v6  ;;  %v4116_v12 = vmul.f32 %v4108_v15, %v4052_v28  ;;  %v6307_v6 = vld [vmem:[#allocation26 + $0x30] sm:$0xff] (%p2982_p1)  }
0x192f   : >> { %v6302_v13 = vpop.eup %6301  ;;  %v4111_v40 = vadd.f32 1.0, %v6300_v7  ;;  %v6308_v7 = vld [vmem:[#allocation26 + $0x28] sm:$0xff] (%p2982_p1)  }
0x1930   : >> { %v6304_v18 = vpop.eup %6303  ;;  %v4110_v22 = vadd.f32 1.0, %v6302_v13  ;;  %v4117_v3 = vmul.f32 %v4109_v11, %v4053_v17  ;;  %v5244_v13 = vld [vmem:[#allocation25 + $0x2] ss:$0 sm:$0xff] (%p2982_p1) }
0x1931   : >> { %v4112_v30 = vadd.f32 1.0, %v6304_v18  ;;  %v4119_v33 = vmul.f32 %v4111_v40, %v4055_v26 }
0x1932   : >> { %v4118_v32 = vmul.f32 %v4110_v22, %v4054_v20  ;;  %v4121_v38 = vpack.c.bf16 %v4117_v3, %v4113_v35 }
0x1933   : >> { %v4120_v34 = vmul.f32 %v4112_v30, %v4056_v29  ;;  %v4123_v16 = vpack.c.bf16 %v4119_v33, %v4115_v23 }
0x1934   : >> { %v4122_v36 = vpack.c.bf16 %v4118_v32, %v4114_v31 }
0x1935   : >> { %v4124_v37 = vpack.c.bf16 %v4120_v34, %v4116_v12 }
0x1936   : >> { %4353 = vmatprep.mubr.bf16.mxu1 %v4122_v36 }
0x1937   : >> { %4394 = vmatprep.mubr.bf16.mxu0 %v4124_v37  ;;  %4354 = vmatmul.mubr.bf16.vlgmr.msra.gmra.mxu1 %v4121_v38 }
0x1938   : >> { %4395 = vmatmul.mubr.bf16.vlgmr.msra.gmra.mxu0 %v4123_v16 }
0x1939   : > { %5677 = vmatprep.mubr.msk.bf16.mxu0 (%p2982_p1), %vm7051_vm0, %v7050_v0 }
0x19f7   : >> { %v5416_v4 = vpop.f32.mrf.mxu1 }
0x19f8   : >> { %v5438_v24 = vpop.f32.mrf.mxu0 }
0x19f9   : >> { %v5417_v41 = vpop.f32.mrf.mxu1 }
0x19fa   : >> { %v5418_v42 = vadd.f32 %v5417_v41, %v5416_v4  ;;  %v5439_v44 = vpop.f32.mrf.mxu0 }
0x19fb   : >> { %v5419_v45 = vpop.f32.mrf.mxu1  ;;  %v5440_v47 = vadd.f32 %v5439_v44, %v5438_v24 }
0x19fc   : >> { %v4356_v46 = vadd.f32 %v5418_v42, %v4128_v55  ;;  %v5441_v48 = vpop.f32.mrf.mxu0 }
0x19fd   : >> { %v5420_v49 = vpop.f32.mrf.mxu1 }
0x19fe   : >> { %v4397_v50 = vadd.f32 %v5440_v47, %v4356_v46  ;;  %v5421_v51 = vadd.f32 %v5420_v49, %v5419_v45  ;;  %v5442_v57 = vpop.f32.mrf.mxu0 }
0x19ff   : >> { %v5443_v59 = vadd.f32 %v5442_v57, %v5441_v48 }
0x1a00   : >> { %v4403_v21 = vadd.f32 %v4397_v50, %v8041_v5   ;;  %v4359_v58 = vadd.f32 %v5421_v51, %v4128_v55  ;;  %v6306_v5 = vld [vmem:[#allocation26 + $0x38] sm:$0xff] (%p2982_p1)  }
0x1a01   : > { %5662 = vmatpush3.bf16.msra.mxu0 (%p2982_p1), %v6306_v5 }
0x1a02   : >> { %v4400_v60 = vadd.f32 %v5443_v59, %v4359_v58  ;;  %2984 = sbr.rel (!%p2982_p1) target bundleno = 4247 (0x1097), region = 320  ;;  %5663 = vmatprep.subr.bf16.mxu0 (%p2982_p1), %v7050_v0 }
0x1a04   : >> { %v4404_v14 = vadd.f32 %v4400_v60, %v8045_v19  }
0x1a05   : > { %5664 = vmatpush3.bf16.msra.mxu0 (%p2982_p1), %v6307_v6 }
0x1a06   : >> { %v8426_v16 = vmov %v4404_v14  ;;  %4407 = vadd.xlane.f32.xlu0 (%p2982_p1), %v4404_v14  ;;  %5665 = vmatprep.subr.bf16.mxu0 (%p2982_p1), %v7050_v0 }
0x1a09   : > { %5666 = vmatpush3.bf16.msra.mxu0 %v6308_v7 }
0x1a0a   : > { %5667 = vmatprep.subr.bf16.mxu0 %v7050_v0 }
0x1a0d   : > { %5668 = vmatpush3.bf16.msra.mxu0 %v6309_v53 }
0x1a0e   : > { %5669 = vmatprep.subr.bf16.mxu0 %v7050_v0 }
0x1a11   : > { %5670 = vmatpush3.bf16.msra.mxu0 %v6310_v54 }
0x1a12   : > { %5671 = vmatprep.subr.bf16.mxu0 %v7050_v0 }
0x1a15   : > { %5672 = vmatpush3.bf16.msra.mxu0 %v6311_v56 }
0x1a16   : > { %5673 = vmatprep.subr.bf16.mxu0 %v7050_v0 }
0x1a19   : > { %5674 = vmatpush3.bf16.msra.mxu0 %v6312_v10 }
0x1a1a   : > { %5675 = vmatprep.subr.bf16.mxu0 %v7050_v0 }
0x1a1d   : > { %5676 = vmatpush3.bf16.msra.mxu0 %v6313_v61 }
0x1a8f   : > { %v4408_v19 = vpop.xlane.xlu0 %4407 }
0x1a90   : > { %v4409_v1 = vmul.f32 0.0078125, %v4408_v19 }
0x1a92   : > { %v4410_v25 = vsub.f32 %v4404_v14, %v4409_v1 }
0x1a94   : > { %v4411_v2 = vmul.f32 %v4410_v25, %v4410_v25 }
0x1a96   : > { %4412 = vadd.xlane.f32.xlu0 %v4411_v2 }
0x1b1f   : > { %v4413_v62 = vpop.xlane.xlu0 %4412 }
0x1b20   : > { %v4414_v43 = vmul.f32 0.0078125, %v4413_v62 }
0x1b22   : > { %v4415_v9 = vadd.f32 1e-05, %v4414_v43 }
0x1b24   : > { %6314 = vrsqrt.f32 %v4415_v9 }
0x1b31   : > { %v6315_v21 = vpop.eup %6314 }
0x1b32   : > { %v4417_v11 = vmul.f32 %v6315_v21, %v4410_v25 }
0x1b34   : > { %v4422_v15 = vmul.f32 %v5243_v52, %v4417_v11 }
0x1b36   : > { %v4427_v17 = vadd.f32 %v5244_v13, %v4422_v15 }
0x1b38   : > { %v4428_v8 = vpack.c.bf16 %v4427_v17, %v4427_v17 }
0x1b3a   : > { %5678 = vmatmul.mubr.bf16.vlgmr.msra.gmra.mxu0 %v4428_v8 }
0x1b3b   : > { %6857 = shalt.err (!%p6854_p6)
}
0x1b3c   : > { %s6858_s12 = scalar_lea.hbm %s4571_s29, 128  ;;  %s6862_s13 = scalar_lea.hbm %s8429_s15, 256 }
0x1b3d   : > { %p6859_p12 = scmp.ne.s32.totalorder %s4571_s29, %s6858_s12  ;;  %p6863_p2 = scmp.lt.s32.totalorder %s4571_s29, %s8429_s15 }
0x1b3e   : > { %p6864_p0 = scmp.lt.s32.totalorder %s6862_s13, %s6858_s12 }
0x1b3f   : > { %p6860_p11 = pnand %p6859_p12, %p8430_p3 }
0x1b40   : > { %p6865_p1 = por %p6864_p0, %p6863_p2 }
0x1b41   : > { %p6861_p7 = pneg %p6860_p11 }
0x1b43   : > { %p6866_p8 = pnand %p6865_p1, %p6861_p7 }
0x1b45   : > { %6869 = shalt.err (!%p6866_p8)
}
0x1b46   : > { %5754 = dma.vmem_to_hbm [thread:$0]  (%p8430_p3), %s4574_s9, 128, %s4571_s29, %s4547_s8  }
0x1b47   : > { %s8431_s0 = sld [smem:[#allocation74_spill]]  ;;  %s4560_s30 = sshll.u32 %s1144_s26, 4  ;;  %s8225_s30 = int_to_ptr.vmem [resolvable:$true] %s4560_s30 }
0x1b48   : > { %s8432_s18 = sld [smem:[#allocation78_spill]]  ;;  %s4542_s29 = scalar_lea.sflag [#allocation4], %s7555_s19 }
0x1b49   : > { %s6870_s9 = scalar_lea.vmem %s8225_s30, 128  ;;  %s7061_s10 = smov [#allocation34]  }
0x1b4a   : > { %p6871_p4 = scmp.ne.s32.totalorder %s8225_s30, %s6870_s9  ;;  %s6874_s8 = sshll.u32 %s7061_s10, 4  ;;  %s6875_s8 = int_to_ptr.vmem [resolvable:$false] %s6874_s8 }
0x1b4b   : > { %p6877_p9 = scmp.lt.s32.totalorder %s8225_s30, %s6875_s8 }
0x1b4c   : > { %p6872_p13 = pnand %p6871_p4, %p8430_p3 }
0x1b4d   : > { %v5245_v0 = vld [vmem:[%s8431_s0] ss:$0 sm:$0xff] }
0x1b4e   : > { %s8223_s5 = scalar_lea.hbm %s8432_s18, %s5256_s27  ;;  %p6873_p5 = pneg %p6872_p13 }
0x1b4f   : > { %s6876_s27 = scalar_lea.vmem %s6875_s8, 256 }
0x1b50   : > { %p6878_p10 = scmp.lt.s32.totalorder %s6876_s27, %s6870_s9 }
0x1b52   : > { %p6879_p6 = por %p6878_p10, %p6877_p9 }
0x1b54   : > { %p6880_p12 = pnand %p6879_p6, %p6873_p5 }
0x1bfa   : > { %v4534_v40 = vpop.f32.mrf.mxu0 }
0x1bfb   : > { %v4535_v18 = vadd.f32 %v5245_v0, %v4534_v40 }
0x1bfc   : > { %v5679_v20 = vpop.f32.mrf.mxu0 }
0x1bfd   : > { %4540 = vst [vmem:[%s1144_s26] sm:$0xff] %v4535_v18 }
0x1bfe   : > { %v4537_v22 = vpop.f32.mrf.mxu0 }
0x1bff   : > { %6883 = shalt.err (!%p6880_p12)
}
0x1c00   : > { %s6884_s23 = scalar_lea.hbm %s8223_s5, 128  ;;  %s6888_s13 = scalar_lea.hbm %s8432_s18, 256 }
0x1c01   : > { %p6885_p11 = scmp.ne.s32.totalorder %s8223_s5, %s6884_s23  ;;  %p6889_p0 = scmp.lt.s32.totalorder %s8223_s5, %s8432_s18 }
0x1c02   : > { %p6890_p1 = scmp.lt.s32.totalorder %s6888_s13, %s6884_s23 }
0x1c03   : > { %p6886_p7 = pnand %p6885_p11, %p8430_p3 }
0x1c04   : > { %p6891_p8 = por %p6890_p1, %p6889_p0 }
0x1c05   : > { %p6887_p2 = pneg %p6886_p7 }
0x1c07   : > { %p6892_p4 = pnand %p6891_p8, %p6887_p2 }
0x1c09   : > { %6895 = shalt.err (!%p6892_p4)
}
0x1c0a   : > { %5753 = dma.vmem_to_hbm [thread:$0]  (%p8430_p3), %s8225_s30, 128, %s8223_s5, %s4542_s29   ;;  %v5680_v26 = vpop.f32.mrf.mxu0 }
0x1c0b PF: > { %s8433_s1 = sld [smem:[#allocation51_spill]]  ;;  %p8436_p5 = scmp.ge.s32.totalorder %s7002_s28, 2 }
0x1c0c   : > { %s8434_s25 = sld [smem:[#allocation56_spill]] }
0x1c11   : > { %s4585_s0 = sand.u32 1, %s8433_s1  }
0x1c12   : > { %p8435_p13 = scmp.ne.s32.totalorder %s8434_s25, 0  ;;  %s4586_s14 = scalar_lea.sflag [#allocation4], %s4585_s0 }
0x1c14   : > { %p5820_p9 = pnand %p8436_p5, %p8435_p13 }
0x1c16   : > { %p5821_p10 = pneg %p5820_p9 }
0x1c18   : > { %6981 = dma.done.wait (%p5821_p10), %s4586_s14, 128  }
0x1c19   : > { %6983 = vsyncadd (%p5821_p10), %s4586_s14, 4294967168  ;;  %s4595_s12 = scalar_lea.sflag [#allocation36], %s4585_s0 }
0x1c1a   : > { %6985 = dma.done.wait (%p5821_p10), %s4595_s12, 128  }
0x1c1b   : > { %6987 = vsyncadd (%p5821_p10), %s4595_s12, 4294967168  ;;  %s8437_s28 = sld [smem:[#allocation53_spill]]  ;;  %s8439_s27 = smov %s6994_s3 }
0x1c1c   : > { %s8438_s2 = sld [smem:[#allocation54_spill]]  ;;  %s8440_s3 = smov %s6998_s7 }
0x1c21   : > { %p57_p3 = scmp.ge.s32.totalorder %s8437_s28, 4  }
0x1c22   : > { %s8441_s7 = smov %s8438_s2 }
0x1c23   :  { %59 = sbr.rel (!%p57_p3) target bundleno = 43 (0x2b), region = 331 }
0x1c28   :  { %4600 = vsyncpa [#allocation3], 1 }
0x1c29   :  { %4602 = vsyncpa [#allocation3 + $0x1], 1 }
0x1c2a   :  { %4603 = vsyncpa [#allocation6], 1 }
0x1c2b   :  { %4605 = vsyncpa [#allocation6 + $0x1], 1 }
0x1c2c   :  { %4606 = vsyncpa [#allocation9], 1 }
0x1c2d   :  { %4608 = vsyncpa [#allocation9 + $0x1], 1 }
0x1c2e   :  { %4609 = vsyncpa [#allocation12], 1 }
0x1c2f   :  { %4610 = vsyncpa [#allocation15], 1 }
0x1c30   :  { %4611 = vsyncpa [#allocation18], 1 }
0x1c31   :  { %4612 = vsyncpa [#allocation21], 1 }
0x1c32   :  { %4613 = vsyncpa [#allocation24], 1 }
0x1c33   :  { %4614 = vsyncpa [#allocation27], 1 }
0x1c34   :  { %4615 = vsyncpa [#allocation30], 1 }
0x1c35   :  { %4616 = vsyncpa [#allocation33], 1 }
0x1c36   :  { %4617 = vsyncpa [#allocation4], 1 }
0x1c37   :  { %4619 = vsyncpa [#allocation4 + $0x1], 1 }
0x1c38   :  { %4620 = vsyncpa [#allocation36], 1 }
0x1c39   :  { %4622 = vsyncpa [#allocation36 + $0x1], 1 }

</bundles_post_ra>
